<compile_context>
chip_gen: v7x
topology: tpu7x:2x2x1
jax: 0.10.0
libtpu: 0.0.40
codegen_flags: <defaults>
</compile_context>

<pallas_src>
import jax
import jax.numpy as jnp
from jax.experimental import pallas as pl
from jax.experimental.pallas import tpu as pltpu

# ---- model sizes (small, consistent with a PNN forward) -------------------
B = 8        # batch
F = 8        # number of feature fields
D = 16       # embedding dim
H = 32       # hidden width
VOCAB = 100  # synthetic embedding-table vocab
TB = 8       # batch tile processed per grid step (== B here)

Z_DIM = F * D          # linear-signal width  (128 -> lane-dense)
P_DIM = F * F          # product-signal width (64)


def pnn_kernel(xw_ref,                       # (B, F) int32, SMEM (scalar prefetch)
               table_ref,                    # (VOCAB, 1, D) f32, VMEM
               w1z_ref, w1p_ref, b1_ref,     # (Z_DIM,H) (P_DIM,H) (1,H)
               w2_ref, b2_ref,               # (H,H) (1,H)
               w3_ref,                       # (H,1)
               b3_ref,                       # (1,1) f32, SMEM
               out_ref,                      # (TB,1) f32
               emb_s,                        # (TB, F, D) f32 scratch
               z_s):                         # (TB, Z_DIM) f32 scratch
    i = pl.program_id(0)

    # ---- fused embedding gather -------------------------------------------
    # Each table row is written twice: field layout (for the Gram products)
    # and lane-dense flattened layout (for the linear signal), so neither
    # consumer needs an in-kernel relayout. Loop is fully static (64 iters).
    for b in range(TB):
        for f in range(F):
            idx = xw_ref[i * TB + b, f]            # SMEM scalar read
            row = table_ref[idx]                   # (1, D) dynamic leading-axis load
            emb_s[b, pl.ds(f, 1), :] = row
            z_s[pl.ds(b, 1), pl.ds(f * D, D)] = row

    emb = emb_s[...]                               # (TB, F, D)
    z = z_s[...]                                   # (TB, F*D) lane-dense

    # ---- product signal: pairwise inner products between field embeddings --
    gram = jnp.einsum("bfd,bgd->bfg", emb, emb,
                      preferred_element_type=jnp.float32)
    p = gram.reshape(TB, P_DIM)                    # (TB, F*F)

    # ---- MLP (no concatenate: W1 is split into z / p halves) ---------------
    h1 = (jnp.dot(z, w1z_ref[...], preferred_element_type=jnp.float32)
          + jnp.dot(p, w1p_ref[...], preferred_element_type=jnp.float32)
          + b1_ref[...])
    h1 = jnp.maximum(h1, 0.0)

    h2 = jnp.dot(h1, w2_ref[...], preferred_element_type=jnp.float32) + b2_ref[...]
    h2 = jnp.maximum(h2, 0.0)

    logit = jnp.dot(h2, w3_ref[...], preferred_element_type=jnp.float32) + b3_ref[0, 0]
    out_ref[...] = logit                           # (TB, 1)


def pnn_forward(x_wide, x_deep, params):
    """PNNModel.forward: returns (logit, logit, logit). x_deep is unused."""
    del x_deep  # TODO(synk): reference PNNModel.forward ignores x_deep entirely.
    emb_table, w1_z, w1_p, b1, w2, b2, w3, b3 = params

    # Unit middle axis so in-kernel row fetches are dynamic leading-axis loads.
    table3 = emb_table.reshape(VOCAB, 1, D)

    grid = (pl.cdiv(B, TB),)
    logit = pl.pallas_call(
        pnn_kernel,
        out_shape=jax.ShapeDtypeStruct((B, 1), jnp.float32),
        grid_spec=pltpu.PrefetchScalarGridSpec(
            num_scalar_prefetch=1,                 # x_wide -> SMEM
            grid=grid,
            in_specs=[
                pl.BlockSpec((VOCAB, 1, D), lambda i, xw: (0, 0, 0)),  # table
                pl.BlockSpec((Z_DIM, H), lambda i, xw: (0, 0)),        # W1_z
                pl.BlockSpec((P_DIM, H), lambda i, xw: (0, 0)),        # W1_p
                pl.BlockSpec((1, H), lambda i, xw: (0, 0)),            # b1
                pl.BlockSpec((H, H), lambda i, xw: (0, 0)),            # W2
                pl.BlockSpec((1, H), lambda i, xw: (0, 0)),            # b2
                pl.BlockSpec((H, 1), lambda i, xw: (0, 0)),            # W3
                pl.BlockSpec(memory_space=pltpu.MemorySpace.SMEM),     # b3 scalar
            ],
            out_specs=pl.BlockSpec((TB, 1), lambda i, xw: (i, 0)),
            scratch_shapes=[
                pltpu.VMEM((TB, F, D), jnp.float32),     # field-layout embeddings
                pltpu.VMEM((TB, Z_DIM), jnp.float32),    # lane-dense z
            ],
        ),
        compiler_params=pltpu.CompilerParams(
            dimension_semantics=("parallel",)),          # batch axis -> TC-parallel
    )(x_wide, table3, w1_z, w1_p, b1, w2, b2, w3, b3)

    return (logit, logit, logit)


def init_params(key):
    ks = jax.random.split(key, 8)
    in_dim = Z_DIM + P_DIM
    emb_table = jax.random.normal(ks[0], (VOCAB, D), jnp.float32) * 0.1
    w1_z = jax.random.normal(ks[1], (Z_DIM, H), jnp.float32) * (1.0 / jnp.sqrt(in_dim))
    w1_p = jax.random.normal(ks[2], (P_DIM, H), jnp.float32) * (1.0 / jnp.sqrt(in_dim))
    b1 = jax.random.normal(ks[3], (1, H), jnp.float32) * 0.01
    w2 = jax.random.normal(ks[4], (H, H), jnp.float32) * (1.0 / jnp.sqrt(H))
    b2 = jax.random.normal(ks[5], (1, H), jnp.float32) * 0.01
    w3 = jax.random.normal(ks[6], (H, 1), jnp.float32) * (1.0 / jnp.sqrt(H))
    b3 = jax.random.normal(ks[7], (1, 1), jnp.float32) * 0.01
    return (emb_table, w1_z, w1_p, b1, w2, b2, w3, b3)


def reference_forward(x_wide, params):
    emb_table, w1_z, w1_p, b1, w2, b2, w3, b3 = params
    emb = jnp.take(emb_table, x_wide, axis=0)            # (B, F, D)
    z = emb.reshape(B, F * D)
    gram = jnp.einsum("bfd,bgd->bfg", emb, emb)
    p = gram.reshape(B, F * F)
    h1 = jnp.maximum(z @ w1_z + p @ w1_p + b1, 0.0)
    h2 = jnp.maximum(h1 @ w2 + b2, 0.0)
    return h2 @ w3 + b3


if __name__ == "__main__":
    key = jax.random.PRNGKey(0)
    k_param, k_wide, k_deep = jax.random.split(key, 3)

    params = init_params(k_param)
    x_wide = jax.random.randint(k_wide, (B, F), 0, VOCAB, dtype=jnp.int32)
    x_deep = jax.random.normal(k_deep, (B, 16), jnp.float32)  # unused by forward

    out = pnn_forward(x_wide, x_deep, params)
    out = jax.block_until_ready(out)

    ref = reference_forward(x_wide, params)
    assert out[0].shape == (B, 1) and len(out) == 3
    assert jnp.allclose(out[0], ref, atol=1e-4, rtol=1e-4)
    assert jnp.array_equal(out[0], out[1]) and jnp.array_equal(out[0], out[2])

    print("KERNEL_OK")
</pallas_src>

<mosaic_0001>
module attributes {stable_mosaic.version = 11 : i64} {
  func.func @pnn_kernel(%arg0: i32, %arg1: memref<8x8xi32, #tpu.memory_space<smem>>, %arg2: memref<100x1x16xf32, #tpu.memory_space<vmem>>, %arg3: memref<128x32xf32, #tpu.memory_space<vmem>>, %arg4: memref<64x32xf32, #tpu.memory_space<vmem>>, %arg5: memref<1x32xf32, #tpu.memory_space<vmem>>, %arg6: memref<32x32xf32, #tpu.memory_space<vmem>>, %arg7: memref<1x32xf32, #tpu.memory_space<vmem>>, %arg8: memref<32x1xf32, #tpu.memory_space<vmem>>, %arg9: memref<1x1xf32, #tpu.memory_space<smem>>, %arg10: memref<8x1xf32, #tpu.memory_space<vmem>>, %arg11: memref<8x8x16xf32, #tpu.memory_space<vmem>>, %arg12: memref<8x128xf32, #tpu.memory_space<vmem>>) attributes {dimension_semantics = [#tpu.dimension_semantics<parallel>], iteration_bounds = array<i64: 1>, scalar_prefetch = 1 : i64, scratch_operands = 2 : i64, tpu.core_type = #tpu.core_type<tc>, window_params = [{pipeline_mode = #tpu.pipeline_mode<synchronous>, transform_indices = @transform_0, window_bounds = array<i64: 100, 1, 16>}, {pipeline_mode = #tpu.pipeline_mode<synchronous>, transform_indices = @transform_1, window_bounds = array<i64: 128, 32>}, {pipeline_mode = #tpu.pipeline_mode<synchronous>, transform_indices = @transform_2, window_bounds = array<i64: 64, 32>}, {pipeline_mode = #tpu.pipeline_mode<synchronous>, transform_indices = @transform_3, window_bounds = array<i64: 1, 32>}, {pipeline_mode = #tpu.pipeline_mode<synchronous>, transform_indices = @transform_4, window_bounds = array<i64: 32, 32>}, {pipeline_mode = #tpu.pipeline_mode<synchronous>, transform_indices = @transform_5, window_bounds = array<i64: 1, 32>}, {pipeline_mode = #tpu.pipeline_mode<synchronous>, transform_indices = @transform_6, window_bounds = array<i64: 32, 1>}, {transform_indices = @transform_7, window_bounds = array<i64: 1, 1>}, {transform_indices = @transform_8, window_bounds = array<i64: 8, 1>}]} {
    %c8_i32 = arith.constant 8 : i32
    %0 = arith.muli %arg0, %c8_i32 : i32
    %c0_i32 = arith.constant 0 : i32
    %1 = arith.addi %0, %c0_i32 : i32
    %2 = arith.index_cast %1 : i32 to index
    %c0 = arith.constant 0 : index
    %3 = memref.load %arg1[%2, %c0] : memref<8x8xi32, #tpu.memory_space<smem>>
    %4 = arith.index_cast %3 : i32 to index
    %c0_0 = arith.constant 0 : index
    %c0_1 = arith.constant 0 : index
    %5 = vector.load %arg2[%4, %c0_0, %c0_1] : memref<100x1x16xf32, #tpu.memory_space<vmem>>, vector<1x1x16xf32>
    %6 = vector.shape_cast %5 : vector<1x1x16xf32> to vector<1x16xf32>
    %c0_2 = arith.constant 0 : index
    %c0_3 = arith.constant 0 : index
    %c0_4 = arith.constant 0 : index
    %7 = vector.load %arg11[%c0_2, %c0_3, %c0_4] : memref<8x8x16xf32, #tpu.memory_space<vmem>>, vector<1x1x16xf32>
    %8 = vector.shape_cast %7 : vector<1x1x16xf32> to vector<1x16xf32>
    %9 = vector.shape_cast %6 : vector<1x16xf32> to vector<1x1x16xf32>
    tpu.vector_store %arg11[%c0_2, %c0_3, %c0_4], %9 {strides = array<i32>} : memref<8x8x16xf32, #tpu.memory_space<vmem>>, vector<1x1x16xf32>,
    %c0_5 = arith.constant 0 : index
    %c0_6 = arith.constant 0 : index
    %10 = vector.load %arg12[%c0_5, %c0_6] : memref<8x128xf32, #tpu.memory_space<vmem>>, vector<1x16xf32>
    tpu.vector_store %arg12[%c0_5, %c0_6], %6 {strides = array<i32>} : memref<8x128xf32, #tpu.memory_space<vmem>>, vector<1x16xf32>,
    %c8_i32_7 = arith.constant 8 : i32
    %11 = arith.muli %arg0, %c8_i32_7 : i32
    %c0_i32_8 = arith.constant 0 : i32
    %12 = arith.addi %11, %c0_i32_8 : i32
    %13 = arith.index_cast %12 : i32 to index
    %c1 = arith.constant 1 : index
    %14 = memref.load %arg1[%13, %c1] : memref<8x8xi32, #tpu.memory_space<smem>>
    %15 = arith.index_cast %14 : i32 to index
    %c0_9 = arith.constant 0 : index
    %c0_10 = arith.constant 0 : index
    %16 = vector.load %arg2[%15, %c0_9, %c0_10] : memref<100x1x16xf32, #tpu.memory_space<vmem>>, vector<1x1x16xf32>
    %17 = vector.shape_cast %16 : vector<1x1x16xf32> to vector<1x16xf32>
    %c0_11 = arith.constant 0 : index
    %c1_12 = arith.constant 1 : index
    %c0_13 = arith.constant 0 : index
    %18 = vector.load %arg11[%c0_11, %c1_12, %c0_13] : memref<8x8x16xf32, #tpu.memory_space<vmem>>, vector<1x1x16xf32>
    %19 = vector.shape_cast %18 : vector<1x1x16xf32> to vector<1x16xf32>
    %20 = vector.shape_cast %17 : vector<1x16xf32> to vector<1x1x16xf32>
    tpu.vector_store %arg11[%c0_11, %c1_12, %c0_13], %20 {strides = array<i32>} : memref<8x8x16xf32, #tpu.memory_space<vmem>>, vector<1x1x16xf32>,
    %c0_14 = arith.constant 0 : index
    %c16 = arith.constant 16 : index
    %21 = vector.load %arg12[%c0_14, %c16] : memref<8x128xf32, #tpu.memory_space<vmem>>, vector<1x16xf32>
    tpu.vector_store %arg12[%c0_14, %c16], %17 {strides = array<i32>} : memref<8x128xf32, #tpu.memory_space<vmem>>, vector<1x16xf32>,
    %c8_i32_15 = arith.constant 8 : i32
    %22 = arith.muli %arg0, %c8_i32_15 : i32
    %c0_i32_16 = arith.constant 0 : i32
    %23 = arith.addi %22, %c0_i32_16 : i32
    %24 = arith.index_cast %23 : i32 to index
    %c2 = arith.constant 2 : index
    %25 = memref.load %arg1[%24, %c2] : memref<8x8xi32, #tpu.memory_space<smem>>
    %26 = arith.index_cast %25 : i32 to index
    %c0_17 = arith.constant 0 : index
    %c0_18 = arith.constant 0 : index
    %27 = vector.load %arg2[%26, %c0_17, %c0_18] : memref<100x1x16xf32, #tpu.memory_space<vmem>>, vector<1x1x16xf32>
    %28 = vector.shape_cast %27 : vector<1x1x16xf32> to vector<1x16xf32>
    %c0_19 = arith.constant 0 : index
    %c2_20 = arith.constant 2 : index
    %c0_21 = arith.constant 0 : index
    %29 = vector.load %arg11[%c0_19, %c2_20, %c0_21] : memref<8x8x16xf32, #tpu.memory_space<vmem>>, vector<1x1x16xf32>
    %30 = vector.shape_cast %29 : vector<1x1x16xf32> to vector<1x16xf32>
    %31 = vector.shape_cast %28 : vector<1x16xf32> to vector<1x1x16xf32>
    tpu.vector_store %arg11[%c0_19, %c2_20, %c0_21], %31 {strides = array<i32>} : memref<8x8x16xf32, #tpu.memory_space<vmem>>, vector<1x1x16xf32>,
    %c0_22 = arith.constant 0 : index
    %c32 = arith.constant 32 : index
    %32 = vector.load %arg12[%c0_22, %c32] : memref<8x128xf32, #tpu.memory_space<vmem>>, vector<1x16xf32>
    tpu.vector_store %arg12[%c0_22, %c32], %28 {strides = array<i32>} : memref<8x128xf32, #tpu.memory_space<vmem>>, vector<1x16xf32>,
    %c8_i32_23 = arith.constant 8 : i32
    %33 = arith.muli %arg0, %c8_i32_23 : i32
    %c0_i32_24 = arith.constant 0 : i32
    %34 = arith.addi %33, %c0_i32_24 : i32
    %35 = arith.index_cast %34 : i32 to index
    %c3 = arith.constant 3 : index
    %36 = memref.load %arg1[%35, %c3] : memref<8x8xi32, #tpu.memory_space<smem>>
    %37 = arith.index_cast %36 : i32 to index
    %c0_25 = arith.constant 0 : index
    %c0_26 = arith.constant 0 : index
    %38 = vector.load %arg2[%37, %c0_25, %c0_26] : memref<100x1x16xf32, #tpu.memory_space<vmem>>, vector<1x1x16xf32>
    %39 = vector.shape_cast %38 : vector<1x1x16xf32> to vector<1x16xf32>
    %c0_27 = arith.constant 0 : index
    %c3_28 = arith.constant 3 : index
    %c0_29 = arith.constant 0 : index
    %40 = vector.load %arg11[%c0_27, %c3_28, %c0_29] : memref<8x8x16xf32, #tpu.memory_space<vmem>>, vector<1x1x16xf32>
    %41 = vector.shape_cast %40 : vector<1x1x16xf32> to vector<1x16xf32>
    %42 = vector.shape_cast %39 : vector<1x16xf32> to vector<1x1x16xf32>
    tpu.vector_store %arg11[%c0_27, %c3_28, %c0_29], %42 {strides = array<i32>} : memref<8x8x16xf32, #tpu.memory_space<vmem>>, vector<1x1x16xf32>,
    %c0_30 = arith.constant 0 : index
    %c48 = arith.constant 48 : index
    %43 = vector.load %arg12[%c0_30, %c48] : memref<8x128xf32, #tpu.memory_space<vmem>>, vector<1x16xf32>
    tpu.vector_store %arg12[%c0_30, %c48], %39 {strides = array<i32>} : memref<8x128xf32, #tpu.memory_space<vmem>>, vector<1x16xf32>,
    %c8_i32_31 = arith.constant 8 : i32
    %44 = arith.muli %arg0, %c8_i32_31 : i32
    %c0_i32_32 = arith.constant 0 : i32
    %45 = arith.addi %44, %c0_i32_32 : i32
    %46 = arith.index_cast %45 : i32 to index
    %c4 = arith.constant 4 : index
    %47 = memref.load %arg1[%46, %c4] : memref<8x8xi32, #tpu.memory_space<smem>>
    %48 = arith.index_cast %47 : i32 to index
    %c0_33 = arith.constant 0 : index
    %c0_34 = arith.constant 0 : index
    %49 = vector.load %arg2[%48, %c0_33, %c0_34] : memref<100x1x16xf32, #tpu.memory_space<vmem>>, vector<1x1x16xf32>
    %50 = vector.shape_cast %49 : vector<1x1x16xf32> to vector<1x16xf32>
    %c0_35 = arith.constant 0 : index
    %c4_36 = arith.constant 4 : index
    %c0_37 = arith.constant 0 : index
    %51 = vector.load %arg11[%c0_35, %c4_36, %c0_37] : memref<8x8x16xf32, #tpu.memory_space<vmem>>, vector<1x1x16xf32>
    %52 = vector.shape_cast %51 : vector<1x1x16xf32> to vector<1x16xf32>
    %53 = vector.shape_cast %50 : vector<1x16xf32> to vector<1x1x16xf32>
    tpu.vector_store %arg11[%c0_35, %c4_36, %c0_37], %53 {strides = array<i32>} : memref<8x8x16xf32, #tpu.memory_space<vmem>>, vector<1x1x16xf32>,
    %c0_38 = arith.constant 0 : index
    %c64 = arith.constant 64 : index
    %54 = vector.load %arg12[%c0_38, %c64] : memref<8x128xf32, #tpu.memory_space<vmem>>, vector<1x16xf32>
    tpu.vector_store %arg12[%c0_38, %c64], %50 {strides = array<i32>} : memref<8x128xf32, #tpu.memory_space<vmem>>, vector<1x16xf32>,
    %c8_i32_39 = arith.constant 8 : i32
    %55 = arith.muli %arg0, %c8_i32_39 : i32
    %c0_i32_40 = arith.constant 0 : i32
    %56 = arith.addi %55, %c0_i32_40 : i32
    %57 = arith.index_cast %56 : i32 to index
    %c5 = arith.constant 5 : index
    %58 = memref.load %arg1[%57, %c5] : memref<8x8xi32, #tpu.memory_space<smem>>
    %59 = arith.index_cast %58 : i32 to index
    %c0_41 = arith.constant 0 : index
    %c0_42 = arith.constant 0 : index
    %60 = vector.load %arg2[%59, %c0_41, %c0_42] : memref<100x1x16xf32, #tpu.memory_space<vmem>>, vector<1x1x16xf32>
    %61 = vector.shape_cast %60 : vector<1x1x16xf32> to vector<1x16xf32>
    %c0_43 = arith.constant 0 : index
    %c5_44 = arith.constant 5 : index
    %c0_45 = arith.constant 0 : index
    %62 = vector.load %arg11[%c0_43, %c5_44, %c0_45] : memref<8x8x16xf32, #tpu.memory_space<vmem>>, vector<1x1x16xf32>
    %63 = vector.shape_cast %62 : vector<1x1x16xf32> to vector<1x16xf32>
    %64 = vector.shape_cast %61 : vector<1x16xf32> to vector<1x1x16xf32>
    tpu.vector_store %arg11[%c0_43, %c5_44, %c0_45], %64 {strides = array<i32>} : memref<8x8x16xf32, #tpu.memory_space<vmem>>, vector<1x1x16xf32>,
    %c0_46 = arith.constant 0 : index
    %c80 = arith.constant 80 : index
    %65 = vector.load %arg12[%c0_46, %c80] : memref<8x128xf32, #tpu.memory_space<vmem>>, vector<1x16xf32>
    tpu.vector_store %arg12[%c0_46, %c80], %61 {strides = array<i32>} : memref<8x128xf32, #tpu.memory_space<vmem>>, vector<1x16xf32>,
    %c8_i32_47 = arith.constant 8 : i32
    %66 = arith.muli %arg0, %c8_i32_47 : i32
    %c0_i32_48 = arith.constant 0 : i32
    %67 = arith.addi %66, %c0_i32_48 : i32
    %68 = arith.index_cast %67 : i32 to index
    %c6 = arith.constant 6 : index
    %69 = memref.load %arg1[%68, %c6] : memref<8x8xi32, #tpu.memory_space<smem>>
    %70 = arith.index_cast %69 : i32 to index
    %c0_49 = arith.constant 0 : index
    %c0_50 = arith.constant 0 : index
    %71 = vector.load %arg2[%70, %c0_49, %c0_50] : memref<100x1x16xf32, #tpu.memory_space<vmem>>, vector<1x1x16xf32>
    %72 = vector.shape_cast %71 : vector<1x1x16xf32> to vector<1x16xf32>
    %c0_51 = arith.constant 0 : index
    %c6_52 = arith.constant 6 : index
    %c0_53 = arith.constant 0 : index
    %73 = vector.load %arg11[%c0_51, %c6_52, %c0_53] : memref<8x8x16xf32, #tpu.memory_space<vmem>>, vector<1x1x16xf32>
    %74 = vector.shape_cast %73 : vector<1x1x16xf32> to vector<1x16xf32>
    %75 = vector.shape_cast %72 : vector<1x16xf32> to vector<1x1x16xf32>
    tpu.vector_store %arg11[%c0_51, %c6_52, %c0_53], %75 {strides = array<i32>} : memref<8x8x16xf32, #tpu.memory_space<vmem>>, vector<1x1x16xf32>,
    %c0_54 = arith.constant 0 : index
    %c96 = arith.constant 96 : index
    %76 = vector.load %arg12[%c0_54, %c96] : memref<8x128xf32, #tpu.memory_space<vmem>>, vector<1x16xf32>
    tpu.vector_store %arg12[%c0_54, %c96], %72 {strides = array<i32>} : memref<8x128xf32, #tpu.memory_space<vmem>>, vector<1x16xf32>,
    %c8_i32_55 = arith.constant 8 : i32
    %77 = arith.muli %arg0, %c8_i32_55 : i32
    %c0_i32_56 = arith.constant 0 : i32
    %78 = arith.addi %77, %c0_i32_56 : i32
    %79 = arith.index_cast %78 : i32 to index
    %c7 = arith.constant 7 : index
    %80 = memref.load %arg1[%79, %c7] : memref<8x8xi32, #tpu.memory_space<smem>>
    %81 = arith.index_cast %80 : i32 to index
    %c0_57 = arith.constant 0 : index
    %c0_58 = arith.constant 0 : index
    %82 = vector.load %arg2[%81, %c0_57, %c0_58] : memref<100x1x16xf32, #tpu.memory_space<vmem>>, vector<1x1x16xf32>
    %83 = vector.shape_cast %82 : vector<1x1x16xf32> to vector<1x16xf32>
    %c0_59 = arith.constant 0 : index
    %c7_60 = arith.constant 7 : index
    %c0_61 = arith.constant 0 : index
    %84 = vector.load %arg11[%c0_59, %c7_60, %c0_61] : memref<8x8x16xf32, #tpu.memory_space<vmem>>, vector<1x1x16xf32>
    %85 = vector.shape_cast %84 : vector<1x1x16xf32> to vector<1x16xf32>
    %86 = vector.shape_cast %83 : vector<1x16xf32> to vector<1x1x16xf32>
    tpu.vector_store %arg11[%c0_59, %c7_60, %c0_61], %86 {strides = array<i32>} : memref<8x8x16xf32, #tpu.memory_space<vmem>>, vector<1x1x16xf32>,
    %c0_62 = arith.constant 0 : index
    %c112 = arith.constant 112 : index
    %87 = vector.load %arg12[%c0_62, %c112] : memref<8x128xf32, #tpu.memory_space<vmem>>, vector<1x16xf32>
    tpu.vector_store %arg12[%c0_62, %c112], %83 {strides = array<i32>} : memref<8x128xf32, #tpu.memory_space<vmem>>, vector<1x16xf32>,
    %c8_i32_63 = arith.constant 8 : i32
    %88 = arith.muli %arg0, %c8_i32_63 : i32
    %c1_i32 = arith.constant 1 : i32
    %89 = arith.addi %88, %c1_i32 : i32
    %90 = arith.index_cast %89 : i32 to index
    %c0_64 = arith.constant 0 : index
    %91 = memref.load %arg1[%90, %c0_64] : memref<8x8xi32, #tpu.memory_space<smem>>
    %92 = arith.index_cast %91 : i32 to index
    %c0_65 = arith.constant 0 : index
    %c0_66 = arith.constant 0 : index
    %93 = vector.load %arg2[%92, %c0_65, %c0_66] : memref<100x1x16xf32, #tpu.memory_space<vmem>>, vector<1x1x16xf32>
    %94 = vector.shape_cast %93 : vector<1x1x16xf32> to vector<1x16xf32>
    %c1_67 = arith.constant 1 : index
    %c0_68 = arith.constant 0 : index
    %c0_69 = arith.constant 0 : index
    %95 = vector.load %arg11[%c1_67, %c0_68, %c0_69] : memref<8x8x16xf32, #tpu.memory_space<vmem>>, vector<1x1x16xf32>
    %96 = vector.shape_cast %95 : vector<1x1x16xf32> to vector<1x16xf32>
    %97 = vector.shape_cast %94 : vector<1x16xf32> to vector<1x1x16xf32>
    tpu.vector_store %arg11[%c1_67, %c0_68, %c0_69], %97 {strides = array<i32>} : memref<8x8x16xf32, #tpu.memory_space<vmem>>, vector<1x1x16xf32>,
    %c1_70 = arith.constant 1 : index
    %c0_71 = arith.constant 0 : index
    %98 = vector.load %arg12[%c1_70, %c0_71] : memref<8x128xf32, #tpu.memory_space<vmem>>, vector<1x16xf32>
    tpu.vector_store %arg12[%c1_70, %c0_71], %94 {strides = array<i32>} : memref<8x128xf32, #tpu.memory_space<vmem>>, vector<1x16xf32>,
    %c8_i32_72 = arith.constant 8 : i32
    %99 = arith.muli %arg0, %c8_i32_72 : i32
    %c1_i32_73 = arith.constant 1 : i32
    %100 = arith.addi %99, %c1_i32_73 : i32
    %101 = arith.index_cast %100 : i32 to index
    %c1_74 = arith.constant 1 : index
    %102 = memref.load %arg1[%101, %c1_74] : memref<8x8xi32, #tpu.memory_space<smem>>
    %103 = arith.index_cast %102 : i32 to index
    %c0_75 = arith.constant 0 : index
    %c0_76 = arith.constant 0 : index
    %104 = vector.load %arg2[%103, %c0_75, %c0_76] : memref<100x1x16xf32, #tpu.memory_space<vmem>>, vector<1x1x16xf32>
    %105 = vector.shape_cast %104 : vector<1x1x16xf32> to vector<1x16xf32>
    %c1_77 = arith.constant 1 : index
    %c1_78 = arith.constant 1 : index
    %c0_79 = arith.constant 0 : index
    %106 = vector.load %arg11[%c1_77, %c1_78, %c0_79] : memref<8x8x16xf32, #tpu.memory_space<vmem>>, vector<1x1x16xf32>
    %107 = vector.shape_cast %106 : vector<1x1x16xf32> to vector<1x16xf32>
    %108 = vector.shape_cast %105 : vector<1x16xf32> to vector<1x1x16xf32>
    tpu.vector_store %arg11[%c1_77, %c1_78, %c0_79], %108 {strides = array<i32>} : memref<8x8x16xf32, #tpu.memory_space<vmem>>, vector<1x1x16xf32>,
    %c1_80 = arith.constant 1 : index
    %c16_81 = arith.constant 16 : index
    %109 = vector.load %arg12[%c1_80, %c16_81] : memref<8x128xf32, #tpu.memory_space<vmem>>, vector<1x16xf32>
    tpu.vector_store %arg12[%c1_80, %c16_81], %105 {strides = array<i32>} : memref<8x128xf32, #tpu.memory_space<vmem>>, vector<1x16xf32>,
    %c8_i32_82 = arith.constant 8 : i32
    %110 = arith.muli %arg0, %c8_i32_82 : i32
    %c1_i32_83 = arith.constant 1 : i32
    %111 = arith.addi %110, %c1_i32_83 : i32
    %112 = arith.index_cast %111 : i32 to index
    %c2_84 = arith.constant 2 : index
    %113 = memref.load %arg1[%112, %c2_84] : memref<8x8xi32, #tpu.memory_space<smem>>
    %114 = arith.index_cast %113 : i32 to index
    %c0_85 = arith.constant 0 : index
    %c0_86 = arith.constant 0 : index
    %115 = vector.load %arg2[%114, %c0_85, %c0_86] : memref<100x1x16xf32, #tpu.memory_space<vmem>>, vector<1x1x16xf32>
    %116 = vector.shape_cast %115 : vector<1x1x16xf32> to vector<1x16xf32>
    %c1_87 = arith.constant 1 : index
    %c2_88 = arith.constant 2 : index
    %c0_89 = arith.constant 0 : index
    %117 = vector.load %arg11[%c1_87, %c2_88, %c0_89] : memref<8x8x16xf32, #tpu.memory_space<vmem>>, vector<1x1x16xf32>
    %118 = vector.shape_cast %117 : vector<1x1x16xf32> to vector<1x16xf32>
    %119 = vector.shape_cast %116 : vector<1x16xf32> to vector<1x1x16xf32>
    tpu.vector_store %arg11[%c1_87, %c2_88, %c0_89], %119 {strides = array<i32>} : memref<8x8x16xf32, #tpu.memory_space<vmem>>, vector<1x1x16xf32>,
    %c1_90 = arith.constant 1 : index
    %c32_91 = arith.constant 32 : index
    %120 = vector.load %arg12[%c1_90, %c32_91] : memref<8x128xf32, #tpu.memory_space<vmem>>, vector<1x16xf32>
    tpu.vector_store %arg12[%c1_90, %c32_91], %116 {strides = array<i32>} : memref<8x128xf32, #tpu.memory_space<vmem>>, vector<1x16xf32>,
    %c8_i32_92 = arith.constant 8 : i32
    %121 = arith.muli %arg0, %c8_i32_92 : i32
    %c1_i32_93 = arith.constant 1 : i32
    %122 = arith.addi %121, %c1_i32_93 : i32
    %123 = arith.index_cast %122 : i32 to index
    %c3_94 = arith.constant 3 : index
    %124 = memref.load %arg1[%123, %c3_94] : memref<8x8xi32, #tpu.memory_space<smem>>
    %125 = arith.index_cast %124 : i32 to index
    %c0_95 = arith.constant 0 : index
    %c0_96 = arith.constant 0 : index
    %126 = vector.load %arg2[%125, %c0_95, %c0_96] : memref<100x1x16xf32, #tpu.memory_space<vmem>>, vector<1x1x16xf32>
    %127 = vector.shape_cast %126 : vector<1x1x16xf32> to vector<1x16xf32>
    %c1_97 = arith.constant 1 : index
    %c3_98 = arith.constant 3 : index
    %c0_99 = arith.constant 0 : index
    %128 = vector.load %arg11[%c1_97, %c3_98, %c0_99] : memref<8x8x16xf32, #tpu.memory_space<vmem>>, vector<1x1x16xf32>
    %129 = vector.shape_cast %128 : vector<1x1x16xf32> to vector<1x16xf32>
    %130 = vector.shape_cast %127 : vector<1x16xf32> to vector<1x1x16xf32>
    tpu.vector_store %arg11[%c1_97, %c3_98, %c0_99], %130 {strides = array<i32>} : memref<8x8x16xf32, #tpu.memory_space<vmem>>, vector<1x1x16xf32>,
    %c1_100 = arith.constant 1 : index
    %c48_101 = arith.constant 48 : index
    %131 = vector.load %arg12[%c1_100, %c48_101] : memref<8x128xf32, #tpu.memory_space<vmem>>, vector<1x16xf32>
    tpu.vector_store %arg12[%c1_100, %c48_101], %127 {strides = array<i32>} : memref<8x128xf32, #tpu.memory_space<vmem>>, vector<1x16xf32>,
    %c8_i32_102 = arith.constant 8 : i32
    %132 = arith.muli %arg0, %c8_i32_102 : i32
    %c1_i32_103 = arith.constant 1 : i32
    %133 = arith.addi %132, %c1_i32_103 : i32
    %134 = arith.index_cast %133 : i32 to index
    %c4_104 = arith.constant 4 : index
    %135 = memref.load %arg1[%134, %c4_104] : memref<8x8xi32, #tpu.memory_space<smem>>
    %136 = arith.index_cast %135 : i32 to index
    %c0_105 = arith.constant 0 : index
    %c0_106 = arith.constant 0 : index
    %137 = vector.load %arg2[%136, %c0_105, %c0_106] : memref<100x1x16xf32, #tpu.memory_space<vmem>>, vector<1x1x16xf32>
    %138 = vector.shape_cast %137 : vector<1x1x16xf32> to vector<1x16xf32>
    %c1_107 = arith.constant 1 : index
    %c4_108 = arith.constant 4 : index
    %c0_109 = arith.constant 0 : index
    %139 = vector.load %arg11[%c1_107, %c4_108, %c0_109] : memref<8x8x16xf32, #tpu.memory_space<vmem>>, vector<1x1x16xf32>
    %140 = vector.shape_cast %139 : vector<1x1x16xf32> to vector<1x16xf32>
    %141 = vector.shape_cast %138 : vector<1x16xf32> to vector<1x1x16xf32>
    tpu.vector_store %arg11[%c1_107, %c4_108, %c0_109], %141 {strides = array<i32>} : memref<8x8x16xf32, #tpu.memory_space<vmem>>, vector<1x1x16xf32>,
    %c1_110 = arith.constant 1 : index
    %c64_111 = arith.constant 64 : index
    %142 = vector.load %arg12[%c1_110, %c64_111] : memref<8x128xf32, #tpu.memory_space<vmem>>, vector<1x16xf32>
    tpu.vector_store %arg12[%c1_110, %c64_111], %138 {strides = array<i32>} : memref<8x128xf32, #tpu.memory_space<vmem>>, vector<1x16xf32>,
    %c8_i32_112 = arith.constant 8 : i32
    %143 = arith.muli %arg0, %c8_i32_112 : i32
    %c1_i32_113 = arith.constant 1 : i32
    %144 = arith.addi %143, %c1_i32_113 : i32
    %145 = arith.index_cast %144 : i32 to index
    %c5_114 = arith.constant 5 : index
    %146 = memref.load %arg1[%145, %c5_114] : memref<8x8xi32, #tpu.memory_space<smem>>
    %147 = arith.index_cast %146 : i32 to index
    %c0_115 = arith.constant 0 : index
    %c0_116 = arith.constant 0 : index
    %148 = vector.load %arg2[%147, %c0_115, %c0_116] : memref<100x1x16xf32, #tpu.memory_space<vmem>>, vector<1x1x16xf32>
    %149 = vector.shape_cast %148 : vector<1x1x16xf32> to vector<1x16xf32>
    %c1_117 = arith.constant 1 : index
    %c5_118 = arith.constant 5 : index
    %c0_119 = arith.constant 0 : index
    %150 = vector.load %arg11[%c1_117, %c5_118, %c0_119] : memref<8x8x16xf32, #tpu.memory_space<vmem>>, vector<1x1x16xf32>
    %151 = vector.shape_cast %150 : vector<1x1x16xf32> to vector<1x16xf32>
    %152 = vector.shape_cast %149 : vector<1x16xf32> to vector<1x1x16xf32>
    tpu.vector_store %arg11[%c1_117, %c5_118, %c0_119], %152 {strides = array<i32>} : memref<8x8x16xf32, #tpu.memory_space<vmem>>, vector<1x1x16xf32>,
    %c1_120 = arith.constant 1 : index
    %c80_121 = arith.constant 80 : index
    %153 = vector.load %arg12[%c1_120, %c80_121] : memref<8x128xf32, #tpu.memory_space<vmem>>, vector<1x16xf32>
    tpu.vector_store %arg12[%c1_120, %c80_121], %149 {strides = array<i32>} : memref<8x128xf32, #tpu.memory_space<vmem>>, vector<1x16xf32>,
    %c8_i32_122 = arith.constant 8 : i32
    %154 = arith.muli %arg0, %c8_i32_122 : i32
    %c1_i32_123 = arith.constant 1 : i32
    %155 = arith.addi %154, %c1_i32_123 : i32
    %156 = arith.index_cast %155 : i32 to index
    %c6_124 = arith.constant 6 : index
    %157 = memref.load %arg1[%156, %c6_124] : memref<8x8xi32, #tpu.memory_space<smem>>
    %158 = arith.index_cast %157 : i32 to index
    %c0_125 = arith.constant 0 : index
    %c0_126 = arith.constant 0 : index
    %159 = vector.load %arg2[%158, %c0_125, %c0_126] : memref<100x1x16xf32, #tpu.memory_space<vmem>>, vector<1x1x16xf32>
    %160 = vector.shape_cast %159 : vector<1x1x16xf32> to vector<1x16xf32>
    %c1_127 = arith.constant 1 : index
    %c6_128 = arith.constant 6 : index
    %c0_129 = arith.constant 0 : index
    %161 = vector.load %arg11[%c1_127, %c6_128, %c0_129] : memref<8x8x16xf32, #tpu.memory_space<vmem>>, vector<1x1x16xf32>
    %162 = vector.shape_cast %161 : vector<1x1x16xf32> to vector<1x16xf32>
    %163 = vector.shape_cast %160 : vector<1x16xf32> to vector<1x1x16xf32>
    tpu.vector_store %arg11[%c1_127, %c6_128, %c0_129], %163 {strides = array<i32>} : memref<8x8x16xf32, #tpu.memory_space<vmem>>, vector<1x1x16xf32>,
    %c1_130 = arith.constant 1 : index
    %c96_131 = arith.constant 96 : index
    %164 = vector.load %arg12[%c1_130, %c96_131] : memref<8x128xf32, #tpu.memory_space<vmem>>, vector<1x16xf32>
    tpu.vector_store %arg12[%c1_130, %c96_131], %160 {strides = array<i32>} : memref<8x128xf32, #tpu.memory_space<vmem>>, vector<1x16xf32>,
    %c8_i32_132 = arith.constant 8 : i32
    %165 = arith.muli %arg0, %c8_i32_132 : i32
    %c1_i32_133 = arith.constant 1 : i32
    %166 = arith.addi %165, %c1_i32_133 : i32
    %167 = arith.index_cast %166 : i32 to index
    %c7_134 = arith.constant 7 : index
    %168 = memref.load %arg1[%167, %c7_134] : memref<8x8xi32, #tpu.memory_space<smem>>
    %169 = arith.index_cast %168 : i32 to index
    %c0_135 = arith.constant 0 : index
    %c0_136 = arith.constant 0 : index
    %170 = vector.load %arg2[%169, %c0_135, %c0_136] : memref<100x1x16xf32, #tpu.memory_space<vmem>>, vector<1x1x16xf32>
    %171 = vector.shape_cast %170 : vector<1x1x16xf32> to vector<1x16xf32>
    %c1_137 = arith.constant 1 : index
    %c7_138 = arith.constant 7 : index
    %c0_139 = arith.constant 0 : index
    %172 = vector.load %arg11[%c1_137, %c7_138, %c0_139] : memref<8x8x16xf32, #tpu.memory_space<vmem>>, vector<1x1x16xf32>
    %173 = vector.shape_cast %172 : vector<1x1x16xf32> to vector<1x16xf32>
    %174 = vector.shape_cast %171 : vector<1x16xf32> to vector<1x1x16xf32>
    tpu.vector_store %arg11[%c1_137, %c7_138, %c0_139], %174 {strides = array<i32>} : memref<8x8x16xf32, #tpu.memory_space<vmem>>, vector<1x1x16xf32>,
    %c1_140 = arith.constant 1 : index
    %c112_141 = arith.constant 112 : index
    %175 = vector.load %arg12[%c1_140, %c112_141] : memref<8x128xf32, #tpu.memory_space<vmem>>, vector<1x16xf32>
    tpu.vector_store %arg12[%c1_140, %c112_141], %171 {strides = array<i32>} : memref<8x128xf32, #tpu.memory_space<vmem>>, vector<1x16xf32>,
    %c8_i32_142 = arith.constant 8 : i32
    %176 = arith.muli %arg0, %c8_i32_142 : i32
    %c2_i32 = arith.constant 2 : i32
    %177 = arith.addi %176, %c2_i32 : i32
    %178 = arith.index_cast %177 : i32 to index
    %c0_143 = arith.constant 0 : index
    %179 = memref.load %arg1[%178, %c0_143] : memref<8x8xi32, #tpu.memory_space<smem>>
    %180 = arith.index_cast %179 : i32 to index
    %c0_144 = arith.constant 0 : index
    %c0_145 = arith.constant 0 : index
    %181 = vector.load %arg2[%180, %c0_144, %c0_145] : memref<100x1x16xf32, #tpu.memory_space<vmem>>, vector<1x1x16xf32>
    %182 = vector.shape_cast %181 : vector<1x1x16xf32> to vector<1x16xf32>
    %c2_146 = arith.constant 2 : index
    %c0_147 = arith.constant 0 : index
    %c0_148 = arith.constant 0 : index
    %183 = vector.load %arg11[%c2_146, %c0_147, %c0_148] : memref<8x8x16xf32, #tpu.memory_space<vmem>>, vector<1x1x16xf32>
    %184 = vector.shape_cast %183 : vector<1x1x16xf32> to vector<1x16xf32>
    %185 = vector.shape_cast %182 : vector<1x16xf32> to vector<1x1x16xf32>
    tpu.vector_store %arg11[%c2_146, %c0_147, %c0_148], %185 {strides = array<i32>} : memref<8x8x16xf32, #tpu.memory_space<vmem>>, vector<1x1x16xf32>,
    %c2_149 = arith.constant 2 : index
    %c0_150 = arith.constant 0 : index
    %186 = vector.load %arg12[%c2_149, %c0_150] : memref<8x128xf32, #tpu.memory_space<vmem>>, vector<1x16xf32>
    tpu.vector_store %arg12[%c2_149, %c0_150], %182 {strides = array<i32>} : memref<8x128xf32, #tpu.memory_space<vmem>>, vector<1x16xf32>,
    %c8_i32_151 = arith.constant 8 : i32
    %187 = arith.muli %arg0, %c8_i32_151 : i32
    %c2_i32_152 = arith.constant 2 : i32
    %188 = arith.addi %187, %c2_i32_152 : i32
    %189 = arith.index_cast %188 : i32 to index
    %c1_153 = arith.constant 1 : index
    %190 = memref.load %arg1[%189, %c1_153] : memref<8x8xi32, #tpu.memory_space<smem>>
    %191 = arith.index_cast %190 : i32 to index
    %c0_154 = arith.constant 0 : index
    %c0_155 = arith.constant 0 : index
    %192 = vector.load %arg2[%191, %c0_154, %c0_155] : memref<100x1x16xf32, #tpu.memory_space<vmem>>, vector<1x1x16xf32>
    %193 = vector.shape_cast %192 : vector<1x1x16xf32> to vector<1x16xf32>
    %c2_156 = arith.constant 2 : index
    %c1_157 = arith.constant 1 : index
    %c0_158 = arith.constant 0 : index
    %194 = vector.load %arg11[%c2_156, %c1_157, %c0_158] : memref<8x8x16xf32, #tpu.memory_space<vmem>>, vector<1x1x16xf32>
    %195 = vector.shape_cast %194 : vector<1x1x16xf32> to vector<1x16xf32>
    %196 = vector.shape_cast %193 : vector<1x16xf32> to vector<1x1x16xf32>
    tpu.vector_store %arg11[%c2_156, %c1_157, %c0_158], %196 {strides = array<i32>} : memref<8x8x16xf32, #tpu.memory_space<vmem>>, vector<1x1x16xf32>,
    %c2_159 = arith.constant 2 : index
    %c16_160 = arith.constant 16 : index
    %197 = vector.load %arg12[%c2_159, %c16_160] : memref<8x128xf32, #tpu.memory_space<vmem>>, vector<1x16xf32>
    tpu.vector_store %arg12[%c2_159, %c16_160], %193 {strides = array<i32>} : memref<8x128xf32, #tpu.memory_space<vmem>>, vector<1x16xf32>,
    %c8_i32_161 = arith.constant 8 : i32
    %198 = arith.muli %arg0, %c8_i32_161 : i32
    %c2_i32_162 = arith.constant 2 : i32
    %199 = arith.addi %198, %c2_i32_162 : i32
    %200 = arith.index_cast %199 : i32 to index
    %c2_163 = arith.constant 2 : index
    %201 = memref.load %arg1[%200, %c2_163] : memref<8x8xi32, #tpu.memory_space<smem>>
    %202 = arith.index_cast %201 : i32 to index
    %c0_164 = arith.constant 0 : index
    %c0_165 = arith.constant 0 : index
    %203 = vector.load %arg2[%202, %c0_164, %c0_165] : memref<100x1x16xf32, #tpu.memory_space<vmem>>, vector<1x1x16xf32>
    %204 = vector.shape_cast %203 : vector<1x1x16xf32> to vector<1x16xf32>
    %c2_166 = arith.constant 2 : index
    %c2_167 = arith.constant 2 : index
    %c0_168 = arith.constant 0 : index
    %205 = vector.load %arg11[%c2_166, %c2_167, %c0_168] : memref<8x8x16xf32, #tpu.memory_space<vmem>>, vector<1x1x16xf32>
    %206 = vector.shape_cast %205 : vector<1x1x16xf32> to vector<1x16xf32>
    %207 = vector.shape_cast %204 : vector<1x16xf32> to vector<1x1x16xf32>
    tpu.vector_store %arg11[%c2_166, %c2_167, %c0_168], %207 {strides = array<i32>} : memref<8x8x16xf32, #tpu.memory_space<vmem>>, vector<1x1x16xf32>,
    %c2_169 = arith.constant 2 : index
    %c32_170 = arith.constant 32 : index
    %208 = vector.load %arg12[%c2_169, %c32_170] : memref<8x128xf32, #tpu.memory_space<vmem>>, vector<1x16xf32>
    tpu.vector_store %arg12[%c2_169, %c32_170], %204 {strides = array<i32>} : memref<8x128xf32, #tpu.memory_space<vmem>>, vector<1x16xf32>,
    %c8_i32_171 = arith.constant 8 : i32
    %209 = arith.muli %arg0, %c8_i32_171 : i32
    %c2_i32_172 = arith.constant 2 : i32
    %210 = arith.addi %209, %c2_i32_172 : i32
    %211 = arith.index_cast %210 : i32 to index
    %c3_173 = arith.constant 3 : index
    %212 = memref.load %arg1[%211, %c3_173] : memref<8x8xi32, #tpu.memory_space<smem>>
    %213 = arith.index_cast %212 : i32 to index
    %c0_174 = arith.constant 0 : index
    %c0_175 = arith.constant 0 : index
    %214 = vector.load %arg2[%213, %c0_174, %c0_175] : memref<100x1x16xf32, #tpu.memory_space<vmem>>, vector<1x1x16xf32>
    %215 = vector.shape_cast %214 : vector<1x1x16xf32> to vector<1x16xf32>
    %c2_176 = arith.constant 2 : index
    %c3_177 = arith.constant 3 : index
    %c0_178 = arith.constant 0 : index
    %216 = vector.load %arg11[%c2_176, %c3_177, %c0_178] : memref<8x8x16xf32, #tpu.memory_space<vmem>>, vector<1x1x16xf32>
    %217 = vector.shape_cast %216 : vector<1x1x16xf32> to vector<1x16xf32>
    %218 = vector.shape_cast %215 : vector<1x16xf32> to vector<1x1x16xf32>
    tpu.vector_store %arg11[%c2_176, %c3_177, %c0_178], %218 {strides = array<i32>} : memref<8x8x16xf32, #tpu.memory_space<vmem>>, vector<1x1x16xf32>,
    %c2_179 = arith.constant 2 : index
    %c48_180 = arith.constant 48 : index
    %219 = vector.load %arg12[%c2_179, %c48_180] : memref<8x128xf32, #tpu.memory_space<vmem>>, vector<1x16xf32>
    tpu.vector_store %arg12[%c2_179, %c48_180], %215 {strides = array<i32>} : memref<8x128xf32, #tpu.memory_space<vmem>>, vector<1x16xf32>,
    %c8_i32_181 = arith.constant 8 : i32
    %220 = arith.muli %arg0, %c8_i32_181 : i32
    %c2_i32_182 = arith.constant 2 : i32
    %221 = arith.addi %220, %c2_i32_182 : i32
    %222 = arith.index_cast %221 : i32 to index
    %c4_183 = arith.constant 4 : index
    %223 = memref.load %arg1[%222, %c4_183] : memref<8x8xi32, #tpu.memory_space<smem>>
    %224 = arith.index_cast %223 : i32 to index
    %c0_184 = arith.constant 0 : index
    %c0_185 = arith.constant 0 : index
    %225 = vector.load %arg2[%224, %c0_184, %c0_185] : memref<100x1x16xf32, #tpu.memory_space<vmem>>, vector<1x1x16xf32>
    %226 = vector.shape_cast %225 : vector<1x1x16xf32> to vector<1x16xf32>
    %c2_186 = arith.constant 2 : index
    %c4_187 = arith.constant 4 : index
    %c0_188 = arith.constant 0 : index
    %227 = vector.load %arg11[%c2_186, %c4_187, %c0_188] : memref<8x8x16xf32, #tpu.memory_space<vmem>>, vector<1x1x16xf32>
    %228 = vector.shape_cast %227 : vector<1x1x16xf32> to vector<1x16xf32>
    %229 = vector.shape_cast %226 : vector<1x16xf32> to vector<1x1x16xf32>
    tpu.vector_store %arg11[%c2_186, %c4_187, %c0_188], %229 {strides = array<i32>} : memref<8x8x16xf32, #tpu.memory_space<vmem>>, vector<1x1x16xf32>,
    %c2_189 = arith.constant 2 : index
    %c64_190 = arith.constant 64 : index
    %230 = vector.load %arg12[%c2_189, %c64_190] : memref<8x128xf32, #tpu.memory_space<vmem>>, vector<1x16xf32>
    tpu.vector_store %arg12[%c2_189, %c64_190], %226 {strides = array<i32>} : memref<8x128xf32, #tpu.memory_space<vmem>>, vector<1x16xf32>,
    %c8_i32_191 = arith.constant 8 : i32
    %231 = arith.muli %arg0, %c8_i32_191 : i32
    %c2_i32_192 = arith.constant 2 : i32
    %232 = arith.addi %231, %c2_i32_192 : i32
    %233 = arith.index_cast %232 : i32 to index
    %c5_193 = arith.constant 5 : index
    %234 = memref.load %arg1[%233, %c5_193] : memref<8x8xi32, #tpu.memory_space<smem>>
    %235 = arith.index_cast %234 : i32 to index
    %c0_194 = arith.constant 0 : index
    %c0_195 = arith.constant 0 : index
    %236 = vector.load %arg2[%235, %c0_194, %c0_195] : memref<100x1x16xf32, #tpu.memory_space<vmem>>, vector<1x1x16xf32>
    %237 = vector.shape_cast %236 : vector<1x1x16xf32> to vector<1x16xf32>
    %c2_196 = arith.constant 2 : index
    %c5_197 = arith.constant 5 : index
    %c0_198 = arith.constant 0 : index
    %238 = vector.load %arg11[%c2_196, %c5_197, %c0_198] : memref<8x8x16xf32, #tpu.memory_space<vmem>>, vector<1x1x16xf32>
    %239 = vector.shape_cast %238 : vector<1x1x16xf32> to vector<1x16xf32>
    %240 = vector.shape_cast %237 : vector<1x16xf32> to vector<1x1x16xf32>
    tpu.vector_store %arg11[%c2_196, %c5_197, %c0_198], %240 {strides = array<i32>} : memref<8x8x16xf32, #tpu.memory_space<vmem>>, vector<1x1x16xf32>,
    %c2_199 = arith.constant 2 : index
    %c80_200 = arith.constant 80 : index
    %241 = vector.load %arg12[%c2_199, %c80_200] : memref<8x128xf32, #tpu.memory_space<vmem>>, vector<1x16xf32>
    tpu.vector_store %arg12[%c2_199, %c80_200], %237 {strides = array<i32>} : memref<8x128xf32, #tpu.memory_space<vmem>>, vector<1x16xf32>,
    %c8_i32_201 = arith.constant 8 : i32
    %242 = arith.muli %arg0, %c8_i32_201 : i32
    %c2_i32_202 = arith.constant 2 : i32
    %243 = arith.addi %242, %c2_i32_202 : i32
    %244 = arith.index_cast %243 : i32 to index
    %c6_203 = arith.constant 6 : index
    %245 = memref.load %arg1[%244, %c6_203] : memref<8x8xi32, #tpu.memory_space<smem>>
    %246 = arith.index_cast %245 : i32 to index
    %c0_204 = arith.constant 0 : index
    %c0_205 = arith.constant 0 : index
    %247 = vector.load %arg2[%246, %c0_204, %c0_205] : memref<100x1x16xf32, #tpu.memory_space<vmem>>, vector<1x1x16xf32>
    %248 = vector.shape_cast %247 : vector<1x1x16xf32> to vector<1x16xf32>
    %c2_206 = arith.constant 2 : index
    %c6_207 = arith.constant 6 : index
    %c0_208 = arith.constant 0 : index
    %249 = vector.load %arg11[%c2_206, %c6_207, %c0_208] : memref<8x8x16xf32, #tpu.memory_space<vmem>>, vector<1x1x16xf32>
    %250 = vector.shape_cast %249 : vector<1x1x16xf32> to vector<1x16xf32>
    %251 = vector.shape_cast %248 : vector<1x16xf32> to vector<1x1x16xf32>
    tpu.vector_store %arg11[%c2_206, %c6_207, %c0_208], %251 {strides = array<i32>} : memref<8x8x16xf32, #tpu.memory_space<vmem>>, vector<1x1x16xf32>,
    %c2_209 = arith.constant 2 : index
    %c96_210 = arith.constant 96 : index
    %252 = vector.load %arg12[%c2_209, %c96_210] : memref<8x128xf32, #tpu.memory_space<vmem>>, vector<1x16xf32>
    tpu.vector_store %arg12[%c2_209, %c96_210], %248 {strides = array<i32>} : memref<8x128xf32, #tpu.memory_space<vmem>>, vector<1x16xf32>,
    %c8_i32_211 = arith.constant 8 : i32
    %253 = arith.muli %arg0, %c8_i32_211 : i32
    %c2_i32_212 = arith.constant 2 : i32
    %254 = arith.addi %253, %c2_i32_212 : i32
    %255 = arith.index_cast %254 : i32 to index
    %c7_213 = arith.constant 7 : index
    %256 = memref.load %arg1[%255, %c7_213] : memref<8x8xi32, #tpu.memory_space<smem>>
    %257 = arith.index_cast %256 : i32 to index
    %c0_214 = arith.constant 0 : index
    %c0_215 = arith.constant 0 : index
    %258 = vector.load %arg2[%257, %c0_214, %c0_215] : memref<100x1x16xf32, #tpu.memory_space<vmem>>, vector<1x1x16xf32>
    %259 = vector.shape_cast %258 : vector<1x1x16xf32> to vector<1x16xf32>
    %c2_216 = arith.constant 2 : index
    %c7_217 = arith.constant 7 : index
    %c0_218 = arith.constant 0 : index
    %260 = vector.load %arg11[%c2_216, %c7_217, %c0_218] : memref<8x8x16xf32, #tpu.memory_space<vmem>>, vector<1x1x16xf32>
    %261 = vector.shape_cast %260 : vector<1x1x16xf32> to vector<1x16xf32>
    %262 = vector.shape_cast %259 : vector<1x16xf32> to vector<1x1x16xf32>
    tpu.vector_store %arg11[%c2_216, %c7_217, %c0_218], %262 {strides = array<i32>} : memref<8x8x16xf32, #tpu.memory_space<vmem>>, vector<1x1x16xf32>,
    %c2_219 = arith.constant 2 : index
    %c112_220 = arith.constant 112 : index
    %263 = vector.load %arg12[%c2_219, %c112_220] : memref<8x128xf32, #tpu.memory_space<vmem>>, vector<1x16xf32>
    tpu.vector_store %arg12[%c2_219, %c112_220], %259 {strides = array<i32>} : memref<8x128xf32, #tpu.memory_space<vmem>>, vector<1x16xf32>,
    %c8_i32_221 = arith.constant 8 : i32
    %264 = arith.muli %arg0, %c8_i32_221 : i32
    %c3_i32 = arith.constant 3 : i32
    %265 = arith.addi %264, %c3_i32 : i32
    %266 = arith.index_cast %265 : i32 to index
    %c0_222 = arith.constant 0 : index
    %267 = memref.load %arg1[%266, %c0_222] : memref<8x8xi32, #tpu.memory_space<smem>>
    %268 = arith.index_cast %267 : i32 to index
    %c0_223 = arith.constant 0 : index
    %c0_224 = arith.constant 0 : index
    %269 = vector.load %arg2[%268, %c0_223, %c0_224] : memref<100x1x16xf32, #tpu.memory_space<vmem>>, vector<1x1x16xf32>
    %270 = vector.shape_cast %269 : vector<1x1x16xf32> to vector<1x16xf32>
    %c3_225 = arith.constant 3 : index
    %c0_226 = arith.constant 0 : index
    %c0_227 = arith.constant 0 : index
    %271 = vector.load %arg11[%c3_225, %c0_226, %c0_227] : memref<8x8x16xf32, #tpu.memory_space<vmem>>, vector<1x1x16xf32>
    %272 = vector.shape_cast %271 : vector<1x1x16xf32> to vector<1x16xf32>
    %273 = vector.shape_cast %270 : vector<1x16xf32> to vector<1x1x16xf32>
    tpu.vector_store %arg11[%c3_225, %c0_226, %c0_227], %273 {strides = array<i32>} : memref<8x8x16xf32, #tpu.memory_space<vmem>>, vector<1x1x16xf32>,
    %c3_228 = arith.constant 3 : index
    %c0_229 = arith.constant 0 : index
    %274 = vector.load %arg12[%c3_228, %c0_229] : memref<8x128xf32, #tpu.memory_space<vmem>>, vector<1x16xf32>
    tpu.vector_store %arg12[%c3_228, %c0_229], %270 {strides = array<i32>} : memref<8x128xf32, #tpu.memory_space<vmem>>, vector<1x16xf32>,
    %c8_i32_230 = arith.constant 8 : i32
    %275 = arith.muli %arg0, %c8_i32_230 : i32
    %c3_i32_231 = arith.constant 3 : i32
    %276 = arith.addi %275, %c3_i32_231 : i32
    %277 = arith.index_cast %276 : i32 to index
    %c1_232 = arith.constant 1 : index
    %278 = memref.load %arg1[%277, %c1_232] : memref<8x8xi32, #tpu.memory_space<smem>>
    %279 = arith.index_cast %278 : i32 to index
    %c0_233 = arith.constant 0 : index
    %c0_234 = arith.constant 0 : index
    %280 = vector.load %arg2[%279, %c0_233, %c0_234] : memref<100x1x16xf32, #tpu.memory_space<vmem>>, vector<1x1x16xf32>
    %281 = vector.shape_cast %280 : vector<1x1x16xf32> to vector<1x16xf32>
    %c3_235 = arith.constant 3 : index
    %c1_236 = arith.constant 1 : index
    %c0_237 = arith.constant 0 : index
    %282 = vector.load %arg11[%c3_235, %c1_236, %c0_237] : memref<8x8x16xf32, #tpu.memory_space<vmem>>, vector<1x1x16xf32>
    %283 = vector.shape_cast %282 : vector<1x1x16xf32> to vector<1x16xf32>
    %284 = vector.shape_cast %281 : vector<1x16xf32> to vector<1x1x16xf32>
    tpu.vector_store %arg11[%c3_235, %c1_236, %c0_237], %284 {strides = array<i32>} : memref<8x8x16xf32, #tpu.memory_space<vmem>>, vector<1x1x16xf32>,
    %c3_238 = arith.constant 3 : index
    %c16_239 = arith.constant 16 : index
    %285 = vector.load %arg12[%c3_238, %c16_239] : memref<8x128xf32, #tpu.memory_space<vmem>>, vector<1x16xf32>
    tpu.vector_store %arg12[%c3_238, %c16_239], %281 {strides = array<i32>} : memref<8x128xf32, #tpu.memory_space<vmem>>, vector<1x16xf32>,
    %c8_i32_240 = arith.constant 8 : i32
    %286 = arith.muli %arg0, %c8_i32_240 : i32
    %c3_i32_241 = arith.constant 3 : i32
    %287 = arith.addi %286, %c3_i32_241 : i32
    %288 = arith.index_cast %287 : i32 to index
    %c2_242 = arith.constant 2 : index
    %289 = memref.load %arg1[%288, %c2_242] : memref<8x8xi32, #tpu.memory_space<smem>>
    %290 = arith.index_cast %289 : i32 to index
    %c0_243 = arith.constant 0 : index
    %c0_244 = arith.constant 0 : index
    %291 = vector.load %arg2[%290, %c0_243, %c0_244] : memref<100x1x16xf32, #tpu.memory_space<vmem>>, vector<1x1x16xf32>
    %292 = vector.shape_cast %291 : vector<1x1x16xf32> to vector<1x16xf32>
    %c3_245 = arith.constant 3 : index
    %c2_246 = arith.constant 2 : index
    %c0_247 = arith.constant 0 : index
    %293 = vector.load %arg11[%c3_245, %c2_246, %c0_247] : memref<8x8x16xf32, #tpu.memory_space<vmem>>, vector<1x1x16xf32>
    %294 = vector.shape_cast %293 : vector<1x1x16xf32> to vector<1x16xf32>
    %295 = vector.shape_cast %292 : vector<1x16xf32> to vector<1x1x16xf32>
    tpu.vector_store %arg11[%c3_245, %c2_246, %c0_247], %295 {strides = array<i32>} : memref<8x8x16xf32, #tpu.memory_space<vmem>>, vector<1x1x16xf32>,
    %c3_248 = arith.constant 3 : index
    %c32_249 = arith.constant 32 : index
    %296 = vector.load %arg12[%c3_248, %c32_249] : memref<8x128xf32, #tpu.memory_space<vmem>>, vector<1x16xf32>
    tpu.vector_store %arg12[%c3_248, %c32_249], %292 {strides = array<i32>} : memref<8x128xf32, #tpu.memory_space<vmem>>, vector<1x16xf32>,
    %c8_i32_250 = arith.constant 8 : i32
    %297 = arith.muli %arg0, %c8_i32_250 : i32
    %c3_i32_251 = arith.constant 3 : i32
    %298 = arith.addi %297, %c3_i32_251 : i32
    %299 = arith.index_cast %298 : i32 to index
    %c3_252 = arith.constant 3 : index
    %300 = memref.load %arg1[%299, %c3_252] : memref<8x8xi32, #tpu.memory_space<smem>>
    %301 = arith.index_cast %300 : i32 to index
    %c0_253 = arith.constant 0 : index
    %c0_254 = arith.constant 0 : index
    %302 = vector.load %arg2[%301, %c0_253, %c0_254] : memref<100x1x16xf32, #tpu.memory_space<vmem>>, vector<1x1x16xf32>
    %303 = vector.shape_cast %302 : vector<1x1x16xf32> to vector<1x16xf32>
    %c3_255 = arith.constant 3 : index
    %c3_256 = arith.constant 3 : index
    %c0_257 = arith.constant 0 : index
    %304 = vector.load %arg11[%c3_255, %c3_256, %c0_257] : memref<8x8x16xf32, #tpu.memory_space<vmem>>, vector<1x1x16xf32>
    %305 = vector.shape_cast %304 : vector<1x1x16xf32> to vector<1x16xf32>
    %306 = vector.shape_cast %303 : vector<1x16xf32> to vector<1x1x16xf32>
    tpu.vector_store %arg11[%c3_255, %c3_256, %c0_257], %306 {strides = array<i32>} : memref<8x8x16xf32, #tpu.memory_space<vmem>>, vector<1x1x16xf32>,
    %c3_258 = arith.constant 3 : index
    %c48_259 = arith.constant 48 : index
    %307 = vector.load %arg12[%c3_258, %c48_259] : memref<8x128xf32, #tpu.memory_space<vmem>>, vector<1x16xf32>
    tpu.vector_store %arg12[%c3_258, %c48_259], %303 {strides = array<i32>} : memref<8x128xf32, #tpu.memory_space<vmem>>, vector<1x16xf32>,
    %c8_i32_260 = arith.constant 8 : i32
    %308 = arith.muli %arg0, %c8_i32_260 : i32
    %c3_i32_261 = arith.constant 3 : i32
    %309 = arith.addi %308, %c3_i32_261 : i32
    %310 = arith.index_cast %309 : i32 to index
    %c4_262 = arith.constant 4 : index
    %311 = memref.load %arg1[%310, %c4_262] : memref<8x8xi32, #tpu.memory_space<smem>>
    %312 = arith.index_cast %311 : i32 to index
    %c0_263 = arith.constant 0 : index
    %c0_264 = arith.constant 0 : index
    %313 = vector.load %arg2[%312, %c0_263, %c0_264] : memref<100x1x16xf32, #tpu.memory_space<vmem>>, vector<1x1x16xf32>
    %314 = vector.shape_cast %313 : vector<1x1x16xf32> to vector<1x16xf32>
    %c3_265 = arith.constant 3 : index
    %c4_266 = arith.constant 4 : index
    %c0_267 = arith.constant 0 : index
    %315 = vector.load %arg11[%c3_265, %c4_266, %c0_267] : memref<8x8x16xf32, #tpu.memory_space<vmem>>, vector<1x1x16xf32>
    %316 = vector.shape_cast %315 : vector<1x1x16xf32> to vector<1x16xf32>
    %317 = vector.shape_cast %314 : vector<1x16xf32> to vector<1x1x16xf32>
    tpu.vector_store %arg11[%c3_265, %c4_266, %c0_267], %317 {strides = array<i32>} : memref<8x8x16xf32, #tpu.memory_space<vmem>>, vector<1x1x16xf32>,
    %c3_268 = arith.constant 3 : index
    %c64_269 = arith.constant 64 : index
    %318 = vector.load %arg12[%c3_268, %c64_269] : memref<8x128xf32, #tpu.memory_space<vmem>>, vector<1x16xf32>
    tpu.vector_store %arg12[%c3_268, %c64_269], %314 {strides = array<i32>} : memref<8x128xf32, #tpu.memory_space<vmem>>, vector<1x16xf32>,
    %c8_i32_270 = arith.constant 8 : i32
    %319 = arith.muli %arg0, %c8_i32_270 : i32
    %c3_i32_271 = arith.constant 3 : i32
    %320 = arith.addi %319, %c3_i32_271 : i32
    %321 = arith.index_cast %320 : i32 to index
    %c5_272 = arith.constant 5 : index
    %322 = memref.load %arg1[%321, %c5_272] : memref<8x8xi32, #tpu.memory_space<smem>>
    %323 = arith.index_cast %322 : i32 to index
    %c0_273 = arith.constant 0 : index
    %c0_274 = arith.constant 0 : index
    %324 = vector.load %arg2[%323, %c0_273, %c0_274] : memref<100x1x16xf32, #tpu.memory_space<vmem>>, vector<1x1x16xf32>
    %325 = vector.shape_cast %324 : vector<1x1x16xf32> to vector<1x16xf32>
    %c3_275 = arith.constant 3 : index
    %c5_276 = arith.constant 5 : index
    %c0_277 = arith.constant 0 : index
    %326 = vector.load %arg11[%c3_275, %c5_276, %c0_277] : memref<8x8x16xf32, #tpu.memory_space<vmem>>, vector<1x1x16xf32>
    %327 = vector.shape_cast %326 : vector<1x1x16xf32> to vector<1x16xf32>
    %328 = vector.shape_cast %325 : vector<1x16xf32> to vector<1x1x16xf32>
    tpu.vector_store %arg11[%c3_275, %c5_276, %c0_277], %328 {strides = array<i32>} : memref<8x8x16xf32, #tpu.memory_space<vmem>>, vector<1x1x16xf32>,
    %c3_278 = arith.constant 3 : index
    %c80_279 = arith.constant 80 : index
    %329 = vector.load %arg12[%c3_278, %c80_279] : memref<8x128xf32, #tpu.memory_space<vmem>>, vector<1x16xf32>
    tpu.vector_store %arg12[%c3_278, %c80_279], %325 {strides = array<i32>} : memref<8x128xf32, #tpu.memory_space<vmem>>, vector<1x16xf32>,
    %c8_i32_280 = arith.constant 8 : i32
    %330 = arith.muli %arg0, %c8_i32_280 : i32
    %c3_i32_281 = arith.constant 3 : i32
    %331 = arith.addi %330, %c3_i32_281 : i32
    %332 = arith.index_cast %331 : i32 to index
    %c6_282 = arith.constant 6 : index
    %333 = memref.load %arg1[%332, %c6_282] : memref<8x8xi32, #tpu.memory_space<smem>>
    %334 = arith.index_cast %333 : i32 to index
    %c0_283 = arith.constant 0 : index
    %c0_284 = arith.constant 0 : index
    %335 = vector.load %arg2[%334, %c0_283, %c0_284] : memref<100x1x16xf32, #tpu.memory_space<vmem>>, vector<1x1x16xf32>
    %336 = vector.shape_cast %335 : vector<1x1x16xf32> to vector<1x16xf32>
    %c3_285 = arith.constant 3 : index
    %c6_286 = arith.constant 6 : index
    %c0_287 = arith.constant 0 : index
    %337 = vector.load %arg11[%c3_285, %c6_286, %c0_287] : memref<8x8x16xf32, #tpu.memory_space<vmem>>, vector<1x1x16xf32>
    %338 = vector.shape_cast %337 : vector<1x1x16xf32> to vector<1x16xf32>
    %339 = vector.shape_cast %336 : vector<1x16xf32> to vector<1x1x16xf32>
    tpu.vector_store %arg11[%c3_285, %c6_286, %c0_287], %339 {strides = array<i32>} : memref<8x8x16xf32, #tpu.memory_space<vmem>>, vector<1x1x16xf32>,
    %c3_288 = arith.constant 3 : index
    %c96_289 = arith.constant 96 : index
    %340 = vector.load %arg12[%c3_288, %c96_289] : memref<8x128xf32, #tpu.memory_space<vmem>>, vector<1x16xf32>
    tpu.vector_store %arg12[%c3_288, %c96_289], %336 {strides = array<i32>} : memref<8x128xf32, #tpu.memory_space<vmem>>, vector<1x16xf32>,
    %c8_i32_290 = arith.constant 8 : i32
    %341 = arith.muli %arg0, %c8_i32_290 : i32
    %c3_i32_291 = arith.constant 3 : i32
    %342 = arith.addi %341, %c3_i32_291 : i32
    %343 = arith.index_cast %342 : i32 to index
    %c7_292 = arith.constant 7 : index
    %344 = memref.load %arg1[%343, %c7_292] : memref<8x8xi32, #tpu.memory_space<smem>>
    %345 = arith.index_cast %344 : i32 to index
    %c0_293 = arith.constant 0 : index
    %c0_294 = arith.constant 0 : index
    %346 = vector.load %arg2[%345, %c0_293, %c0_294] : memref<100x1x16xf32, #tpu.memory_space<vmem>>, vector<1x1x16xf32>
    %347 = vector.shape_cast %346 : vector<1x1x16xf32> to vector<1x16xf32>
    %c3_295 = arith.constant 3 : index
    %c7_296 = arith.constant 7 : index
    %c0_297 = arith.constant 0 : index
    %348 = vector.load %arg11[%c3_295, %c7_296, %c0_297] : memref<8x8x16xf32, #tpu.memory_space<vmem>>, vector<1x1x16xf32>
    %349 = vector.shape_cast %348 : vector<1x1x16xf32> to vector<1x16xf32>
    %350 = vector.shape_cast %347 : vector<1x16xf32> to vector<1x1x16xf32>
    tpu.vector_store %arg11[%c3_295, %c7_296, %c0_297], %350 {strides = array<i32>} : memref<8x8x16xf32, #tpu.memory_space<vmem>>, vector<1x1x16xf32>,
    %c3_298 = arith.constant 3 : index
    %c112_299 = arith.constant 112 : index
    %351 = vector.load %arg12[%c3_298, %c112_299] : memref<8x128xf32, #tpu.memory_space<vmem>>, vector<1x16xf32>
    tpu.vector_store %arg12[%c3_298, %c112_299], %347 {strides = array<i32>} : memref<8x128xf32, #tpu.memory_space<vmem>>, vector<1x16xf32>,
    %c8_i32_300 = arith.constant 8 : i32
    %352 = arith.muli %arg0, %c8_i32_300 : i32
    %c4_i32 = arith.constant 4 : i32
    %353 = arith.addi %352, %c4_i32 : i32
    %354 = arith.index_cast %353 : i32 to index
    %c0_301 = arith.constant 0 : index
    %355 = memref.load %arg1[%354, %c0_301] : memref<8x8xi32, #tpu.memory_space<smem>>
    %356 = arith.index_cast %355 : i32 to index
    %c0_302 = arith.constant 0 : index
    %c0_303 = arith.constant 0 : index
    %357 = vector.load %arg2[%356, %c0_302, %c0_303] : memref<100x1x16xf32, #tpu.memory_space<vmem>>, vector<1x1x16xf32>
    %358 = vector.shape_cast %357 : vector<1x1x16xf32> to vector<1x16xf32>
    %c4_304 = arith.constant 4 : index
    %c0_305 = arith.constant 0 : index
    %c0_306 = arith.constant 0 : index
    %359 = vector.load %arg11[%c4_304, %c0_305, %c0_306] : memref<8x8x16xf32, #tpu.memory_space<vmem>>, vector<1x1x16xf32>
    %360 = vector.shape_cast %359 : vector<1x1x16xf32> to vector<1x16xf32>
    %361 = vector.shape_cast %358 : vector<1x16xf32> to vector<1x1x16xf32>
    tpu.vector_store %arg11[%c4_304, %c0_305, %c0_306], %361 {strides = array<i32>} : memref<8x8x16xf32, #tpu.memory_space<vmem>>, vector<1x1x16xf32>,
    %c4_307 = arith.constant 4 : index
    %c0_308 = arith.constant 0 : index
    %362 = vector.load %arg12[%c4_307, %c0_308] : memref<8x128xf32, #tpu.memory_space<vmem>>, vector<1x16xf32>
    tpu.vector_store %arg12[%c4_307, %c0_308], %358 {strides = array<i32>} : memref<8x128xf32, #tpu.memory_space<vmem>>, vector<1x16xf32>,
    %c8_i32_309 = arith.constant 8 : i32
    %363 = arith.muli %arg0, %c8_i32_309 : i32
    %c4_i32_310 = arith.constant 4 : i32
    %364 = arith.addi %363, %c4_i32_310 : i32
    %365 = arith.index_cast %364 : i32 to index
    %c1_311 = arith.constant 1 : index
    %366 = memref.load %arg1[%365, %c1_311] : memref<8x8xi32, #tpu.memory_space<smem>>
    %367 = arith.index_cast %366 : i32 to index
    %c0_312 = arith.constant 0 : index
    %c0_313 = arith.constant 0 : index
    %368 = vector.load %arg2[%367, %c0_312, %c0_313] : memref<100x1x16xf32, #tpu.memory_space<vmem>>, vector<1x1x16xf32>
    %369 = vector.shape_cast %368 : vector<1x1x16xf32> to vector<1x16xf32>
    %c4_314 = arith.constant 4 : index
    %c1_315 = arith.constant 1 : index
    %c0_316 = arith.constant 0 : index
    %370 = vector.load %arg11[%c4_314, %c1_315, %c0_316] : memref<8x8x16xf32, #tpu.memory_space<vmem>>, vector<1x1x16xf32>
    %371 = vector.shape_cast %370 : vector<1x1x16xf32> to vector<1x16xf32>
    %372 = vector.shape_cast %369 : vector<1x16xf32> to vector<1x1x16xf32>
    tpu.vector_store %arg11[%c4_314, %c1_315, %c0_316], %372 {strides = array<i32>} : memref<8x8x16xf32, #tpu.memory_space<vmem>>, vector<1x1x16xf32>,
    %c4_317 = arith.constant 4 : index
    %c16_318 = arith.constant 16 : index
    %373 = vector.load %arg12[%c4_317, %c16_318] : memref<8x128xf32, #tpu.memory_space<vmem>>, vector<1x16xf32>
    tpu.vector_store %arg12[%c4_317, %c16_318], %369 {strides = array<i32>} : memref<8x128xf32, #tpu.memory_space<vmem>>, vector<1x16xf32>,
    %c8_i32_319 = arith.constant 8 : i32
    %374 = arith.muli %arg0, %c8_i32_319 : i32
    %c4_i32_320 = arith.constant 4 : i32
    %375 = arith.addi %374, %c4_i32_320 : i32
    %376 = arith.index_cast %375 : i32 to index
    %c2_321 = arith.constant 2 : index
    %377 = memref.load %arg1[%376, %c2_321] : memref<8x8xi32, #tpu.memory_space<smem>>
    %378 = arith.index_cast %377 : i32 to index
    %c0_322 = arith.constant 0 : index
    %c0_323 = arith.constant 0 : index
    %379 = vector.load %arg2[%378, %c0_322, %c0_323] : memref<100x1x16xf32, #tpu.memory_space<vmem>>, vector<1x1x16xf32>
    %380 = vector.shape_cast %379 : vector<1x1x16xf32> to vector<1x16xf32>
    %c4_324 = arith.constant 4 : index
    %c2_325 = arith.constant 2 : index
    %c0_326 = arith.constant 0 : index
    %381 = vector.load %arg11[%c4_324, %c2_325, %c0_326] : memref<8x8x16xf32, #tpu.memory_space<vmem>>, vector<1x1x16xf32>
    %382 = vector.shape_cast %381 : vector<1x1x16xf32> to vector<1x16xf32>
    %383 = vector.shape_cast %380 : vector<1x16xf32> to vector<1x1x16xf32>
    tpu.vector_store %arg11[%c4_324, %c2_325, %c0_326], %383 {strides = array<i32>} : memref<8x8x16xf32, #tpu.memory_space<vmem>>, vector<1x1x16xf32>,
    %c4_327 = arith.constant 4 : index
    %c32_328 = arith.constant 32 : index
    %384 = vector.load %arg12[%c4_327, %c32_328] : memref<8x128xf32, #tpu.memory_space<vmem>>, vector<1x16xf32>
    tpu.vector_store %arg12[%c4_327, %c32_328], %380 {strides = array<i32>} : memref<8x128xf32, #tpu.memory_space<vmem>>, vector<1x16xf32>,
    %c8_i32_329 = arith.constant 8 : i32
    %385 = arith.muli %arg0, %c8_i32_329 : i32
    %c4_i32_330 = arith.constant 4 : i32
    %386 = arith.addi %385, %c4_i32_330 : i32
    %387 = arith.index_cast %386 : i32 to index
    %c3_331 = arith.constant 3 : index
    %388 = memref.load %arg1[%387, %c3_331] : memref<8x8xi32, #tpu.memory_space<smem>>
    %389 = arith.index_cast %388 : i32 to index
    %c0_332 = arith.constant 0 : index
    %c0_333 = arith.constant 0 : index
    %390 = vector.load %arg2[%389, %c0_332, %c0_333] : memref<100x1x16xf32, #tpu.memory_space<vmem>>, vector<1x1x16xf32>
    %391 = vector.shape_cast %390 : vector<1x1x16xf32> to vector<1x16xf32>
    %c4_334 = arith.constant 4 : index
    %c3_335 = arith.constant 3 : index
    %c0_336 = arith.constant 0 : index
    %392 = vector.load %arg11[%c4_334, %c3_335, %c0_336] : memref<8x8x16xf32, #tpu.memory_space<vmem>>, vector<1x1x16xf32>
    %393 = vector.shape_cast %392 : vector<1x1x16xf32> to vector<1x16xf32>
    %394 = vector.shape_cast %391 : vector<1x16xf32> to vector<1x1x16xf32>
    tpu.vector_store %arg11[%c4_334, %c3_335, %c0_336], %394 {strides = array<i32>} : memref<8x8x16xf32, #tpu.memory_space<vmem>>, vector<1x1x16xf32>,
    %c4_337 = arith.constant 4 : index
    %c48_338 = arith.constant 48 : index
    %395 = vector.load %arg12[%c4_337, %c48_338] : memref<8x128xf32, #tpu.memory_space<vmem>>, vector<1x16xf32>
    tpu.vector_store %arg12[%c4_337, %c48_338], %391 {strides = array<i32>} : memref<8x128xf32, #tpu.memory_space<vmem>>, vector<1x16xf32>,
    %c8_i32_339 = arith.constant 8 : i32
    %396 = arith.muli %arg0, %c8_i32_339 : i32
    %c4_i32_340 = arith.constant 4 : i32
    %397 = arith.addi %396, %c4_i32_340 : i32
    %398 = arith.index_cast %397 : i32 to index
    %c4_341 = arith.constant 4 : index
    %399 = memref.load %arg1[%398, %c4_341] : memref<8x8xi32, #tpu.memory_space<smem>>
    %400 = arith.index_cast %399 : i32 to index
    %c0_342 = arith.constant 0 : index
    %c0_343 = arith.constant 0 : index
    %401 = vector.load %arg2[%400, %c0_342, %c0_343] : memref<100x1x16xf32, #tpu.memory_space<vmem>>, vector<1x1x16xf32>
    %402 = vector.shape_cast %401 : vector<1x1x16xf32> to vector<1x16xf32>
    %c4_344 = arith.constant 4 : index
    %c4_345 = arith.constant 4 : index
    %c0_346 = arith.constant 0 : index
    %403 = vector.load %arg11[%c4_344, %c4_345, %c0_346] : memref<8x8x16xf32, #tpu.memory_space<vmem>>, vector<1x1x16xf32>
    %404 = vector.shape_cast %403 : vector<1x1x16xf32> to vector<1x16xf32>
    %405 = vector.shape_cast %402 : vector<1x16xf32> to vector<1x1x16xf32>
    tpu.vector_store %arg11[%c4_344, %c4_345, %c0_346], %405 {strides = array<i32>} : memref<8x8x16xf32, #tpu.memory_space<vmem>>, vector<1x1x16xf32>,
    %c4_347 = arith.constant 4 : index
    %c64_348 = arith.constant 64 : index
    %406 = vector.load %arg12[%c4_347, %c64_348] : memref<8x128xf32, #tpu.memory_space<vmem>>, vector<1x16xf32>
    tpu.vector_store %arg12[%c4_347, %c64_348], %402 {strides = array<i32>} : memref<8x128xf32, #tpu.memory_space<vmem>>, vector<1x16xf32>,
    %c8_i32_349 = arith.constant 8 : i32
    %407 = arith.muli %arg0, %c8_i32_349 : i32
    %c4_i32_350 = arith.constant 4 : i32
    %408 = arith.addi %407, %c4_i32_350 : i32
    %409 = arith.index_cast %408 : i32 to index
    %c5_351 = arith.constant 5 : index
    %410 = memref.load %arg1[%409, %c5_351] : memref<8x8xi32, #tpu.memory_space<smem>>
    %411 = arith.index_cast %410 : i32 to index
    %c0_352 = arith.constant 0 : index
    %c0_353 = arith.constant 0 : index
    %412 = vector.load %arg2[%411, %c0_352, %c0_353] : memref<100x1x16xf32, #tpu.memory_space<vmem>>, vector<1x1x16xf32>
    %413 = vector.shape_cast %412 : vector<1x1x16xf32> to vector<1x16xf32>
    %c4_354 = arith.constant 4 : index
    %c5_355 = arith.constant 5 : index
    %c0_356 = arith.constant 0 : index
    %414 = vector.load %arg11[%c4_354, %c5_355, %c0_356] : memref<8x8x16xf32, #tpu.memory_space<vmem>>, vector<1x1x16xf32>
    %415 = vector.shape_cast %414 : vector<1x1x16xf32> to vector<1x16xf32>
    %416 = vector.shape_cast %413 : vector<1x16xf32> to vector<1x1x16xf32>
    tpu.vector_store %arg11[%c4_354, %c5_355, %c0_356], %416 {strides = array<i32>} : memref<8x8x16xf32, #tpu.memory_space<vmem>>, vector<1x1x16xf32>,
    %c4_357 = arith.constant 4 : index
    %c80_358 = arith.constant 80 : index
    %417 = vector.load %arg12[%c4_357, %c80_358] : memref<8x128xf32, #tpu.memory_space<vmem>>, vector<1x16xf32>
    tpu.vector_store %arg12[%c4_357, %c80_358], %413 {strides = array<i32>} : memref<8x128xf32, #tpu.memory_space<vmem>>, vector<1x16xf32>,
    %c8_i32_359 = arith.constant 8 : i32
    %418 = arith.muli %arg0, %c8_i32_359 : i32
    %c4_i32_360 = arith.constant 4 : i32
    %419 = arith.addi %418, %c4_i32_360 : i32
    %420 = arith.index_cast %419 : i32 to index
    %c6_361 = arith.constant 6 : index
    %421 = memref.load %arg1[%420, %c6_361] : memref<8x8xi32, #tpu.memory_space<smem>>
    %422 = arith.index_cast %421 : i32 to index
    %c0_362 = arith.constant 0 : index
    %c0_363 = arith.constant 0 : index
    %423 = vector.load %arg2[%422, %c0_362, %c0_363] : memref<100x1x16xf32, #tpu.memory_space<vmem>>, vector<1x1x16xf32>
    %424 = vector.shape_cast %423 : vector<1x1x16xf32> to vector<1x16xf32>
    %c4_364 = arith.constant 4 : index
    %c6_365 = arith.constant 6 : index
    %c0_366 = arith.constant 0 : index
    %425 = vector.load %arg11[%c4_364, %c6_365, %c0_366] : memref<8x8x16xf32, #tpu.memory_space<vmem>>, vector<1x1x16xf32>
    %426 = vector.shape_cast %425 : vector<1x1x16xf32> to vector<1x16xf32>
    %427 = vector.shape_cast %424 : vector<1x16xf32> to vector<1x1x16xf32>
    tpu.vector_store %arg11[%c4_364, %c6_365, %c0_366], %427 {strides = array<i32>} : memref<8x8x16xf32, #tpu.memory_space<vmem>>, vector<1x1x16xf32>,
    %c4_367 = arith.constant 4 : index
    %c96_368 = arith.constant 96 : index
    %428 = vector.load %arg12[%c4_367, %c96_368] : memref<8x128xf32, #tpu.memory_space<vmem>>, vector<1x16xf32>
    tpu.vector_store %arg12[%c4_367, %c96_368], %424 {strides = array<i32>} : memref<8x128xf32, #tpu.memory_space<vmem>>, vector<1x16xf32>,
    %c8_i32_369 = arith.constant 8 : i32
    %429 = arith.muli %arg0, %c8_i32_369 : i32
    %c4_i32_370 = arith.constant 4 : i32
    %430 = arith.addi %429, %c4_i32_370 : i32
    %431 = arith.index_cast %430 : i32 to index
    %c7_371 = arith.constant 7 : index
    %432 = memref.load %arg1[%431, %c7_371] : memref<8x8xi32, #tpu.memory_space<smem>>
    %433 = arith.index_cast %432 : i32 to index
    %c0_372 = arith.constant 0 : index
    %c0_373 = arith.constant 0 : index
    %434 = vector.load %arg2[%433, %c0_372, %c0_373] : memref<100x1x16xf32, #tpu.memory_space<vmem>>, vector<1x1x16xf32>
    %435 = vector.shape_cast %434 : vector<1x1x16xf32> to vector<1x16xf32>
    %c4_374 = arith.constant 4 : index
    %c7_375 = arith.constant 7 : index
    %c0_376 = arith.constant 0 : index
    %436 = vector.load %arg11[%c4_374, %c7_375, %c0_376] : memref<8x8x16xf32, #tpu.memory_space<vmem>>, vector<1x1x16xf32>
    %437 = vector.shape_cast %436 : vector<1x1x16xf32> to vector<1x16xf32>
    %438 = vector.shape_cast %435 : vector<1x16xf32> to vector<1x1x16xf32>
    tpu.vector_store %arg11[%c4_374, %c7_375, %c0_376], %438 {strides = array<i32>} : memref<8x8x16xf32, #tpu.memory_space<vmem>>, vector<1x1x16xf32>,
    %c4_377 = arith.constant 4 : index
    %c112_378 = arith.constant 112 : index
    %439 = vector.load %arg12[%c4_377, %c112_378] : memref<8x128xf32, #tpu.memory_space<vmem>>, vector<1x16xf32>
    tpu.vector_store %arg12[%c4_377, %c112_378], %435 {strides = array<i32>} : memref<8x128xf32, #tpu.memory_space<vmem>>, vector<1x16xf32>,
    %c8_i32_379 = arith.constant 8 : i32
    %440 = arith.muli %arg0, %c8_i32_379 : i32
    %c5_i32 = arith.constant 5 : i32
    %441 = arith.addi %440, %c5_i32 : i32
    %442 = arith.index_cast %441 : i32 to index
    %c0_380 = arith.constant 0 : index
    %443 = memref.load %arg1[%442, %c0_380] : memref<8x8xi32, #tpu.memory_space<smem>>
    %444 = arith.index_cast %443 : i32 to index
    %c0_381 = arith.constant 0 : index
    %c0_382 = arith.constant 0 : index
    %445 = vector.load %arg2[%444, %c0_381, %c0_382] : memref<100x1x16xf32, #tpu.memory_space<vmem>>, vector<1x1x16xf32>
    %446 = vector.shape_cast %445 : vector<1x1x16xf32> to vector<1x16xf32>
    %c5_383 = arith.constant 5 : index
    %c0_384 = arith.constant 0 : index
    %c0_385 = arith.constant 0 : index
    %447 = vector.load %arg11[%c5_383, %c0_384, %c0_385] : memref<8x8x16xf32, #tpu.memory_space<vmem>>, vector<1x1x16xf32>
    %448 = vector.shape_cast %447 : vector<1x1x16xf32> to vector<1x16xf32>
    %449 = vector.shape_cast %446 : vector<1x16xf32> to vector<1x1x16xf32>
    tpu.vector_store %arg11[%c5_383, %c0_384, %c0_385], %449 {strides = array<i32>} : memref<8x8x16xf32, #tpu.memory_space<vmem>>, vector<1x1x16xf32>,
    %c5_386 = arith.constant 5 : index
    %c0_387 = arith.constant 0 : index
    %450 = vector.load %arg12[%c5_386, %c0_387] : memref<8x128xf32, #tpu.memory_space<vmem>>, vector<1x16xf32>
    tpu.vector_store %arg12[%c5_386, %c0_387], %446 {strides = array<i32>} : memref<8x128xf32, #tpu.memory_space<vmem>>, vector<1x16xf32>,
    %c8_i32_388 = arith.constant 8 : i32
    %451 = arith.muli %arg0, %c8_i32_388 : i32
    %c5_i32_389 = arith.constant 5 : i32
    %452 = arith.addi %451, %c5_i32_389 : i32
    %453 = arith.index_cast %452 : i32 to index
    %c1_390 = arith.constant 1 : index
    %454 = memref.load %arg1[%453, %c1_390] : memref<8x8xi32, #tpu.memory_space<smem>>
    %455 = arith.index_cast %454 : i32 to index
    %c0_391 = arith.constant 0 : index
    %c0_392 = arith.constant 0 : index
    %456 = vector.load %arg2[%455, %c0_391, %c0_392] : memref<100x1x16xf32, #tpu.memory_space<vmem>>, vector<1x1x16xf32>
    %457 = vector.shape_cast %456 : vector<1x1x16xf32> to vector<1x16xf32>
    %c5_393 = arith.constant 5 : index
    %c1_394 = arith.constant 1 : index
    %c0_395 = arith.constant 0 : index
    %458 = vector.load %arg11[%c5_393, %c1_394, %c0_395] : memref<8x8x16xf32, #tpu.memory_space<vmem>>, vector<1x1x16xf32>
    %459 = vector.shape_cast %458 : vector<1x1x16xf32> to vector<1x16xf32>
    %460 = vector.shape_cast %457 : vector<1x16xf32> to vector<1x1x16xf32>
    tpu.vector_store %arg11[%c5_393, %c1_394, %c0_395], %460 {strides = array<i32>} : memref<8x8x16xf32, #tpu.memory_space<vmem>>, vector<1x1x16xf32>,
    %c5_396 = arith.constant 5 : index
    %c16_397 = arith.constant 16 : index
    %461 = vector.load %arg12[%c5_396, %c16_397] : memref<8x128xf32, #tpu.memory_space<vmem>>, vector<1x16xf32>
    tpu.vector_store %arg12[%c5_396, %c16_397], %457 {strides = array<i32>} : memref<8x128xf32, #tpu.memory_space<vmem>>, vector<1x16xf32>,
    %c8_i32_398 = arith.constant 8 : i32
    %462 = arith.muli %arg0, %c8_i32_398 : i32
    %c5_i32_399 = arith.constant 5 : i32
    %463 = arith.addi %462, %c5_i32_399 : i32
    %464 = arith.index_cast %463 : i32 to index
    %c2_400 = arith.constant 2 : index
    %465 = memref.load %arg1[%464, %c2_400] : memref<8x8xi32, #tpu.memory_space<smem>>
    %466 = arith.index_cast %465 : i32 to index
    %c0_401 = arith.constant 0 : index
    %c0_402 = arith.constant 0 : index
    %467 = vector.load %arg2[%466, %c0_401, %c0_402] : memref<100x1x16xf32, #tpu.memory_space<vmem>>, vector<1x1x16xf32>
    %468 = vector.shape_cast %467 : vector<1x1x16xf32> to vector<1x16xf32>
    %c5_403 = arith.constant 5 : index
    %c2_404 = arith.constant 2 : index
    %c0_405 = arith.constant 0 : index
    %469 = vector.load %arg11[%c5_403, %c2_404, %c0_405] : memref<8x8x16xf32, #tpu.memory_space<vmem>>, vector<1x1x16xf32>
    %470 = vector.shape_cast %469 : vector<1x1x16xf32> to vector<1x16xf32>
    %471 = vector.shape_cast %468 : vector<1x16xf32> to vector<1x1x16xf32>
    tpu.vector_store %arg11[%c5_403, %c2_404, %c0_405], %471 {strides = array<i32>} : memref<8x8x16xf32, #tpu.memory_space<vmem>>, vector<1x1x16xf32>,
    %c5_406 = arith.constant 5 : index
    %c32_407 = arith.constant 32 : index
    %472 = vector.load %arg12[%c5_406, %c32_407] : memref<8x128xf32, #tpu.memory_space<vmem>>, vector<1x16xf32>
    tpu.vector_store %arg12[%c5_406, %c32_407], %468 {strides = array<i32>} : memref<8x128xf32, #tpu.memory_space<vmem>>, vector<1x16xf32>,
    %c8_i32_408 = arith.constant 8 : i32
    %473 = arith.muli %arg0, %c8_i32_408 : i32
    %c5_i32_409 = arith.constant 5 : i32
    %474 = arith.addi %473, %c5_i32_409 : i32
    %475 = arith.index_cast %474 : i32 to index
    %c3_410 = arith.constant 3 : index
    %476 = memref.load %arg1[%475, %c3_410] : memref<8x8xi32, #tpu.memory_space<smem>>
    %477 = arith.index_cast %476 : i32 to index
    %c0_411 = arith.constant 0 : index
    %c0_412 = arith.constant 0 : index
    %478 = vector.load %arg2[%477, %c0_411, %c0_412] : memref<100x1x16xf32, #tpu.memory_space<vmem>>, vector<1x1x16xf32>
    %479 = vector.shape_cast %478 : vector<1x1x16xf32> to vector<1x16xf32>
    %c5_413 = arith.constant 5 : index
    %c3_414 = arith.constant 3 : index
    %c0_415 = arith.constant 0 : index
    %480 = vector.load %arg11[%c5_413, %c3_414, %c0_415] : memref<8x8x16xf32, #tpu.memory_space<vmem>>, vector<1x1x16xf32>
    %481 = vector.shape_cast %480 : vector<1x1x16xf32> to vector<1x16xf32>
    %482 = vector.shape_cast %479 : vector<1x16xf32> to vector<1x1x16xf32>
    tpu.vector_store %arg11[%c5_413, %c3_414, %c0_415], %482 {strides = array<i32>} : memref<8x8x16xf32, #tpu.memory_space<vmem>>, vector<1x1x16xf32>,
    %c5_416 = arith.constant 5 : index
    %c48_417 = arith.constant 48 : index
    %483 = vector.load %arg12[%c5_416, %c48_417] : memref<8x128xf32, #tpu.memory_space<vmem>>, vector<1x16xf32>
    tpu.vector_store %arg12[%c5_416, %c48_417], %479 {strides = array<i32>} : memref<8x128xf32, #tpu.memory_space<vmem>>, vector<1x16xf32>,
    %c8_i32_418 = arith.constant 8 : i32
    %484 = arith.muli %arg0, %c8_i32_418 : i32
    %c5_i32_419 = arith.constant 5 : i32
    %485 = arith.addi %484, %c5_i32_419 : i32
    %486 = arith.index_cast %485 : i32 to index
    %c4_420 = arith.constant 4 : index
    %487 = memref.load %arg1[%486, %c4_420] : memref<8x8xi32, #tpu.memory_space<smem>>
    %488 = arith.index_cast %487 : i32 to index
    %c0_421 = arith.constant 0 : index
    %c0_422 = arith.constant 0 : index
    %489 = vector.load %arg2[%488, %c0_421, %c0_422] : memref<100x1x16xf32, #tpu.memory_space<vmem>>, vector<1x1x16xf32>
    %490 = vector.shape_cast %489 : vector<1x1x16xf32> to vector<1x16xf32>
    %c5_423 = arith.constant 5 : index
    %c4_424 = arith.constant 4 : index
    %c0_425 = arith.constant 0 : index
    %491 = vector.load %arg11[%c5_423, %c4_424, %c0_425] : memref<8x8x16xf32, #tpu.memory_space<vmem>>, vector<1x1x16xf32>
    %492 = vector.shape_cast %491 : vector<1x1x16xf32> to vector<1x16xf32>
    %493 = vector.shape_cast %490 : vector<1x16xf32> to vector<1x1x16xf32>
    tpu.vector_store %arg11[%c5_423, %c4_424, %c0_425], %493 {strides = array<i32>} : memref<8x8x16xf32, #tpu.memory_space<vmem>>, vector<1x1x16xf32>,
    %c5_426 = arith.constant 5 : index
    %c64_427 = arith.constant 64 : index
    %494 = vector.load %arg12[%c5_426, %c64_427] : memref<8x128xf32, #tpu.memory_space<vmem>>, vector<1x16xf32>
    tpu.vector_store %arg12[%c5_426, %c64_427], %490 {strides = array<i32>} : memref<8x128xf32, #tpu.memory_space<vmem>>, vector<1x16xf32>,
    %c8_i32_428 = arith.constant 8 : i32
    %495 = arith.muli %arg0, %c8_i32_428 : i32
    %c5_i32_429 = arith.constant 5 : i32
    %496 = arith.addi %495, %c5_i32_429 : i32
    %497 = arith.index_cast %496 : i32 to index
    %c5_430 = arith.constant 5 : index
    %498 = memref.load %arg1[%497, %c5_430] : memref<8x8xi32, #tpu.memory_space<smem>>
    %499 = arith.index_cast %498 : i32 to index
    %c0_431 = arith.constant 0 : index
    %c0_432 = arith.constant 0 : index
    %500 = vector.load %arg2[%499, %c0_431, %c0_432] : memref<100x1x16xf32, #tpu.memory_space<vmem>>, vector<1x1x16xf32>
    %501 = vector.shape_cast %500 : vector<1x1x16xf32> to vector<1x16xf32>
    %c5_433 = arith.constant 5 : index
    %c5_434 = arith.constant 5 : index
    %c0_435 = arith.constant 0 : index
    %502 = vector.load %arg11[%c5_433, %c5_434, %c0_435] : memref<8x8x16xf32, #tpu.memory_space<vmem>>, vector<1x1x16xf32>
    %503 = vector.shape_cast %502 : vector<1x1x16xf32> to vector<1x16xf32>
    %504 = vector.shape_cast %501 : vector<1x16xf32> to vector<1x1x16xf32>
    tpu.vector_store %arg11[%c5_433, %c5_434, %c0_435], %504 {strides = array<i32>} : memref<8x8x16xf32, #tpu.memory_space<vmem>>, vector<1x1x16xf32>,
    %c5_436 = arith.constant 5 : index
    %c80_437 = arith.constant 80 : index
    %505 = vector.load %arg12[%c5_436, %c80_437] : memref<8x128xf32, #tpu.memory_space<vmem>>, vector<1x16xf32>
    tpu.vector_store %arg12[%c5_436, %c80_437], %501 {strides = array<i32>} : memref<8x128xf32, #tpu.memory_space<vmem>>, vector<1x16xf32>,
    %c8_i32_438 = arith.constant 8 : i32
    %506 = arith.muli %arg0, %c8_i32_438 : i32
    %c5_i32_439 = arith.constant 5 : i32
    %507 = arith.addi %506, %c5_i32_439 : i32
    %508 = arith.index_cast %507 : i32 to index
    %c6_440 = arith.constant 6 : index
    %509 = memref.load %arg1[%508, %c6_440] : memref<8x8xi32, #tpu.memory_space<smem>>
    %510 = arith.index_cast %509 : i32 to index
    %c0_441 = arith.constant 0 : index
    %c0_442 = arith.constant 0 : index
    %511 = vector.load %arg2[%510, %c0_441, %c0_442] : memref<100x1x16xf32, #tpu.memory_space<vmem>>, vector<1x1x16xf32>
    %512 = vector.shape_cast %511 : vector<1x1x16xf32> to vector<1x16xf32>
    %c5_443 = arith.constant 5 : index
    %c6_444 = arith.constant 6 : index
    %c0_445 = arith.constant 0 : index
    %513 = vector.load %arg11[%c5_443, %c6_444, %c0_445] : memref<8x8x16xf32, #tpu.memory_space<vmem>>, vector<1x1x16xf32>
    %514 = vector.shape_cast %513 : vector<1x1x16xf32> to vector<1x16xf32>
    %515 = vector.shape_cast %512 : vector<1x16xf32> to vector<1x1x16xf32>
    tpu.vector_store %arg11[%c5_443, %c6_444, %c0_445], %515 {strides = array<i32>} : memref<8x8x16xf32, #tpu.memory_space<vmem>>, vector<1x1x16xf32>,
    %c5_446 = arith.constant 5 : index
    %c96_447 = arith.constant 96 : index
    %516 = vector.load %arg12[%c5_446, %c96_447] : memref<8x128xf32, #tpu.memory_space<vmem>>, vector<1x16xf32>
    tpu.vector_store %arg12[%c5_446, %c96_447], %512 {strides = array<i32>} : memref<8x128xf32, #tpu.memory_space<vmem>>, vector<1x16xf32>,
    %c8_i32_448 = arith.constant 8 : i32
    %517 = arith.muli %arg0, %c8_i32_448 : i32
    %c5_i32_449 = arith.constant 5 : i32
    %518 = arith.addi %517, %c5_i32_449 : i32
    %519 = arith.index_cast %518 : i32 to index
    %c7_450 = arith.constant 7 : index
    %520 = memref.load %arg1[%519, %c7_450] : memref<8x8xi32, #tpu.memory_space<smem>>
    %521 = arith.index_cast %520 : i32 to index
    %c0_451 = arith.constant 0 : index
    %c0_452 = arith.constant 0 : index
    %522 = vector.load %arg2[%521, %c0_451, %c0_452] : memref<100x1x16xf32, #tpu.memory_space<vmem>>, vector<1x1x16xf32>
    %523 = vector.shape_cast %522 : vector<1x1x16xf32> to vector<1x16xf32>
    %c5_453 = arith.constant 5 : index
    %c7_454 = arith.constant 7 : index
    %c0_455 = arith.constant 0 : index
    %524 = vector.load %arg11[%c5_453, %c7_454, %c0_455] : memref<8x8x16xf32, #tpu.memory_space<vmem>>, vector<1x1x16xf32>
    %525 = vector.shape_cast %524 : vector<1x1x16xf32> to vector<1x16xf32>
    %526 = vector.shape_cast %523 : vector<1x16xf32> to vector<1x1x16xf32>
    tpu.vector_store %arg11[%c5_453, %c7_454, %c0_455], %526 {strides = array<i32>} : memref<8x8x16xf32, #tpu.memory_space<vmem>>, vector<1x1x16xf32>,
    %c5_456 = arith.constant 5 : index
    %c112_457 = arith.constant 112 : index
    %527 = vector.load %arg12[%c5_456, %c112_457] : memref<8x128xf32, #tpu.memory_space<vmem>>, vector<1x16xf32>
    tpu.vector_store %arg12[%c5_456, %c112_457], %523 {strides = array<i32>} : memref<8x128xf32, #tpu.memory_space<vmem>>, vector<1x16xf32>,
    %c8_i32_458 = arith.constant 8 : i32
    %528 = arith.muli %arg0, %c8_i32_458 : i32
    %c6_i32 = arith.constant 6 : i32
    %529 = arith.addi %528, %c6_i32 : i32
    %530 = arith.index_cast %529 : i32 to index
    %c0_459 = arith.constant 0 : index
    %531 = memref.load %arg1[%530, %c0_459] : memref<8x8xi32, #tpu.memory_space<smem>>
    %532 = arith.index_cast %531 : i32 to index
    %c0_460 = arith.constant 0 : index
    %c0_461 = arith.constant 0 : index
    %533 = vector.load %arg2[%532, %c0_460, %c0_461] : memref<100x1x16xf32, #tpu.memory_space<vmem>>, vector<1x1x16xf32>
    %534 = vector.shape_cast %533 : vector<1x1x16xf32> to vector<1x16xf32>
    %c6_462 = arith.constant 6 : index
    %c0_463 = arith.constant 0 : index
    %c0_464 = arith.constant 0 : index
    %535 = vector.load %arg11[%c6_462, %c0_463, %c0_464] : memref<8x8x16xf32, #tpu.memory_space<vmem>>, vector<1x1x16xf32>
    %536 = vector.shape_cast %535 : vector<1x1x16xf32> to vector<1x16xf32>
    %537 = vector.shape_cast %534 : vector<1x16xf32> to vector<1x1x16xf32>
    tpu.vector_store %arg11[%c6_462, %c0_463, %c0_464], %537 {strides = array<i32>} : memref<8x8x16xf32, #tpu.memory_space<vmem>>, vector<1x1x16xf32>,
    %c6_465 = arith.constant 6 : index
    %c0_466 = arith.constant 0 : index
    %538 = vector.load %arg12[%c6_465, %c0_466] : memref<8x128xf32, #tpu.memory_space<vmem>>, vector<1x16xf32>
    tpu.vector_store %arg12[%c6_465, %c0_466], %534 {strides = array<i32>} : memref<8x128xf32, #tpu.memory_space<vmem>>, vector<1x16xf32>,
    %c8_i32_467 = arith.constant 8 : i32
    %539 = arith.muli %arg0, %c8_i32_467 : i32
    %c6_i32_468 = arith.constant 6 : i32
    %540 = arith.addi %539, %c6_i32_468 : i32
    %541 = arith.index_cast %540 : i32 to index
    %c1_469 = arith.constant 1 : index
    %542 = memref.load %arg1[%541, %c1_469] : memref<8x8xi32, #tpu.memory_space<smem>>
    %543 = arith.index_cast %542 : i32 to index
    %c0_470 = arith.constant 0 : index
    %c0_471 = arith.constant 0 : index
    %544 = vector.load %arg2[%543, %c0_470, %c0_471] : memref<100x1x16xf32, #tpu.memory_space<vmem>>, vector<1x1x16xf32>
    %545 = vector.shape_cast %544 : vector<1x1x16xf32> to vector<1x16xf32>
    %c6_472 = arith.constant 6 : index
    %c1_473 = arith.constant 1 : index
    %c0_474 = arith.constant 0 : index
    %546 = vector.load %arg11[%c6_472, %c1_473, %c0_474] : memref<8x8x16xf32, #tpu.memory_space<vmem>>, vector<1x1x16xf32>
    %547 = vector.shape_cast %546 : vector<1x1x16xf32> to vector<1x16xf32>
    %548 = vector.shape_cast %545 : vector<1x16xf32> to vector<1x1x16xf32>
    tpu.vector_store %arg11[%c6_472, %c1_473, %c0_474], %548 {strides = array<i32>} : memref<8x8x16xf32, #tpu.memory_space<vmem>>, vector<1x1x16xf32>,
    %c6_475 = arith.constant 6 : index
    %c16_476 = arith.constant 16 : index
    %549 = vector.load %arg12[%c6_475, %c16_476] : memref<8x128xf32, #tpu.memory_space<vmem>>, vector<1x16xf32>
    tpu.vector_store %arg12[%c6_475, %c16_476], %545 {strides = array<i32>} : memref<8x128xf32, #tpu.memory_space<vmem>>, vector<1x16xf32>,
    %c8_i32_477 = arith.constant 8 : i32
    %550 = arith.muli %arg0, %c8_i32_477 : i32
    %c6_i32_478 = arith.constant 6 : i32
    %551 = arith.addi %550, %c6_i32_478 : i32
    %552 = arith.index_cast %551 : i32 to index
    %c2_479 = arith.constant 2 : index
    %553 = memref.load %arg1[%552, %c2_479] : memref<8x8xi32, #tpu.memory_space<smem>>
    %554 = arith.index_cast %553 : i32 to index
    %c0_480 = arith.constant 0 : index
    %c0_481 = arith.constant 0 : index
    %555 = vector.load %arg2[%554, %c0_480, %c0_481] : memref<100x1x16xf32, #tpu.memory_space<vmem>>, vector<1x1x16xf32>
    %556 = vector.shape_cast %555 : vector<1x1x16xf32> to vector<1x16xf32>
    %c6_482 = arith.constant 6 : index
    %c2_483 = arith.constant 2 : index
    %c0_484 = arith.constant 0 : index
    %557 = vector.load %arg11[%c6_482, %c2_483, %c0_484] : memref<8x8x16xf32, #tpu.memory_space<vmem>>, vector<1x1x16xf32>
    %558 = vector.shape_cast %557 : vector<1x1x16xf32> to vector<1x16xf32>
    %559 = vector.shape_cast %556 : vector<1x16xf32> to vector<1x1x16xf32>
    tpu.vector_store %arg11[%c6_482, %c2_483, %c0_484], %559 {strides = array<i32>} : memref<8x8x16xf32, #tpu.memory_space<vmem>>, vector<1x1x16xf32>,
    %c6_485 = arith.constant 6 : index
    %c32_486 = arith.constant 32 : index
    %560 = vector.load %arg12[%c6_485, %c32_486] : memref<8x128xf32, #tpu.memory_space<vmem>>, vector<1x16xf32>
    tpu.vector_store %arg12[%c6_485, %c32_486], %556 {strides = array<i32>} : memref<8x128xf32, #tpu.memory_space<vmem>>, vector<1x16xf32>,
    %c8_i32_487 = arith.constant 8 : i32
    %561 = arith.muli %arg0, %c8_i32_487 : i32
    %c6_i32_488 = arith.constant 6 : i32
    %562 = arith.addi %561, %c6_i32_488 : i32
    %563 = arith.index_cast %562 : i32 to index
    %c3_489 = arith.constant 3 : index
    %564 = memref.load %arg1[%563, %c3_489] : memref<8x8xi32, #tpu.memory_space<smem>>
    %565 = arith.index_cast %564 : i32 to index
    %c0_490 = arith.constant 0 : index
    %c0_491 = arith.constant 0 : index
    %566 = vector.load %arg2[%565, %c0_490, %c0_491] : memref<100x1x16xf32, #tpu.memory_space<vmem>>, vector<1x1x16xf32>
    %567 = vector.shape_cast %566 : vector<1x1x16xf32> to vector<1x16xf32>
    %c6_492 = arith.constant 6 : index
    %c3_493 = arith.constant 3 : index
    %c0_494 = arith.constant 0 : index
    %568 = vector.load %arg11[%c6_492, %c3_493, %c0_494] : memref<8x8x16xf32, #tpu.memory_space<vmem>>, vector<1x1x16xf32>
    %569 = vector.shape_cast %568 : vector<1x1x16xf32> to vector<1x16xf32>
    %570 = vector.shape_cast %567 : vector<1x16xf32> to vector<1x1x16xf32>
    tpu.vector_store %arg11[%c6_492, %c3_493, %c0_494], %570 {strides = array<i32>} : memref<8x8x16xf32, #tpu.memory_space<vmem>>, vector<1x1x16xf32>,
    %c6_495 = arith.constant 6 : index
    %c48_496 = arith.constant 48 : index
    %571 = vector.load %arg12[%c6_495, %c48_496] : memref<8x128xf32, #tpu.memory_space<vmem>>, vector<1x16xf32>
    tpu.vector_store %arg12[%c6_495, %c48_496], %567 {strides = array<i32>} : memref<8x128xf32, #tpu.memory_space<vmem>>, vector<1x16xf32>,
    %c8_i32_497 = arith.constant 8 : i32
    %572 = arith.muli %arg0, %c8_i32_497 : i32
    %c6_i32_498 = arith.constant 6 : i32
    %573 = arith.addi %572, %c6_i32_498 : i32
    %574 = arith.index_cast %573 : i32 to index
    %c4_499 = arith.constant 4 : index
    %575 = memref.load %arg1[%574, %c4_499] : memref<8x8xi32, #tpu.memory_space<smem>>
    %576 = arith.index_cast %575 : i32 to index
    %c0_500 = arith.constant 0 : index
    %c0_501 = arith.constant 0 : index
    %577 = vector.load %arg2[%576, %c0_500, %c0_501] : memref<100x1x16xf32, #tpu.memory_space<vmem>>, vector<1x1x16xf32>
    %578 = vector.shape_cast %577 : vector<1x1x16xf32> to vector<1x16xf32>
    %c6_502 = arith.constant 6 : index
    %c4_503 = arith.constant 4 : index
    %c0_504 = arith.constant 0 : index
    %579 = vector.load %arg11[%c6_502, %c4_503, %c0_504] : memref<8x8x16xf32, #tpu.memory_space<vmem>>, vector<1x1x16xf32>
    %580 = vector.shape_cast %579 : vector<1x1x16xf32> to vector<1x16xf32>
    %581 = vector.shape_cast %578 : vector<1x16xf32> to vector<1x1x16xf32>
    tpu.vector_store %arg11[%c6_502, %c4_503, %c0_504], %581 {strides = array<i32>} : memref<8x8x16xf32, #tpu.memory_space<vmem>>, vector<1x1x16xf32>,
    %c6_505 = arith.constant 6 : index
    %c64_506 = arith.constant 64 : index
    %582 = vector.load %arg12[%c6_505, %c64_506] : memref<8x128xf32, #tpu.memory_space<vmem>>, vector<1x16xf32>
    tpu.vector_store %arg12[%c6_505, %c64_506], %578 {strides = array<i32>} : memref<8x128xf32, #tpu.memory_space<vmem>>, vector<1x16xf32>,
    %c8_i32_507 = arith.constant 8 : i32
    %583 = arith.muli %arg0, %c8_i32_507 : i32
    %c6_i32_508 = arith.constant 6 : i32
    %584 = arith.addi %583, %c6_i32_508 : i32
    %585 = arith.index_cast %584 : i32 to index
    %c5_509 = arith.constant 5 : index
    %586 = memref.load %arg1[%585, %c5_509] : memref<8x8xi32, #tpu.memory_space<smem>>
    %587 = arith.index_cast %586 : i32 to index
    %c0_510 = arith.constant 0 : index
    %c0_511 = arith.constant 0 : index
    %588 = vector.load %arg2[%587, %c0_510, %c0_511] : memref<100x1x16xf32, #tpu.memory_space<vmem>>, vector<1x1x16xf32>
    %589 = vector.shape_cast %588 : vector<1x1x16xf32> to vector<1x16xf32>
    %c6_512 = arith.constant 6 : index
    %c5_513 = arith.constant 5 : index
    %c0_514 = arith.constant 0 : index
    %590 = vector.load %arg11[%c6_512, %c5_513, %c0_514] : memref<8x8x16xf32, #tpu.memory_space<vmem>>, vector<1x1x16xf32>
    %591 = vector.shape_cast %590 : vector<1x1x16xf32> to vector<1x16xf32>
    %592 = vector.shape_cast %589 : vector<1x16xf32> to vector<1x1x16xf32>
    tpu.vector_store %arg11[%c6_512, %c5_513, %c0_514], %592 {strides = array<i32>} : memref<8x8x16xf32, #tpu.memory_space<vmem>>, vector<1x1x16xf32>,
    %c6_515 = arith.constant 6 : index
    %c80_516 = arith.constant 80 : index
    %593 = vector.load %arg12[%c6_515, %c80_516] : memref<8x128xf32, #tpu.memory_space<vmem>>, vector<1x16xf32>
    tpu.vector_store %arg12[%c6_515, %c80_516], %589 {strides = array<i32>} : memref<8x128xf32, #tpu.memory_space<vmem>>, vector<1x16xf32>,
    %c8_i32_517 = arith.constant 8 : i32
    %594 = arith.muli %arg0, %c8_i32_517 : i32
    %c6_i32_518 = arith.constant 6 : i32
    %595 = arith.addi %594, %c6_i32_518 : i32
    %596 = arith.index_cast %595 : i32 to index
    %c6_519 = arith.constant 6 : index
    %597 = memref.load %arg1[%596, %c6_519] : memref<8x8xi32, #tpu.memory_space<smem>>
    %598 = arith.index_cast %597 : i32 to index
    %c0_520 = arith.constant 0 : index
    %c0_521 = arith.constant 0 : index
    %599 = vector.load %arg2[%598, %c0_520, %c0_521] : memref<100x1x16xf32, #tpu.memory_space<vmem>>, vector<1x1x16xf32>
    %600 = vector.shape_cast %599 : vector<1x1x16xf32> to vector<1x16xf32>
    %c6_522 = arith.constant 6 : index
    %c6_523 = arith.constant 6 : index
    %c0_524 = arith.constant 0 : index
    %601 = vector.load %arg11[%c6_522, %c6_523, %c0_524] : memref<8x8x16xf32, #tpu.memory_space<vmem>>, vector<1x1x16xf32>
    %602 = vector.shape_cast %601 : vector<1x1x16xf32> to vector<1x16xf32>
    %603 = vector.shape_cast %600 : vector<1x16xf32> to vector<1x1x16xf32>
    tpu.vector_store %arg11[%c6_522, %c6_523, %c0_524], %603 {strides = array<i32>} : memref<8x8x16xf32, #tpu.memory_space<vmem>>, vector<1x1x16xf32>,
    %c6_525 = arith.constant 6 : index
    %c96_526 = arith.constant 96 : index
    %604 = vector.load %arg12[%c6_525, %c96_526] : memref<8x128xf32, #tpu.memory_space<vmem>>, vector<1x16xf32>
    tpu.vector_store %arg12[%c6_525, %c96_526], %600 {strides = array<i32>} : memref<8x128xf32, #tpu.memory_space<vmem>>, vector<1x16xf32>,
    %c8_i32_527 = arith.constant 8 : i32
    %605 = arith.muli %arg0, %c8_i32_527 : i32
    %c6_i32_528 = arith.constant 6 : i32
    %606 = arith.addi %605, %c6_i32_528 : i32
    %607 = arith.index_cast %606 : i32 to index
    %c7_529 = arith.constant 7 : index
    %608 = memref.load %arg1[%607, %c7_529] : memref<8x8xi32, #tpu.memory_space<smem>>
    %609 = arith.index_cast %608 : i32 to index
    %c0_530 = arith.constant 0 : index
    %c0_531 = arith.constant 0 : index
    %610 = vector.load %arg2[%609, %c0_530, %c0_531] : memref<100x1x16xf32, #tpu.memory_space<vmem>>, vector<1x1x16xf32>
    %611 = vector.shape_cast %610 : vector<1x1x16xf32> to vector<1x16xf32>
    %c6_532 = arith.constant 6 : index
    %c7_533 = arith.constant 7 : index
    %c0_534 = arith.constant 0 : index
    %612 = vector.load %arg11[%c6_532, %c7_533, %c0_534] : memref<8x8x16xf32, #tpu.memory_space<vmem>>, vector<1x1x16xf32>
    %613 = vector.shape_cast %612 : vector<1x1x16xf32> to vector<1x16xf32>
    %614 = vector.shape_cast %611 : vector<1x16xf32> to vector<1x1x16xf32>
    tpu.vector_store %arg11[%c6_532, %c7_533, %c0_534], %614 {strides = array<i32>} : memref<8x8x16xf32, #tpu.memory_space<vmem>>, vector<1x1x16xf32>,
    %c6_535 = arith.constant 6 : index
    %c112_536 = arith.constant 112 : index
    %615 = vector.load %arg12[%c6_535, %c112_536] : memref<8x128xf32, #tpu.memory_space<vmem>>, vector<1x16xf32>
    tpu.vector_store %arg12[%c6_535, %c112_536], %611 {strides = array<i32>} : memref<8x128xf32, #tpu.memory_space<vmem>>, vector<1x16xf32>,
    %c8_i32_537 = arith.constant 8 : i32
    %616 = arith.muli %arg0, %c8_i32_537 : i32
    %c7_i32 = arith.constant 7 : i32
    %617 = arith.addi %616, %c7_i32 : i32
    %618 = arith.index_cast %617 : i32 to index
    %c0_538 = arith.constant 0 : index
    %619 = memref.load %arg1[%618, %c0_538] : memref<8x8xi32, #tpu.memory_space<smem>>
    %620 = arith.index_cast %619 : i32 to index
    %c0_539 = arith.constant 0 : index
    %c0_540 = arith.constant 0 : index
    %621 = vector.load %arg2[%620, %c0_539, %c0_540] : memref<100x1x16xf32, #tpu.memory_space<vmem>>, vector<1x1x16xf32>
    %622 = vector.shape_cast %621 : vector<1x1x16xf32> to vector<1x16xf32>
    %c7_541 = arith.constant 7 : index
    %c0_542 = arith.constant 0 : index
    %c0_543 = arith.constant 0 : index
    %623 = vector.load %arg11[%c7_541, %c0_542, %c0_543] : memref<8x8x16xf32, #tpu.memory_space<vmem>>, vector<1x1x16xf32>
    %624 = vector.shape_cast %623 : vector<1x1x16xf32> to vector<1x16xf32>
    %625 = vector.shape_cast %622 : vector<1x16xf32> to vector<1x1x16xf32>
    tpu.vector_store %arg11[%c7_541, %c0_542, %c0_543], %625 {strides = array<i32>} : memref<8x8x16xf32, #tpu.memory_space<vmem>>, vector<1x1x16xf32>,
    %c7_544 = arith.constant 7 : index
    %c0_545 = arith.constant 0 : index
    %626 = vector.load %arg12[%c7_544, %c0_545] : memref<8x128xf32, #tpu.memory_space<vmem>>, vector<1x16xf32>
    tpu.vector_store %arg12[%c7_544, %c0_545], %622 {strides = array<i32>} : memref<8x128xf32, #tpu.memory_space<vmem>>, vector<1x16xf32>,
    %c8_i32_546 = arith.constant 8 : i32
    %627 = arith.muli %arg0, %c8_i32_546 : i32
    %c7_i32_547 = arith.constant 7 : i32
    %628 = arith.addi %627, %c7_i32_547 : i32
    %629 = arith.index_cast %628 : i32 to index
    %c1_548 = arith.constant 1 : index
    %630 = memref.load %arg1[%629, %c1_548] : memref<8x8xi32, #tpu.memory_space<smem>>
    %631 = arith.index_cast %630 : i32 to index
    %c0_549 = arith.constant 0 : index
    %c0_550 = arith.constant 0 : index
    %632 = vector.load %arg2[%631, %c0_549, %c0_550] : memref<100x1x16xf32, #tpu.memory_space<vmem>>, vector<1x1x16xf32>
    %633 = vector.shape_cast %632 : vector<1x1x16xf32> to vector<1x16xf32>
    %c7_551 = arith.constant 7 : index
    %c1_552 = arith.constant 1 : index
    %c0_553 = arith.constant 0 : index
    %634 = vector.load %arg11[%c7_551, %c1_552, %c0_553] : memref<8x8x16xf32, #tpu.memory_space<vmem>>, vector<1x1x16xf32>
    %635 = vector.shape_cast %634 : vector<1x1x16xf32> to vector<1x16xf32>
    %636 = vector.shape_cast %633 : vector<1x16xf32> to vector<1x1x16xf32>
    tpu.vector_store %arg11[%c7_551, %c1_552, %c0_553], %636 {strides = array<i32>} : memref<8x8x16xf32, #tpu.memory_space<vmem>>, vector<1x1x16xf32>,
    %c7_554 = arith.constant 7 : index
    %c16_555 = arith.constant 16 : index
    %637 = vector.load %arg12[%c7_554, %c16_555] : memref<8x128xf32, #tpu.memory_space<vmem>>, vector<1x16xf32>
    tpu.vector_store %arg12[%c7_554, %c16_555], %633 {strides = array<i32>} : memref<8x128xf32, #tpu.memory_space<vmem>>, vector<1x16xf32>,
    %c8_i32_556 = arith.constant 8 : i32
    %638 = arith.muli %arg0, %c8_i32_556 : i32
    %c7_i32_557 = arith.constant 7 : i32
    %639 = arith.addi %638, %c7_i32_557 : i32
    %640 = arith.index_cast %639 : i32 to index
    %c2_558 = arith.constant 2 : index
    %641 = memref.load %arg1[%640, %c2_558] : memref<8x8xi32, #tpu.memory_space<smem>>
    %642 = arith.index_cast %641 : i32 to index
    %c0_559 = arith.constant 0 : index
    %c0_560 = arith.constant 0 : index
    %643 = vector.load %arg2[%642, %c0_559, %c0_560] : memref<100x1x16xf32, #tpu.memory_space<vmem>>, vector<1x1x16xf32>
    %644 = vector.shape_cast %643 : vector<1x1x16xf32> to vector<1x16xf32>
    %c7_561 = arith.constant 7 : index
    %c2_562 = arith.constant 2 : index
    %c0_563 = arith.constant 0 : index
    %645 = vector.load %arg11[%c7_561, %c2_562, %c0_563] : memref<8x8x16xf32, #tpu.memory_space<vmem>>, vector<1x1x16xf32>
    %646 = vector.shape_cast %645 : vector<1x1x16xf32> to vector<1x16xf32>
    %647 = vector.shape_cast %644 : vector<1x16xf32> to vector<1x1x16xf32>
    tpu.vector_store %arg11[%c7_561, %c2_562, %c0_563], %647 {strides = array<i32>} : memref<8x8x16xf32, #tpu.memory_space<vmem>>, vector<1x1x16xf32>,
    %c7_564 = arith.constant 7 : index
    %c32_565 = arith.constant 32 : index
    %648 = vector.load %arg12[%c7_564, %c32_565] : memref<8x128xf32, #tpu.memory_space<vmem>>, vector<1x16xf32>
    tpu.vector_store %arg12[%c7_564, %c32_565], %644 {strides = array<i32>} : memref<8x128xf32, #tpu.memory_space<vmem>>, vector<1x16xf32>,
    %c8_i32_566 = arith.constant 8 : i32
    %649 = arith.muli %arg0, %c8_i32_566 : i32
    %c7_i32_567 = arith.constant 7 : i32
    %650 = arith.addi %649, %c7_i32_567 : i32
    %651 = arith.index_cast %650 : i32 to index
    %c3_568 = arith.constant 3 : index
    %652 = memref.load %arg1[%651, %c3_568] : memref<8x8xi32, #tpu.memory_space<smem>>
    %653 = arith.index_cast %652 : i32 to index
    %c0_569 = arith.constant 0 : index
    %c0_570 = arith.constant 0 : index
    %654 = vector.load %arg2[%653, %c0_569, %c0_570] : memref<100x1x16xf32, #tpu.memory_space<vmem>>, vector<1x1x16xf32>
    %655 = vector.shape_cast %654 : vector<1x1x16xf32> to vector<1x16xf32>
    %c7_571 = arith.constant 7 : index
    %c3_572 = arith.constant 3 : index
    %c0_573 = arith.constant 0 : index
    %656 = vector.load %arg11[%c7_571, %c3_572, %c0_573] : memref<8x8x16xf32, #tpu.memory_space<vmem>>, vector<1x1x16xf32>
    %657 = vector.shape_cast %656 : vector<1x1x16xf32> to vector<1x16xf32>
    %658 = vector.shape_cast %655 : vector<1x16xf32> to vector<1x1x16xf32>
    tpu.vector_store %arg11[%c7_571, %c3_572, %c0_573], %658 {strides = array<i32>} : memref<8x8x16xf32, #tpu.memory_space<vmem>>, vector<1x1x16xf32>,
    %c7_574 = arith.constant 7 : index
    %c48_575 = arith.constant 48 : index
    %659 = vector.load %arg12[%c7_574, %c48_575] : memref<8x128xf32, #tpu.memory_space<vmem>>, vector<1x16xf32>
    tpu.vector_store %arg12[%c7_574, %c48_575], %655 {strides = array<i32>} : memref<8x128xf32, #tpu.memory_space<vmem>>, vector<1x16xf32>,
    %c8_i32_576 = arith.constant 8 : i32
    %660 = arith.muli %arg0, %c8_i32_576 : i32
    %c7_i32_577 = arith.constant 7 : i32
    %661 = arith.addi %660, %c7_i32_577 : i32
    %662 = arith.index_cast %661 : i32 to index
    %c4_578 = arith.constant 4 : index
    %663 = memref.load %arg1[%662, %c4_578] : memref<8x8xi32, #tpu.memory_space<smem>>
    %664 = arith.index_cast %663 : i32 to index
    %c0_579 = arith.constant 0 : index
    %c0_580 = arith.constant 0 : index
    %665 = vector.load %arg2[%664, %c0_579, %c0_580] : memref<100x1x16xf32, #tpu.memory_space<vmem>>, vector<1x1x16xf32>
    %666 = vector.shape_cast %665 : vector<1x1x16xf32> to vector<1x16xf32>
    %c7_581 = arith.constant 7 : index
    %c4_582 = arith.constant 4 : index
    %c0_583 = arith.constant 0 : index
    %667 = vector.load %arg11[%c7_581, %c4_582, %c0_583] : memref<8x8x16xf32, #tpu.memory_space<vmem>>, vector<1x1x16xf32>
    %668 = vector.shape_cast %667 : vector<1x1x16xf32> to vector<1x16xf32>
    %669 = vector.shape_cast %666 : vector<1x16xf32> to vector<1x1x16xf32>
    tpu.vector_store %arg11[%c7_581, %c4_582, %c0_583], %669 {strides = array<i32>} : memref<8x8x16xf32, #tpu.memory_space<vmem>>, vector<1x1x16xf32>,
    %c7_584 = arith.constant 7 : index
    %c64_585 = arith.constant 64 : index
    %670 = vector.load %arg12[%c7_584, %c64_585] : memref<8x128xf32, #tpu.memory_space<vmem>>, vector<1x16xf32>
    tpu.vector_store %arg12[%c7_584, %c64_585], %666 {strides = array<i32>} : memref<8x128xf32, #tpu.memory_space<vmem>>, vector<1x16xf32>,
    %c8_i32_586 = arith.constant 8 : i32
    %671 = arith.muli %arg0, %c8_i32_586 : i32
    %c7_i32_587 = arith.constant 7 : i32
    %672 = arith.addi %671, %c7_i32_587 : i32
    %673 = arith.index_cast %672 : i32 to index
    %c5_588 = arith.constant 5 : index
    %674 = memref.load %arg1[%673, %c5_588] : memref<8x8xi32, #tpu.memory_space<smem>>
    %675 = arith.index_cast %674 : i32 to index
    %c0_589 = arith.constant 0 : index
    %c0_590 = arith.constant 0 : index
    %676 = vector.load %arg2[%675, %c0_589, %c0_590] : memref<100x1x16xf32, #tpu.memory_space<vmem>>, vector<1x1x16xf32>
    %677 = vector.shape_cast %676 : vector<1x1x16xf32> to vector<1x16xf32>
    %c7_591 = arith.constant 7 : index
    %c5_592 = arith.constant 5 : index
    %c0_593 = arith.constant 0 : index
    %678 = vector.load %arg11[%c7_591, %c5_592, %c0_593] : memref<8x8x16xf32, #tpu.memory_space<vmem>>, vector<1x1x16xf32>
    %679 = vector.shape_cast %678 : vector<1x1x16xf32> to vector<1x16xf32>
    %680 = vector.shape_cast %677 : vector<1x16xf32> to vector<1x1x16xf32>
    tpu.vector_store %arg11[%c7_591, %c5_592, %c0_593], %680 {strides = array<i32>} : memref<8x8x16xf32, #tpu.memory_space<vmem>>, vector<1x1x16xf32>,
    %c7_594 = arith.constant 7 : index
    %c80_595 = arith.constant 80 : index
    %681 = vector.load %arg12[%c7_594, %c80_595] : memref<8x128xf32, #tpu.memory_space<vmem>>, vector<1x16xf32>
    tpu.vector_store %arg12[%c7_594, %c80_595], %677 {strides = array<i32>} : memref<8x128xf32, #tpu.memory_space<vmem>>, vector<1x16xf32>,
    %c8_i32_596 = arith.constant 8 : i32
    %682 = arith.muli %arg0, %c8_i32_596 : i32
    %c7_i32_597 = arith.constant 7 : i32
    %683 = arith.addi %682, %c7_i32_597 : i32
    %684 = arith.index_cast %683 : i32 to index
    %c6_598 = arith.constant 6 : index
    %685 = memref.load %arg1[%684, %c6_598] : memref<8x8xi32, #tpu.memory_space<smem>>
    %686 = arith.index_cast %685 : i32 to index
    %c0_599 = arith.constant 0 : index
    %c0_600 = arith.constant 0 : index
    %687 = vector.load %arg2[%686, %c0_599, %c0_600] : memref<100x1x16xf32, #tpu.memory_space<vmem>>, vector<1x1x16xf32>
    %688 = vector.shape_cast %687 : vector<1x1x16xf32> to vector<1x16xf32>
    %c7_601 = arith.constant 7 : index
    %c6_602 = arith.constant 6 : index
    %c0_603 = arith.constant 0 : index
    %689 = vector.load %arg11[%c7_601, %c6_602, %c0_603] : memref<8x8x16xf32, #tpu.memory_space<vmem>>, vector<1x1x16xf32>
    %690 = vector.shape_cast %689 : vector<1x1x16xf32> to vector<1x16xf32>
    %691 = vector.shape_cast %688 : vector<1x16xf32> to vector<1x1x16xf32>
    tpu.vector_store %arg11[%c7_601, %c6_602, %c0_603], %691 {strides = array<i32>} : memref<8x8x16xf32, #tpu.memory_space<vmem>>, vector<1x1x16xf32>,
    %c7_604 = arith.constant 7 : index
    %c96_605 = arith.constant 96 : index
    %692 = vector.load %arg12[%c7_604, %c96_605] : memref<8x128xf32, #tpu.memory_space<vmem>>, vector<1x16xf32>
    tpu.vector_store %arg12[%c7_604, %c96_605], %688 {strides = array<i32>} : memref<8x128xf32, #tpu.memory_space<vmem>>, vector<1x16xf32>,
    %c8_i32_606 = arith.constant 8 : i32
    %693 = arith.muli %arg0, %c8_i32_606 : i32
    %c7_i32_607 = arith.constant 7 : i32
    %694 = arith.addi %693, %c7_i32_607 : i32
    %695 = arith.index_cast %694 : i32 to index
    %c7_608 = arith.constant 7 : index
    %696 = memref.load %arg1[%695, %c7_608] : memref<8x8xi32, #tpu.memory_space<smem>>
    %697 = arith.index_cast %696 : i32 to index
    %c0_609 = arith.constant 0 : index
    %c0_610 = arith.constant 0 : index
    %698 = vector.load %arg2[%697, %c0_609, %c0_610] : memref<100x1x16xf32, #tpu.memory_space<vmem>>, vector<1x1x16xf32>
    %699 = vector.shape_cast %698 : vector<1x1x16xf32> to vector<1x16xf32>
    %c7_611 = arith.constant 7 : index
    %c7_612 = arith.constant 7 : index
    %c0_613 = arith.constant 0 : index
    %700 = vector.load %arg11[%c7_611, %c7_612, %c0_613] : memref<8x8x16xf32, #tpu.memory_space<vmem>>, vector<1x1x16xf32>
    %701 = vector.shape_cast %700 : vector<1x1x16xf32> to vector<1x16xf32>
    %702 = vector.shape_cast %699 : vector<1x16xf32> to vector<1x1x16xf32>
    tpu.vector_store %arg11[%c7_611, %c7_612, %c0_613], %702 {strides = array<i32>} : memref<8x8x16xf32, #tpu.memory_space<vmem>>, vector<1x1x16xf32>,
    %c7_614 = arith.constant 7 : index
    %c112_615 = arith.constant 112 : index
    %703 = vector.load %arg12[%c7_614, %c112_615] : memref<8x128xf32, #tpu.memory_space<vmem>>, vector<1x16xf32>
    tpu.vector_store %arg12[%c7_614, %c112_615], %699 {strides = array<i32>} : memref<8x128xf32, #tpu.memory_space<vmem>>, vector<1x16xf32>,
    %c0_616 = arith.constant 0 : index
    %c0_617 = arith.constant 0 : index
    %c0_618 = arith.constant 0 : index
    %704 = vector.load %arg11[%c0_616, %c0_617, %c0_618] : memref<8x8x16xf32, #tpu.memory_space<vmem>>, vector<8x8x16xf32>
    %c0_619 = arith.constant 0 : index
    %c0_620 = arith.constant 0 : index
    %705 = vector.load %arg12[%c0_619, %c0_620] : memref<8x128xf32, #tpu.memory_space<vmem>>, vector<8x128xf32>
    "tpu.trace_start"() <{level = 10 : i32, message = "bfd,bgd->bfg"}> : () -> ()
    %cst = arith.constant dense<0.000000e+00> : vector<8x8x8xf32>
    %706 = tpu.matmul %704, %704, %cst {dimension_numbers = #tpu.dot_dimension_numbers<[2], [2], [1], [1], [0, 0, 0, 1, 1, 1], [0], [0]>} : vector<8x8x16xf32>, vector<8x8x16xf32>, vector<8x8x8xf32> -> vector<8x8x8xf32>
    "tpu.trace_stop"() : () -> ()
    %707 = vector.shape_cast %706 : vector<8x8x8xf32> to vector<8x64xf32>
    %c0_621 = arith.constant 0 : index
    %c0_622 = arith.constant 0 : index
    %708 = vector.load %arg3[%c0_621, %c0_622] : memref<128x32xf32, #tpu.memory_space<vmem>>, vector<128x32xf32>
    %cst_623 = arith.constant dense<0.000000e+00> : vector<8x32xf32>
    %709 = tpu.matmul %705, %708, %cst_623 {dimension_numbers = #tpu.dot_dimension_numbers<[1], [0], [0], [1], [0, 0, 1, 1], [], []>} : vector<8x128xf32>, vector<128x32xf32>, vector<8x32xf32> -> vector<8x32xf32>
    %c0_624 = arith.constant 0 : index
    %c0_625 = arith.constant 0 : index
    %710 = vector.load %arg4[%c0_624, %c0_625] : memref<64x32xf32, #tpu.memory_space<vmem>>, vector<64x32xf32>
    %cst_626 = arith.constant dense<0.000000e+00> : vector<8x32xf32>
    %711 = tpu.matmul %707, %710, %cst_626 {dimension_numbers = #tpu.dot_dimension_numbers<[1], [0], [0], [1], [0, 0, 1, 1], [], []>} : vector<8x64xf32>, vector<64x32xf32>, vector<8x32xf32> -> vector<8x32xf32>
    %712 = arith.addf %709, %711 : vector<8x32xf32>
    %c0_627 = arith.constant 0 : index
    %c0_628 = arith.constant 0 : index
    %713 = vector.load %arg5[%c0_627, %c0_628] : memref<1x32xf32, #tpu.memory_space<vmem>>, vector<1x32xf32>
    %714 = vector.broadcast %713 : vector<1x32xf32> to vector<8x32xf32>
    %715 = arith.addf %712, %714 : vector<8x32xf32>
    %cst_629 = arith.constant 0.000000e+00 : f32
    %716 = vector.broadcast %cst_629 : f32 to vector<8x32xf32>
    %717 = arith.maximumf %715, %716 : vector<8x32xf32>
    %c0_630 = arith.constant 0 : index
    %c0_631 = arith.constant 0 : index
    %718 = vector.load %arg6[%c0_630, %c0_631] : memref<32x32xf32, #tpu.memory_space<vmem>>, vector<32x32xf32>
    %cst_632 = arith.constant dense<0.000000e+00> : vector<8x32xf32>
    %719 = tpu.matmul %717, %718, %cst_632 {dimension_numbers = #tpu.dot_dimension_numbers<[1], [0], [0], [1], [0, 0, 1, 1], [], []>} : vector<8x32xf32>, vector<32x32xf32>, vector<8x32xf32> -> vector<8x32xf32>
    %c0_633 = arith.constant 0 : index
    %c0_634 = arith.constant 0 : index
    %720 = vector.load %arg7[%c0_633, %c0_634] : memref<1x32xf32, #tpu.memory_space<vmem>>, vector<1x32xf32>
    %721 = vector.broadcast %720 : vector<1x32xf32> to vector<8x32xf32>
    %722 = arith.addf %719, %721 : vector<8x32xf32>
    %cst_635 = arith.constant 0.000000e+00 : f32
    %723 = vector.broadcast %cst_635 : f32 to vector<8x32xf32>
    %724 = arith.maximumf %722, %723 : vector<8x32xf32>
    %c0_636 = arith.constant 0 : index
    %c0_637 = arith.constant 0 : index
    %725 = vector.load %arg8[%c0_636, %c0_637] : memref<32x1xf32, #tpu.memory_space<vmem>>, vector<32x1xf32>
    %cst_638 = arith.constant dense<0.000000e+00> : vector<8x1xf32>
    %726 = tpu.matmul %724, %725, %cst_638 {dimension_numbers = #tpu.dot_dimension_numbers<[1], [0], [0], [1], [0, 0, 1, 1], [], []>} : vector<8x32xf32>, vector<32x1xf32>, vector<8x1xf32> -> vector<8x1xf32>
    %c0_639 = arith.constant 0 : index
    %c0_640 = arith.constant 0 : index
    %727 = memref.load %arg9[%c0_639, %c0_640] : memref<1x1xf32, #tpu.memory_space<smem>>
    %728 = vector.broadcast %727 : f32 to vector<8x1xf32>
    %729 = arith.addf %726, %728 : vector<8x1xf32>
    %c0_641 = arith.constant 0 : index
    %c0_642 = arith.constant 0 : index
    %730 = vector.load %arg10[%c0_641, %c0_642] : memref<8x1xf32, #tpu.memory_space<vmem>>, vector<8x1xf32>
    tpu.vector_store %arg10[%c0_641, %c0_642], %729 {strides = array<i32>} : memref<8x1xf32, #tpu.memory_space<vmem>>, vector<8x1xf32>,
    return
  }
  func.func @transform_0(%arg0: i32, %arg1: memref<8x8xi32, #tpu.memory_space<smem>>) -> (i32, i32, i32) {
    %c0_i32 = arith.constant 0 : i32
    %c0_i32_0 = arith.constant 0 : i32
    %c0_i32_1 = arith.constant 0 : i32
    %c0_i32_2 = arith.constant 0 : i32
    return %c0_i32, %c0_i32_0, %c0_i32_1 : i32, i32, i32
  }
  func.func @transform_1(%arg0: i32, %arg1: memref<8x8xi32, #tpu.memory_space<smem>>) -> (i32, i32) {
    %c0_i32 = arith.constant 0 : i32
    %c0_i32_0 = arith.constant 0 : i32
    %c0_i32_1 = arith.constant 0 : i32
    return %c0_i32, %c0_i32_0 : i32, i32
  }
  func.func @transform_2(%arg0: i32, %arg1: memref<8x8xi32, #tpu.memory_space<smem>>) -> (i32, i32) {
    %c0_i32 = arith.constant 0 : i32
    %c0_i32_0 = arith.constant 0 : i32
    %c0_i32_1 = arith.constant 0 : i32
    return %c0_i32, %c0_i32_0 : i32, i32
  }
  func.func @transform_3(%arg0: i32, %arg1: memref<8x8xi32, #tpu.memory_space<smem>>) -> (i32, i32) {
    %c0_i32 = arith.constant 0 : i32
    %c0_i32_0 = arith.constant 0 : i32
    %c0_i32_1 = arith.constant 0 : i32
    return %c0_i32, %c0_i32_0 : i32, i32
  }
  func.func @transform_4(%arg0: i32, %arg1: memref<8x8xi32, #tpu.memory_space<smem>>) -> (i32, i32) {
    %c0_i32 = arith.constant 0 : i32
    %c0_i32_0 = arith.constant 0 : i32
    %c0_i32_1 = arith.constant 0 : i32
    return %c0_i32, %c0_i32_0 : i32, i32
  }
  func.func @transform_5(%arg0: i32, %arg1: memref<8x8xi32, #tpu.memory_space<smem>>) -> (i32, i32) {
    %c0_i32 = arith.constant 0 : i32
    %c0_i32_0 = arith.constant 0 : i32
    %c0_i32_1 = arith.constant 0 : i32
    return %c0_i32, %c0_i32_0 : i32, i32
  }
  func.func @transform_6(%arg0: i32, %arg1: memref<8x8xi32, #tpu.memory_space<smem>>) -> (i32, i32) {
    %c0_i32 = arith.constant 0 : i32
    %c0_i32_0 = arith.constant 0 : i32
    %c0_i32_1 = arith.constant 0 : i32
    return %c0_i32, %c0_i32_0 : i32, i32
  }
  func.func @transform_7(%arg0: i32, %arg1: memref<8x8xi32, #tpu.memory_space<smem>>) -> (i32, i32) {
    %c0_i32 = arith.constant 0 : i32
    %c0_i32_0 = arith.constant 0 : i32
    %c0_i32_1 = arith.constant 0 : i32
    return %c0_i32, %c0_i32_0 : i32, i32
  }
  func.func @transform_8(%arg0: i32, %arg1: memref<8x8xi32, #tpu.memory_space<smem>>) -> (i32, i32) {
    %c0_i32 = arith.constant 0 : i32
    %c0_i32_0 = arith.constant 0 : i32
    return %arg0, %c0_i32 : i32, i32
  }
}

</mosaic_0001>

<bundles_post_ra>
// kernel: tpu_custom_call.1
= control target key start
LH: loop header
LB: loop body
LE: loop exit
PB: predicated region body
PF: predicated region fallthrough
CT: control target
= control target key end

     0   :  { %s3409_s0 = inlined_call_operand.vmem [shape: s32[8,8], index: 0, kind: input, shape index: {}]   ;;  %s3410_s1 = inlined_call_operand.vmem [shape: f32[100,1,16], index: 1, kind: input, shape index: {}]   ;;  %s3411_s2 = inlined_call_operand.vmem [shape: f32[128,32], index: 2, kind: input, shape index: {}]   ;;  %s3412_s3 = inlined_call_operand.vmem [shape: f32[64,32], index: 3, kind: input, shape index: {}]   ;;  %s3413_s4 = inlined_call_operand.vmem [shape: f32[1,32], index: 4, kind: input, shape index: {}]   ;;  %s3414_s5 = inlined_call_operand.vmem [shape: f32[32,32], index: 5, kind: input, shape index: {}]   ;;  %s3415_s6 = inlined_call_operand.vmem [shape: f32[1,32], index: 6, kind: input, shape index: {}]   ;;  %s3416_s7 = inlined_call_operand.vmem [shape: f32[32,1], index: 7, kind: input, shape index: {}]   ;;  %s3417_s8 = inlined_call_operand.<no memory space> [shape: f32[1,1], index: 8, kind: input, shape index: {}]   ;;  %s3418_s9 = inlined_call_operand.vmem [shape: f32[8,1], index: 9, kind: output, shape index: {}]  }
   0x1   :  { %3419 = sst [smem:[#allocation8_spill]] %s3417_s8  ;;  %s14_s11 = sshll.u32 %s3409_s0, 4  ;;  %s15_s11 = int_to_ptr.vmem [resolvable:$true] %s14_s11 }
   0x2   :  { %3420 = sst [smem:[#allocation9_spill]] %s3418_s9  ;;  %s2391_s12 = scalar_lea.vmem %s15_s11, 128 }
   0x3   :  { %p2392_p0 = scmp.ne.s32.totalorder %s15_s11, %s2391_s12  ;;  %p2396_p1 = scmp.lt.s32.totalorder %s15_s11, %s15_s11 }
   0x4   :  { %p2397_p2 = scmp.lt.s32.totalorder %s2391_s12, %s2391_s12 }
   0x6   :  { %p2398_p3 = por %p2397_p2, %p2396_p1 }
   0x8   :  { %p2399_p4 = pnand %p2398_p3, %p2392_p0 }
   0xa   :  { %2402 = shalt.err (!%p2399_p4)  }
   0xb   :  { %s2405_s13 = smov [#allocation5]  }
   0xc   :  { %17 = dma.vmem_to_smem %s15_s11, 128, %s2405_s13, [#allocation4] }
   0xd   :  { %2403 = dma.done.wait [#allocation4], 128 }
   0xe   :  { %2404 = vsyncadd [#allocation4], 4294967168 }
   0xf   :  { %20 = sfence }
  0x10   :  { %s39_s14 = sld [smem:[#allocation5]]  ;;  %s2074_s15 = sld [smem:[#allocation5 + $0x1]]  ;;  %v2406_v0 = vmov 0.0   ;;  %vm2407_vm0 = vmmov 0   ;;  %vm42_vm1 = vcmask 122880   ;;  %vm901_vm2 = vcmask 130048  }
  0x11   :  { %2210 = vmatprep.subr.mxu0 %v2406_v0  ;;  %2215 = vmatprep.subr.mxu1 %v2406_v0  ;;  %s2075_s0 = sld [smem:[#allocation5 + $0x2]]  ;;  %s2076_s16 = sld [smem:[#allocation5 + $0x3]]  ;;  %v51_v50 = vlaneseq  ;;  %vm58_vm3 = vcmask 254080   ;;  %vm73_vm4 = vcmask 385280   ;;  %vm88_vm5 = vcmask 516480  }
  0x12   :  { %s2077_s17 = sld [smem:[#allocation5 + $0x4]]  ;;  %s2078_s18 = sld [smem:[#allocation5 + $0x5]]  ;;  %2212 = vmatprep.mubr.msk.f32.mxu0 %vm2407_vm0, %v2406_v0  ;;  %2217 = vmatprep.mubr.msk.f32.mxu1 %vm2407_vm0, %v2406_v0  ;;  %vm103_vm6 = vcmask 647680   ;;  %vm118_vm7 = vcmask 778880   ;;  %vm133_vm8 = vcmask 910080   ;;  %vm148_vm9 = vcmask 1041280  }
  0x13   :  { %s2079_s19 = sld [smem:[#allocation5 + $0x6]]  ;;  %s2080_s20 = sld [smem:[#allocation5 + $0x7]]  ;;  %v2898_v54 = vshrl.u32 %v51_v50, 7  ;;  %vm1650_vm10 = vcmask 64512   ;;  %vm1653_vm11 = vcmask 195584   ;;  %vm1655_vm12 = vcmask 261120  }
  0x14   :  { %s2481_s21 = sld [smem:[#allocation5 + $0x80]]  ;;  %s2483_s22 = sld [smem:[#allocation5 + $0x81]]  ;;  %vm1657_vm13 = vcmask 326656   ;;  %vm1659_vm14 = vcmask 392192   ;;  %vm1661_vm15 = vcmask 457728  }
  0x15   :  { %s2485_s23 = sld [smem:[#allocation5 + $0x82]]  ;;  %s2487_s24 = sld [smem:[#allocation5 + $0x83]]  ;;  %v2922_v57 = vsub.s32 0, %v2898_v54 }
  0x16   :  { %s40_s27 = scalar_lea.vmem %s3410_s1, %s39_s14  ;;  %s47_s30 = scalar_lea.vmem %s3410_s1, %s2074_s15 }
  0x17   :  { %v41_v1 = vld [vmem:[%s40_s27] sm:$0x1]  ;;  %s62_s12 = scalar_lea.vmem %s3410_s1, %s2075_s0  ;;  %s77_s8 = scalar_lea.vmem %s3410_s1, %s2076_s16 }
  0x18   :  { %v2495_v2 = vld [vmem:[%s47_s30] sm:$0x1]  ;;  %43 = vst.msk [vmem:[#allocation2] sm:$0x1] %vm42_vm1, %v41_v1  ;;  %s92_s25 = scalar_lea.vmem %s3410_s1, %s2077_s17  ;;  %s107_s9 = scalar_lea.vmem %s3410_s1, %s2078_s18  ;;  %44 = vst.msk [vmem:[#allocation3] sm:$0x1] %vm42_vm1, %v41_v1 }
  0x19   :  { %49 = vst.msk [vmem:[#allocation2 + $0x1] sm:$0x1] %vm42_vm1, %v2495_v2  ;;  %v2506_v3 = vld [vmem:[%s62_s12] sm:$0x1]  ;;  %s122_s17 = scalar_lea.vmem %s3410_s1, %s2079_s19  ;;  %s137_s28 = scalar_lea.vmem %s3410_s1, %s2080_s20 }
  0x1a   :  { %v2508_v4 = vld [vmem:[%s77_s8] sm:$0x1]  ;;  %64 = vst.msk [vmem:[#allocation2 + $0x2] sm:$0x1] %vm42_vm1, %v2506_v3  ;;  %s153_s10 = scalar_lea.vmem %s3410_s1, %s2481_s21  ;;  %s160_s12 = scalar_lea.vmem %s3410_s1, %s2483_s22 }
  0x1b   :  { %79 = vst.msk [vmem:[#allocation2 + $0x3] sm:$0x1] %vm42_vm1, %v2508_v4  ;;  %v2521_v5 = vld [vmem:[%s92_s25] sm:$0x1]  ;;  %s174_s14 = scalar_lea.vmem %s3410_s1, %s2485_s23  ;;  %s188_s21 = scalar_lea.vmem %s3410_s1, %s2487_s24 }
  0x1c   :  { %v2523_v6 = vld [vmem:[%s107_s9] sm:$0x1]  ;;  %94 = vst.msk [vmem:[#allocation2 + $0x4] sm:$0x1] %vm42_vm1, %v2521_v5  ;;  %s2085_s22 = sld [smem:[#allocation5 + $0x84]]  ;;  %s2086_s23 = sld [smem:[#allocation5 + $0x85]] }
  0x1d   :  { %109 = vst.msk [vmem:[#allocation2 + $0x5] sm:$0x1] %vm42_vm1, %v2523_v6  ;;  %v2535_v7 = vld [vmem:[%s122_s17] sm:$0x1]  ;;  %s2087_s24 = sld [smem:[#allocation5 + $0x86]]  ;;  %s2088_s0 = sld [smem:[#allocation5 + $0x87]] }
  0x1e   :  { %v2537_v8 = vld [vmem:[%s137_s28] sm:$0x1]  ;;  %124 = vst.msk [vmem:[#allocation2 + $0x6] sm:$0x1] %vm42_vm1, %v2535_v7  ;;  %s2089_s26 = sld [smem:[#allocation5 + $0x100]]  ;;  %s2573_s9 = sld [smem:[#allocation5 + $0x101]] }
  0x1f   :  { %139 = vst.msk [vmem:[#allocation2 + $0x7] sm:$0x1] %vm42_vm1, %v2537_v8  ;;  %v154_v9 = vld [vmem:[%s153_s10] sm:$0x1]  ;;  %s2575_s8 = sld [smem:[#allocation5 + $0x102]]  ;;  %s2577_s16 = sld [smem:[#allocation5 + $0x103]] }
  0x20   :  { %v2551_v10 = vld [vmem:[%s160_s12] sm:$0x1]  ;;  %156 = vst.msk [vmem:[#allocation2 + $0x8] sm:$0x1] %vm42_vm1, %v154_v9  ;;  %157 = vst.msk [vmem:[#allocation3 + $0x1] sm:$0x1] %vm42_vm1, %v154_v9 }
  0x21   :  { %162 = vst.msk [vmem:[#allocation2 + $0x9] sm:$0x1] %vm42_vm1, %v2551_v10  ;;  %v2564_v11 = vld [vmem:[%s174_s14] sm:$0x1]  ;;  %s2579_s17 = sld [smem:[#allocation5 + $0x104]]  ;;  %s2581_s27 = sld [smem:[#allocation5 + $0x105]] }
  0x22   :  { %v2566_v12 = vld [vmem:[%s188_s21] sm:$0x1]  ;;  %176 = vst.msk [vmem:[#allocation2 + $0xa] sm:$0x1] %vm42_vm1, %v2564_v11  ;;  %s2583_s18 = sld [smem:[#allocation5 + $0x106]]  ;;  %s202_s30 = scalar_lea.vmem %s3410_s1, %s2085_s22 }
  0x23   :  { %190 = vst.msk [vmem:[#allocation2 + $0xb] sm:$0x1] %vm42_vm1, %v2566_v12  ;;  %s2588_s10 = sld [smem:[#allocation5 + $0x107]]  ;;  %v2591_v14 = vld [vmem:[%s202_s30] sm:$0x1]  ;;  %s216_s12 = scalar_lea.vmem %s3410_s1, %s2086_s23 }
  0x24   :  { %s230_s14 = scalar_lea.vmem %s3410_s1, %s2087_s24  ;;  %204 = vst.msk [vmem:[#allocation2 + $0xc] sm:$0x1] %vm42_vm1, %v2591_v14  ;;  %v2601_v15 = vld [vmem:[%s216_s12] sm:$0x1]  ;;  %s244_s21 = scalar_lea.vmem %s3410_s1, %s2088_s0 }
  0x25   :  { %v2603_v16 = vld [vmem:[%s230_s14] sm:$0x1]  ;;  %s259_s28 = scalar_lea.vmem %s3410_s1, %s2089_s26  ;;  %218 = vst.msk [vmem:[#allocation2 + $0xd] sm:$0x1] %vm42_vm1, %v2601_v15  ;;  %s266_s0 = scalar_lea.vmem %s3410_s1, %s2573_s9 }
  0x26   :  { %v892_v13 = vld [vmem:[#allocation2] sm:$0xff]  ;;  %232 = vst.msk [vmem:[#allocation2 + $0xe] sm:$0x1] %vm42_vm1, %v2603_v16  ;;  %s280_s19 = scalar_lea.vmem %s3410_s1, %s2575_s8  ;;  %s294_s9 = scalar_lea.vmem %s3410_s1, %s2577_s16 }
  0x27   :  { %2211 = vmatpush3.xpose.msk.msra.mxu0 %vm901_vm2, %v892_v13  ;;  %v2616_v17 = vld [vmem:[%s244_s21] sm:$0x1]  ;;  %s308_s8 = scalar_lea.vmem %s3410_s1, %s2579_s17  ;;  %s322_s16 = scalar_lea.vmem %s3410_s1, %s2581_s27 }
  0x28   :  { %2220 = vmatprep.subr.mxu0 %v2406_v0  ;;  %v260_v18 = vld [vmem:[%s259_s28] sm:$0x1]  ;;  %246 = vst.msk [vmem:[#allocation2 + $0xf] sm:$0x1] %vm42_vm1, %v2616_v17  ;;  %s336_s17 = scalar_lea.vmem %s3410_s1, %s2583_s18  ;;  %s2097_s28 = sld [smem:[#allocation5 + $0x180]] }
  0x29   :  { %262 = vst.msk [vmem:[#allocation2 + $0x10] sm:$0x1] %vm42_vm1, %v260_v18  ;;  %v2630_v19 = vld [vmem:[%s266_s0] sm:$0x1]  ;;  %263 = vst.msk [vmem:[#allocation3 + $0x2] sm:$0x1] %vm42_vm1, %v260_v18  ;;  %s350_s27 = scalar_lea.vmem %s3410_s1, %s2588_s10 }
  0x2a   :  { %2213 = vmatmul.mubr.msk.f32.vlgmr.msra.gmra.mrb[0].mxu0 %vm901_vm2, %v892_v13  ;;  %v2632_v20 = vld [vmem:[%s280_s19] sm:$0x1]  ;;  %268 = vst.msk [vmem:[#allocation2 + $0x11] sm:$0x1] %vm42_vm1, %v2630_v19  ;;  %s2098_s18 = sld [smem:[#allocation5 + $0x181]]  ;;  %s2099_s24 = sld [smem:[#allocation5 + $0x182]]  ;;  %v273_v18 = vrot.slane %v2630_v19, %v2922_v57 }
  0x2b   :  { %282 = vst.msk [vmem:[#allocation2 + $0x12] sm:$0x1] %vm42_vm1, %v2632_v20  ;;  %v2647_v21 = vld [vmem:[%s294_s9] sm:$0x1]  ;;  %2222 = vmatprep.mubr.msk.f32.mxu0 %vm2407_vm0, %v2406_v0  ;;  %s2100_s29 = sld [smem:[#allocation5 + $0x183]]  ;;  %s2101_s0 = sld [smem:[#allocation5 + $0x184]] }
  0x2c   :  { %v2649_v22 = vld [vmem:[%s308_s8] sm:$0x1]  ;;  %296 = vst.msk [vmem:[#allocation2 + $0x13] sm:$0x1] %vm42_vm1, %v2647_v21  ;;  %s2681_s30 = sld [smem:[#allocation5 + $0x185]]  ;;  %s2683_s11 = sld [smem:[#allocation5 + $0x186]] }
  0x2d   :  { %310 = vst.msk [vmem:[#allocation2 + $0x14] sm:$0x1] %vm42_vm1, %v2649_v22  ;;  %v2665_v23 = vld [vmem:[%s322_s16] sm:$0x1]  ;;  %s2685_s10 = sld [smem:[#allocation5 + $0x187]]  ;;  %s2687_s19 = sld [smem:[#allocation5 + $0x200]] }
  0x2e   :  { %v2667_v24 = vld [vmem:[%s336_s17] sm:$0x1]  ;;  %324 = vst.msk [vmem:[#allocation2 + $0x15] sm:$0x1] %vm42_vm1, %v2665_v23  ;;  %s2689_s26 = sld [smem:[#allocation5 + $0x201]]  ;;  %s2691_s12 = sld [smem:[#allocation5 + $0x202]] }
  0x2f   :  { %338 = vst.msk [vmem:[#allocation2 + $0x16] sm:$0x1] %vm42_vm1, %v2667_v24  ;;  %v2677_v25 = vld [vmem:[%s350_s27] sm:$0x1]  ;;  %v893_v26 = vld [vmem:[#allocation2 + $0x8] sm:$0xff]  ;;  %s365_s13 = scalar_lea.vmem %s3410_s1, %s2097_s28  ;;  %s2697_s8 = sld [smem:[#allocation5 + $0x203]] }
  0x30   :  { %352 = vst.msk [vmem:[#allocation2 + $0x17] sm:$0x1] %vm42_vm1, %v2677_v25  ;;  %2216 = vmatpush3.xpose.msk.msra.mxu1 %vm901_vm2, %v893_v26  ;;  %v366_v27 = vld [vmem:[%s365_s13] sm:$0x1]  ;;  %s372_s16 = scalar_lea.vmem %s3410_s1, %s2098_s18  ;;  %s386_s17 = scalar_lea.vmem %s3410_s1, %s2099_s24 }
  0x31   :  { %2225 = vmatprep.subr.mxu1 %v2406_v0  ;;  %368 = vst.msk [vmem:[#allocation2 + $0x18] sm:$0x1] %vm42_vm1, %v366_v27  ;;  %v2707_v28 = vld [vmem:[%s372_s16] sm:$0x1]  ;;  %s400_s27 = scalar_lea.vmem %s3410_s1, %s2100_s29  ;;  %s414_s20 = scalar_lea.vmem %s3410_s1, %s2101_s0  ;;  %369 = vst.msk [vmem:[#allocation3 + $0x3] sm:$0x1] %vm42_vm1, %v366_v27 }
  0x32   :  { %v2709_v29 = vld [vmem:[%s386_s17] sm:$0x1]  ;;  %374 = vst.msk [vmem:[#allocation2 + $0x19] sm:$0x1] %vm42_vm1, %v2707_v28  ;;  %s428_s29 = scalar_lea.vmem %s3410_s1, %s2681_s30  ;;  %s442_s14 = scalar_lea.vmem %s3410_s1, %s2683_s11  ;;  %v379_v19 = vrot.slane %v2707_v28, %v2922_v57 }
  0x33   :  { %2218 = vmatmul.mubr.msk.f32.vlgmr.msra.gmra.mrb[0].mxu1 %vm901_vm2, %v893_v26  ;;  %388 = vst.msk [vmem:[#allocation2 + $0x1a] sm:$0x1] %vm42_vm1, %v2709_v29  ;;  %v2723_v31 = vld [vmem:[%s400_s27] sm:$0x1]  ;;  %s456_s16 = scalar_lea.vmem %s3410_s1, %s2685_s10  ;;  %s471_s21 = scalar_lea.vmem %s3410_s1, %s2687_s19  ;;  %v54_v26 = vrot.slane %v2495_v2, %v2922_v57 }
  0x34   :  { %v2725_v32 = vld [vmem:[%s414_s20] sm:$0x1]  ;;  %402 = vst.msk [vmem:[#allocation2 + $0x1b] sm:$0x1] %vm42_vm1, %v2723_v31  ;;  %2227 = vmatprep.mubr.msk.f32.mxu1 %vm2407_vm0, %v2406_v0  ;;  %s478_s22 = scalar_lea.vmem %s3410_s1, %s2689_s26  ;;  %s492_s28 = scalar_lea.vmem %s3410_s1, %s2691_s12 }
  0x35   :  { %416 = vst.msk [vmem:[#allocation2 + $0x1c] sm:$0x1] %vm42_vm1, %v2725_v32  ;;  %v2740_v33 = vld [vmem:[%s428_s29] sm:$0x1]  ;;  %s506_s20 = scalar_lea.vmem %s3410_s1, %s2697_s8  ;;  %s2109_s18 = sld [smem:[#allocation5 + $0x204]] }
  0x36   :  { %v2742_v34 = vld [vmem:[%s442_s14] sm:$0x1]  ;;  %430 = vst.msk [vmem:[#allocation2 + $0x1d] sm:$0x1] %vm42_vm1, %v2740_v33  ;;  %s2110_s26 = sld [smem:[#allocation5 + $0x205]]  ;;  %s2111_s12 = sld [smem:[#allocation5 + $0x206]] }
  0x37   :  { %v894_v30 = vld [vmem:[#allocation2 + $0x10] sm:$0xff]  ;;  %444 = vst.msk [vmem:[#allocation2 + $0x1e] sm:$0x1] %vm42_vm1, %v2742_v34  ;;  %v2758_v35 = vld [vmem:[%s456_s16] sm:$0x1]  ;;  %s2112_s24 = sld [smem:[#allocation5 + $0x207]] }
  0x38   :  { %2221 = vmatpush3.xpose.msk.msra.mxu0 %vm901_vm2, %v894_v30  ;;  %v472_v36 = vld [vmem:[%s471_s21] sm:$0x1]  ;;  %458 = vst.msk [vmem:[#allocation2 + $0x1f] sm:$0x1] %vm42_vm1, %v2758_v35  ;;  %s2113_s8 = sld [smem:[#allocation5 + $0x280]]  ;;  %s2114_s29 = sld [smem:[#allocation5 + $0x281]] }
  0x39   :  { %2230 = vmatprep.subr.mxu0 %v2406_v0  ;;  %474 = vst.msk [vmem:[#allocation2 + $0x20] sm:$0x1] %vm42_vm1, %v472_v36  ;;  %v2772_v37 = vld [vmem:[%s478_s22] sm:$0x1]  ;;  %475 = vst.msk [vmem:[#allocation3 + $0x4] sm:$0x1] %vm42_vm1, %v472_v36  ;;  %v167_v36 = vrot.slane %v2551_v10, %v2922_v57 }
  0x3a   :  { %v2774_v38 = vld [vmem:[%s492_s28] sm:$0x1]  ;;  %480 = vst.msk [vmem:[#allocation2 + $0x21] sm:$0x1] %vm42_vm1, %v2772_v37  ;;  %s2115_s0 = sld [smem:[#allocation5 + $0x282]]  ;;  %s2792_s13 = sld [smem:[#allocation5 + $0x283]] }
  0x3b   :  { %2223 = vmatmul.mubr.msk.f32.vlgmr.msra.gmra.mrb[2].mxu0 %vm901_vm2, %v894_v30  ;;  %494 = vst.msk [vmem:[#allocation2 + $0x22] sm:$0x1] %vm42_vm1, %v2774_v38  ;;  %v2786_v39 = vld [vmem:[%s506_s20] sm:$0x1]  ;;  %s2794_s14 = sld [smem:[#allocation5 + $0x284]]  ;;  %s2796_s15 = sld [smem:[#allocation5 + $0x285]] }
  0x3c   :  { %508 = vst.msk [vmem:[#allocation2 + $0x23] sm:$0x1] %vm42_vm1, %v2786_v39  ;;  %2232 = vmatprep.mubr.msk.f32.mxu0 %vm2407_vm0, %v2406_v0  ;;  %s2798_s30 = sld [smem:[#allocation5 + $0x286]]  ;;  %s520_s25 = scalar_lea.vmem %s3410_s1, %s2109_s18 }
  0x3d   :  { %s2803_s21 = sld [smem:[#allocation5 + $0x287]]  ;;  %v2805_v41 = vld [vmem:[%s520_s25] sm:$0x1]  ;;  %s534_s22 = scalar_lea.vmem %s3410_s1, %s2110_s26 }
  0x3e   :  { %s548_s28 = scalar_lea.vmem %s3410_s1, %s2111_s12  ;;  %522 = vst.msk [vmem:[#allocation2 + $0x24] sm:$0x1] %vm42_vm1, %v2805_v41  ;;  %v2816_v42 = vld [vmem:[%s534_s22] sm:$0x1]  ;;  %s562_s20 = scalar_lea.vmem %s3410_s1, %s2112_s24 }
  0x3f   :  { %v895_v40 = vld [vmem:[#allocation2 + $0x18] sm:$0xff]  ;;  %v2818_v43 = vld [vmem:[%s548_s28] sm:$0x1]  ;;  %s577_s16 = scalar_lea.vmem %s3410_s1, %s2113_s8  ;;  %536 = vst.msk [vmem:[#allocation2 + $0x25] sm:$0x1] %vm42_vm1, %v2816_v42  ;;  %s584_s24 = scalar_lea.vmem %s3410_s1, %s2114_s29 }
  0x40   :  { %2226 = vmatpush3.xpose.msk.msra.mxu1 %vm901_vm2, %v895_v40  ;;  %550 = vst.msk [vmem:[#allocation2 + $0x26] sm:$0x1] %vm42_vm1, %v2818_v43  ;;  %v2831_v44 = vld [vmem:[%s562_s20] sm:$0x1]  ;;  %s598_s8 = scalar_lea.vmem %s3410_s1, %s2115_s0  ;;  %s612_s23 = scalar_lea.vmem %s3410_s1, %s2792_s13 }
  0x41   :  { %2235 = vmatprep.subr.mxu1 %v2406_v0  ;;  %v578_v45 = vld [vmem:[%s577_s16] sm:$0x1]  ;;  %564 = vst.msk [vmem:[#allocation2 + $0x27] sm:$0x1] %vm42_vm1, %v2831_v44  ;;  %s626_s28 = scalar_lea.vmem %s3410_s1, %s2794_s14  ;;  %s640_s19 = scalar_lea.vmem %s3410_s1, %s2796_s15 }
  0x42   :  { %580 = vst.msk [vmem:[#allocation2 + $0x28] sm:$0x1] %vm42_vm1, %v578_v45  ;;  %v2842_v46 = vld [vmem:[%s584_s24] sm:$0x1]  ;;  %581 = vst.msk [vmem:[#allocation3 + $0x5] sm:$0x1] %vm42_vm1, %v578_v45  ;;  %s654_s20 = scalar_lea.vmem %s3410_s1, %s2798_s30 }
  0x43   :  { %v2844_v47 = vld [vmem:[%s598_s8] sm:$0x1]  ;;  %2228 = vmatmul.mubr.msk.f32.vlgmr.msra.gmra.mrb[2].mxu1 %vm901_vm2, %v895_v40  ;;  %586 = vst.msk [vmem:[#allocation2 + $0x29] sm:$0x1] %vm42_vm1, %v2842_v46  ;;  %s668_s16 = scalar_lea.vmem %s3410_s1, %s2803_s21  ;;  %s2121_s15 = sld [smem:[#allocation5 + $0x300]]  ;;  %v591_v10 = vrot.slane %v2842_v46, %v2922_v57 }
  0x44   :  { %600 = vst.msk [vmem:[#allocation2 + $0x2a] sm:$0x1] %vm42_vm1, %v2844_v47  ;;  %v2860_v48 = vld [vmem:[%s612_s23] sm:$0x1]  ;;  %2237 = vmatprep.mubr.msk.f32.mxu1 %vm2407_vm0, %v2406_v0  ;;  %s2122_s30 = sld [smem:[#allocation5 + $0x301]]  ;;  %s2123_s12 = sld [smem:[#allocation5 + $0x302]] }
  0x45   :  { %v2862_v49 = vld [vmem:[%s626_s28] sm:$0x1]  ;;  %614 = vst.msk [vmem:[#allocation2 + $0x2b] sm:$0x1] %vm42_vm1, %v2860_v48  ;;  %s2124_s11 = sld [smem:[#allocation5 + $0x303]]  ;;  %s2125_s24 = sld [smem:[#allocation5 + $0x304]] }
  0x46   :  { %628 = vst.msk [vmem:[#allocation2 + $0x2c] sm:$0x1] %vm42_vm1, %v2862_v49  ;;  %v2876_v51 = vld [vmem:[%s640_s19] sm:$0x1]  ;;  %s2894_s21 = sld [smem:[#allocation5 + $0x305]]  ;;  %s2896_s25 = sld [smem:[#allocation5 + $0x306]] }
  0x47   :  { %v2878_v52 = vld [vmem:[%s654_s20] sm:$0x1]  ;;  %642 = vst.msk [vmem:[#allocation2 + $0x2d] sm:$0x1] %vm42_vm1, %v2876_v51  ;;  %s2900_s17 = sld [smem:[#allocation5 + $0x307]]  ;;  %s2902_s8 = sld [smem:[#allocation5 + $0x380]] }
  0x48   :  { %656 = vst.msk [vmem:[#allocation2 + $0x2e] sm:$0x1] %vm42_vm1, %v2878_v52  ;;  %v2890_v53 = vld [vmem:[%s668_s16] sm:$0x1]  ;;  %s2904_s10 = sld [smem:[#allocation5 + $0x381]]  ;;  %s2906_s22 = sld [smem:[#allocation5 + $0x382]] }
  0x49   :  { %670 = vst.msk [vmem:[#allocation2 + $0x2f] sm:$0x1] %vm42_vm1, %v2890_v53  ;;  %v896_v55 = vld [vmem:[#allocation2 + $0x20] sm:$0xff]  ;;  %s683_s29 = scalar_lea.vmem %s3410_s1, %s2121_s15  ;;  %s2912_s28 = sld [smem:[#allocation5 + $0x383]] }
  0x4a   :  { %2231 = vmatpush3.xpose.msk.msra.mxu0 %vm901_vm2, %v896_v55  ;;  %v684_v56 = vld [vmem:[%s683_s29] sm:$0x1]  ;;  %s690_s19 = scalar_lea.vmem %s3410_s1, %s2122_s30  ;;  %s704_s20 = scalar_lea.vmem %s3410_s1, %s2123_s12 }
  0x4b   :  { %2240 = vmatprep.subr.mxu0 %v2406_v0  ;;  %686 = vst.msk [vmem:[#allocation2 + $0x30] sm:$0x1] %vm42_vm1, %v684_v56  ;;  %v2925_v58 = vld [vmem:[%s690_s19] sm:$0x1]  ;;  %s718_s16 = scalar_lea.vmem %s3410_s1, %s2124_s11  ;;  %s732_s23 = scalar_lea.vmem %s3410_s1, %s2125_s24  ;;  %687 = vst.msk [vmem:[#allocation3 + $0x6] sm:$0x1] %vm42_vm1, %v684_v56 }
  0x4c   :  { %v2927_v59 = vld [vmem:[%s704_s20] sm:$0x1]  ;;  %692 = vst.msk [vmem:[#allocation2 + $0x31] sm:$0x1] %vm42_vm1, %v2925_v58  ;;  %s746_s24 = scalar_lea.vmem %s3410_s1, %s2894_s21  ;;  %s760_s0 = scalar_lea.vmem %s3410_s1, %s2896_s25 }
  0x4d   :  { %2233 = vmatmul.mubr.msk.f32.vlgmr.msra.gmra.mrb[4].mxu0 %vm901_vm2, %v896_v55  ;;  %706 = vst.msk [vmem:[#allocation2 + $0x32] sm:$0x1] %vm42_vm1, %v2927_v59  ;;  %v2941_v61 = vld [vmem:[%s718_s16] sm:$0x1]  ;;  %s774_s21 = scalar_lea.vmem %s3410_s1, %s2900_s17  ;;  %s789_s25 = scalar_lea.vmem %s3410_s1, %s2902_s8  ;;  %v485_v55 = vrot.slane %v2772_v37, %v2922_v57  ;;  %v697_v37 = vrot.slane %v2925_v58, %v2922_v57  ;;  %v393_v58 = vrot.slane %v2709_v29, %v2922_v57 }
  0x4e   :  { %v2943_v62 = vld [vmem:[%s732_s23] sm:$0x1]  ;;  %720 = vst.msk [vmem:[#allocation2 + $0x33] sm:$0x1] %vm42_vm1, %v2941_v61  ;;  %2242 = vmatprep.mubr.msk.f32.mxu0 %vm2407_vm0, %v2406_v0  ;;  %s796_s18 = scalar_lea.vmem %s3410_s1, %s2904_s10  ;;  %s810_s16 = scalar_lea.vmem %s3410_s1, %s2906_s22  ;;  %v711_v29 = vrot.slane %v2927_v59, %v2922_v57  ;;  %v301_v59 = vrot.slane %v2647_v21, %v2922_v57  ;;  %v725_v21 = vrot.slane %v2941_v61, %v2922_v57 }
  0x4f   :  { %734 = vst.msk [vmem:[#allocation2 + $0x34] sm:$0x1] %vm42_vm1, %v2943_v62  ;;  %v2958_v63 = vld [vmem:[%s746_s24] sm:$0x1]  ;;  %s824_s30 = scalar_lea.vmem %s3410_s1, %s2912_s28  ;;  %s2133_s23 = sld [smem:[#allocation5 + $0x384]]  ;;  %v633_v61 = vrot.slane %v2862_v49, %v2922_v57  ;;  %v114_v49 = vrot.slane %v2523_v6, %v2922_v57 }
  0x50   :  { %v897_v60 = vld [vmem:[#allocation2 + $0x28] sm:$0xff]  ;;  %v2960_v1 = vld [vmem:[%s760_s0] sm:$0x1]  ;;  %748 = vst.msk [vmem:[#allocation2 + $0x35] sm:$0x1] %vm42_vm1, %v2958_v63  ;;  %s2134_s22 = sld [smem:[#allocation5 + $0x385]] }
  0x51   :  { %2236 = vmatpush3.xpose.msk.msra.mxu1 %vm901_vm2, %v897_v60  ;;  %762 = vst.msk [vmem:[#allocation2 + $0x36] sm:$0x1] %vm42_vm1, %v2960_v1  ;;  %v2977_v9 = vld [vmem:[%s774_s21] sm:$0x1]  ;;  %s2135_s12 = sld [smem:[#allocation5 + $0x386]]  ;;  %s2136_s11 = sld [smem:[#allocation5 + $0x387]] }
  0x52   :  { %2245 = vmatprep.subr.mxu1 %v2406_v0  ;;  %v790_v13 = vld [vmem:[%s789_s25] sm:$0x1]  ;;  %776 = vst.msk [vmem:[#allocation2 + $0x37] sm:$0x1] %vm42_vm1, %v2977_v9  ;;  %s2408_s28 = smov 16   ;;  %s2411_s26 = smov 64  }
  0x53   :  { %792 = vst.msk [vmem:[#allocation2 + $0x38] sm:$0x1] %vm42_vm1, %v790_v13  ;;  %v797_v27 = vld [vmem:[%s796_s18] sm:$0x1]  ;;  %793 = vst.msk [vmem:[#allocation3 + $0x7] sm:$0x1] %vm42_vm1, %v790_v13  ;;  %274 = vrot.lane.b32.xlu1 %v273_v18, %s2408_s28  ;;  %55 = vrot.lane.b32.xlu0 %v54_v26, %s2408_s28  ;;  %v69_v13 = vrot.slane %v2506_v3, %v2922_v57  ;;  %v287_v26 = vrot.slane %v2632_v20, %v2922_v57 }
  0x54   :  { %v2994_v30 = vld [vmem:[%s810_s16] sm:$0x1]  ;;  %2238 = vmatmul.mubr.msk.f32.vlgmr.msra.gmra.mrb[4].mxu1 %vm901_vm2, %v897_v60  ;;  %798 = vst.msk [vmem:[#allocation2 + $0x39] sm:$0x1] %vm42_vm1, %v797_v27  ;;  %v803_v56 = vrot.slane %v797_v27, %v2922_v57  ;;  %v181_v60 = vrot.slane %v2564_v11, %v2922_v57  ;;  %v605_v3 = vrot.slane %v2844_v47, %v2922_v57  ;;  %s2410_s18 = smov 48   ;;  %s2412_s8 = smov 80  }
  0x55   :  { %812 = vst.msk [vmem:[#allocation2 + $0x3a] sm:$0x1] %vm42_vm1, %v2994_v30  ;;  %v3005_v2 = vld [vmem:[%s824_s30] sm:$0x1]  ;;  %2247 = vmatprep.mubr.msk.f32.mxu1 %vm2407_vm0, %v2406_v0  ;;  %s838_s29 = scalar_lea.vmem %s3410_s1, %s2133_s23  ;;  %v499_v11 = vrot.slane %v2774_v38, %v2922_v57  ;;  %v817_v20 = vrot.slane %v2994_v30, %v2922_v57  ;;  %v195_v47 = vrot.slane %v2566_v12, %v2922_v57  ;;  %s2413_s16 = smov 96  }
  0x56   :  { %826 = vst.msk [vmem:[#allocation2 + $0x3b] sm:$0x1] %vm42_vm1, %v3005_v2  ;;  %v3020_v45 = vld [vmem:[%s838_s29] sm:$0x1]  ;;  %s852_s19 = scalar_lea.vmem %s3410_s1, %s2134_s22  ;;  %v84_v38 = vrot.slane %v2508_v4, %v2922_v57  ;;  %v407_v27 = vrot.slane %v2723_v31, %v2922_v57  ;;  %v619_v12 = vrot.slane %v2860_v48, %v2922_v57  ;;  %v513_v4 = vrot.slane %v2786_v39, %v2922_v57  ;;  %s2414_s15 = smov 112  }
  0x57   :  { %s866_s14 = scalar_lea.vmem %s3410_s1, %s2135_s12  ;;  %380 = vrot.lane.b32.xlu1 %v379_v19, %s2408_s28  ;;  %168 = vrot.lane.b32.xlu0 %v167_v36, %s2408_s28  ;;  %840 = vst.msk [vmem:[#allocation2 + $0x3c] sm:$0x1] %vm42_vm1, %v3020_v45  ;;  %v3035_v28 = vld [vmem:[%s852_s19] sm:$0x1]  ;;  %s880_s20 = scalar_lea.vmem %s3410_s1, %s2136_s11  ;;  %v831_v31 = vrot.slane %v3005_v2, %v2922_v57  ;;  %v209_v48 = vrot.slane %v2591_v14, %v2922_v57 }
  0x58   :  { %v3037_v50 = vld [vmem:[%s866_s14] sm:$0x1]  ;;  %854 = vst.msk [vmem:[#allocation2 + $0x3d] sm:$0x1] %vm42_vm1, %v3035_v28  ;;  %s2409_s1 = smov 32   ;;  %v99_v39 = vrot.slane %v2521_v5, %v2922_v57  ;;  %v421_v30 = vrot.slane %v2725_v32, %v2922_v57  ;;  %v315_v2 = vrot.slane %v2649_v22, %v2922_v57  ;;  %v527_v14 = vrot.slane %v2805_v41, %v2922_v57  ;;  %s2419_s22 = smov 24  }
  0x59   :  { %v898_v40 = vld [vmem:[#allocation2 + $0x30] sm:$0xff]  ;;  %868 = vst.msk [vmem:[#allocation2 + $0x3e] sm:$0x1] %vm42_vm1, %v3037_v50  ;;  %v3048_v46 = vld [vmem:[%s880_s20] sm:$0x1]  ;;  %v845_v5 = vrot.slane %v3020_v45, %v2922_v57  ;;  %v739_v32 = vrot.slane %v2943_v62, %v2922_v57  ;;  %v223_v22 = vrot.slane %v2601_v15, %v2922_v57  ;;  %v435_v41 = vrot.slane %v2740_v33, %v2922_v57  ;;  %s2420_s12 = smov 40  }
  0x5a   :  { %2241 = vmatpush3.xpose.msk.msra.mxu0 %vm901_vm2, %v898_v40  ;;  %882 = vst.msk [vmem:[#allocation2 + $0x3f] sm:$0x1] %vm42_vm1, %v3048_v46  ;;  %v329_v19 = vrot.slane %v2665_v23, %v2922_v57  ;;  %v647_v62 = vrot.slane %v2876_v51, %v2922_v57  ;;  %v541_v15 = vrot.slane %v2816_v42, %v2922_v57  ;;  %s2421_s11 = smov 56   ;;  %vm1687_vm1 = vcmask 523264   ;;  %s3421_s10 = sld [smem:[#allocation8_spill]] }
  0x5b   :  { %592 = vrot.lane.b32.xlu1 %v591_v10, %s2408_s28  ;;  %486 = vrot.lane.b32.xlu0 %v485_v55, %s2408_s28  ;;  %v859_v6 = vrot.slane %v3035_v28, %v2922_v57  ;;  %v753_v33 = vrot.slane %v2958_v63, %v2922_v57  ;;  %v237_v23 = vrot.slane %v2603_v16, %v2922_v57  ;;  %v1665_v55 = vld [vmem:[%s3411_s2 + $0x10] sm:$0xff]  ;;  %s3422_s23 = sld [smem:[#allocation9_spill]] }
  0x5c   :  { %v129_v51 = vrot.slane %v2535_v7, %v2922_v57  ;;  %v449_v42 = vrot.slane %v2742_v34, %v2922_v57  ;;  %v343_v36 = vrot.slane %v2667_v24, %v2922_v57  ;;  %v661_v63 = vrot.slane %v2878_v52, %v2922_v57 }
  0x5d   :  { %2243 = vmatmul.mubr.msk.f32.vlgmr.msra.gmra.mrb[6].mxu0 %vm901_vm2, %v898_v40  ;;  %v555_v16 = vrot.slane %v2818_v43, %v2922_v57  ;;  %v873_v7 = vrot.slane %v3037_v50, %v2922_v57  ;;  %v767_v34 = vrot.slane %v2960_v1, %v2922_v57  ;;  %v251_v24 = vrot.slane %v2616_v17, %v2922_v57 }
  0x5e   :  { %2266 = vmatprep.mubr.msk.f32.mxu0 %vm2407_vm0, %v2406_v0  ;;  %v144_v52 = vrot.slane %v2537_v8, %v2922_v57  ;;  %v463_v43 = vrot.slane %v2758_v35, %v2922_v57  ;;  %v357_v40 = vrot.slane %v2677_v25, %v2922_v57  ;;  %v675_v1 = vrot.slane %v2890_v53, %v2922_v57 }
  0x5f   :  { %804 = vrot.lane.b32.xlu1 %v803_v56, %s2408_s28  ;;  %698 = vrot.lane.b32.xlu0 %v697_v37, %s2408_s28  ;;  %v569_v17 = vrot.slane %v2831_v44, %v2922_v57  ;;  %v887_v8 = vrot.slane %v3048_v46, %v2922_v57  ;;  %v781_v35 = vrot.slane %v2977_v9, %v2922_v57  ;;  %v1663_v57 = vld [vmem:[%s3411_s2] sm:$0xff]  ;;  %v1664_v9 = vld [vmem:[%s3411_s2 + $0x8] sm:$0xff]  ;;  %v2415_v37 = vmov 0.0|0.0  }
  0x60   :  { %v2339_v50 = vpack.c.bf16 %v1664_v9, %v1663_v57  ;;  %v1666_v46 = vld [vmem:[%s3411_s2 + $0x18] sm:$0xff]  ;;  %2326 = vmatprep.subr.bf16.mxu0 %v2415_v37  ;;  %v2416_v57 = vmov 1983009808  }
  0x61   :  { %v899_v18 = vld [vmem:[#allocation2 + $0x38] sm:$0xff]  ;;  %v1489_v9 = vunpack.c.l.s4 %v2416_v57 }
  0x62   :  { %2246 = vmatpush3.xpose.msk.msra.mxu1 %vm901_vm2, %v899_v18 }
  0x63   :  { %182 = vrot.lane.b32.xlu1 %v181_v60, %s2409_s1  ;;  %70 = vrot.lane.b32.xlu0 %v69_v13, %s2409_s1  ;;  %v2342_v13 = vpack.c.bf16 %v1666_v46, %v1665_v55 }
  0x64   :  { %2338 = vmatprep.subr.bf16.mxu1 %v2415_v37 }
  0x65   :  { %2248 = vmatmul.mubr.msk.f32.vlgmr.msra.gmra.mrb[6].mxu1 %vm901_vm2, %v899_v18  ;;  %v1667_v18 = vld [vmem:[%s3411_s2 + $0x20] sm:$0xff] }
  0x66   :  { %2301 = vmatprep.mubr.msk.f32.mxu1 %vm2407_vm0, %v2406_v0  ;;  %2340 = vmatpush3.bf16.msra.mxu1 %v2339_v50 }
  0x67   :  { %394 = vrot.lane.b32.xlu1 %v393_v58, %s2409_s1  ;;  %288 = vrot.lane.b32.xlu0 %v287_v26, %s2409_s1  ;;  %v1668_v58 = vld [vmem:[%s3411_s2 + $0x28] sm:$0xff]  ;;  %v1679_v26 = vld [vmem:[%s3412_s3] sm:$0xff] }
  0x68   :  { %2341 = vmatprep.subr.bf16.mxu1 %v2415_v37 }
  0x6a   :  { %2343 = vmatpush3.bf16.msra.mxu1 %v2342_v13 }
  0x6b   :  { %606 = vrot.lane.b32.xlu1 %v605_v3, %s2409_s1  ;;  %500 = vrot.lane.b32.xlu0 %v499_v11, %s2409_s1  ;;  %v1680_v11 = vld [vmem:[%s3412_s3 + $0x8] sm:$0xff] }
  0x6c   :  { %2344 = vmatprep.subr.bf16.mxu1 %v2415_v37 }
  0x6f   :  { %818 = vrot.lane.b32.xlu1 %v817_v20, %s2409_s1  ;;  %712 = vrot.lane.b32.xlu0 %v711_v29, %s2409_s1  ;;  %v2345_v29 = vpack.c.bf16 %v1668_v58, %v1667_v18  ;;  %v1490_v18 = vunpack.c.0.s8 %v1489_v9  ;;  %v1683_v9 = vld [vmem:[%s3412_s3 + $0x20] sm:$0xff] }
  0x71   :  { %2346 = vmatpush3.bf16.msra.mxu1 %v2345_v29 }
  0x72   :  { %2347 = vmatprep.subr.bf16.mxu1 %v2415_v37 }
  0x73   :  { %196 = vrot.lane.b32.xlu1 %v195_v47, %s2410_s18  ;;  %85 = vrot.lane.b32.xlu0 %v84_v38, %s2410_s18  ;;  %v2327_v47 = vpack.c.bf16 %v1680_v11, %v1679_v26  ;;  %v1669_v38 = vld [vmem:[%s3411_s2 + $0x30] sm:$0xff] }
  0x75   :  { %2328 = vmatpush3.bf16.msra.mxu0 %v2327_v47 }
  0x76   :  { %2329 = vmatprep.subr.bf16.mxu0 %v2415_v37 }
  0x77   :  { %408 = vrot.lane.b32.xlu1 %v407_v27, %s2410_s18  ;;  %302 = vrot.lane.b32.xlu0 %v301_v59, %s2410_s18  ;;  %v1670_v27 = vld [vmem:[%s3411_s2 + $0x38] sm:$0xff] }
  0x7b   :  { %620 = vrot.lane.b32.xlu1 %v619_v12, %s2410_s18  ;;  %514 = vrot.lane.b32.xlu0 %v513_v4, %s2410_s18  ;;  %v2348_v4 = vpack.c.bf16 %v1670_v27, %v1669_v38 }
  0x7d   :  { %2349 = vmatpush3.bf16.msra.mxu1 %v2348_v4 }
  0x7e   :  { %2350 = vmatprep.subr.bf16.mxu1 %v2415_v37 }
  0x7f   :  { %832 = vrot.lane.b32.xlu1 %v831_v31, %s2410_s18  ;;  %726 = vrot.lane.b32.xlu0 %v725_v21, %s2410_s18  ;;  %v1671_v31 = vld [vmem:[%s3411_s2 + $0x40] sm:$0xff]  ;;  %v1672_v21 = vld [vmem:[%s3411_s2 + $0x48] sm:$0xff] }
  0x83   :  { %210 = vrot.lane.b32.xlu1 %v209_v48, %s2411_s26  ;;  %100 = vrot.lane.b32.xlu0 %v99_v39, %s2411_s26 }
  0x87   :  { %422 = vrot.lane.b32.xlu1 %v421_v30, %s2411_s26  ;;  %316 = vrot.lane.b32.xlu0 %v315_v2, %s2411_s26  ;;  %v2351_v30 = vpack.c.bf16 %v1672_v21, %v1671_v31  ;;  %v1673_v2 = vld [vmem:[%s3411_s2 + $0x50] sm:$0xff] }
  0x89   :  { %2352 = vmatpush3.bf16.msra.mxu1 %v2351_v30 }
  0x8a   :  { %2353 = vmatprep.subr.bf16.mxu1 %v2415_v37 }
  0x8b   :  { %634 = vrot.lane.b32.xlu1 %v633_v61, %s2411_s26  ;;  %528 = vrot.lane.b32.xlu0 %v527_v14, %s2411_s26  ;;  %v1674_v61 = vld [vmem:[%s3411_s2 + $0x58] sm:$0xff] }
  0x8f   :  { %846 = vrot.lane.b32.xlu1 %v845_v5, %s2411_s26  ;;  %740 = vrot.lane.b32.xlu0 %v739_v32, %s2411_s26  ;;  %v2354_v32 = vpack.c.bf16 %v1674_v61, %v1673_v2 }
  0x91   :  { %2355 = vmatpush3.bf16.msra.mxu1 %v2354_v32 }
  0x92   :  { %2356 = vmatprep.subr.bf16.mxu1 %v2415_v37 }
  0x93   :  { %224 = vrot.lane.b32.xlu1 %v223_v22, %s2412_s8  ;;  %115 = vrot.lane.b32.xlu0 %v114_v49, %s2412_s8  ;;  %v1675_v22 = vld [vmem:[%s3411_s2 + $0x60] sm:$0xff]  ;;  %v1676_v49 = vld [vmem:[%s3411_s2 + $0x68] sm:$0xff] }
  0x97   :  { %436 = vrot.lane.b32.xlu1 %v435_v41, %s2412_s8  ;;  %330 = vrot.lane.b32.xlu0 %v329_v19, %s2412_s8 }
  0x9b   :  { %648 = vrot.lane.b32.xlu1 %v647_v62, %s2412_s8  ;;  %542 = vrot.lane.b32.xlu0 %v541_v15, %s2412_s8  ;;  %v2357_v62 = vpack.c.bf16 %v1676_v49, %v1675_v22  ;;  %v1677_v15 = vld [vmem:[%s3411_s2 + $0x70] sm:$0xff] }
  0x9d   :  { %2358 = vmatpush3.bf16.msra.mxu1 %v2357_v62 }
  0x9e   :  { %2359 = vmatprep.subr.bf16.mxu1 %v2415_v37 }
  0x9f   :  { %860 = vrot.lane.b32.xlu1 %v859_v6, %s2412_s8  ;;  %754 = vrot.lane.b32.xlu0 %v753_v33, %s2412_s8  ;;  %v1678_v6 = vld [vmem:[%s3411_s2 + $0x78] sm:$0xff] }
  0xa3   :  { %238 = vrot.lane.b32.xlu1 %v237_v23, %s2413_s16  ;;  %130 = vrot.lane.b32.xlu0 %v129_v51, %s2413_s16  ;;  %v2360_v51 = vpack.c.bf16 %v1678_v6, %v1677_v15 }
  0xa5   :  { %2361 = vmatpush3.bf16.msra.mxu1 %v2360_v51 }
  0xa7   :  { %450 = vrot.lane.b32.xlu1 %v449_v42, %s2413_s16  ;;  %344 = vrot.lane.b32.xlu0 %v343_v36, %s2413_s16 }
  0xab   :  { %662 = vrot.lane.b32.xlu1 %v661_v63, %s2413_s16  ;;  %556 = vrot.lane.b32.xlu0 %v555_v16, %s2413_s16 }
  0xaf   :  { %874 = vrot.lane.b32.xlu1 %v873_v7, %s2413_s16  ;;  %768 = vrot.lane.b32.xlu0 %v767_v34, %s2413_s16 }
  0xb3   :  { %252 = vrot.lane.b32.xlu1 %v251_v24, %s2414_s15  ;;  %145 = vrot.lane.b32.xlu0 %v144_v52, %s2414_s15 }
  0xb7   :  { %464 = vrot.lane.b32.xlu1 %v463_v43, %s2414_s15  ;;  %358 = vrot.lane.b32.xlu0 %v357_v40, %s2414_s15 }
  0xbb   :  { %676 = vrot.lane.b32.xlu1 %v675_v1, %s2414_s15  ;;  %570 = vrot.lane.b32.xlu0 %v569_v17, %s2414_s15 }
  0xbf   :  { %888 = vrot.lane.b32.xlu1 %v887_v8, %s2414_s15  ;;  %782 = vrot.lane.b32.xlu0 %v781_v35, %s2414_s15 }
  0xc5   :  { %v275_v25 = vpop.permute.xlu1 %274  ;;  %v56_v45 = vpop.permute.xlu0 %55 }
  0xc6   :  { %277 = vst.msk [vmem:[#allocation3 + $0x2] sm:$0x1] %vm58_vm3, %v275_v25  ;;  %59 = vst.msk [vmem:[#allocation3] sm:$0x1] %vm58_vm3, %v56_v45 }
  0xc9   :  { %v381_v53 = vpop.permute.xlu1 %380  ;;  %v169_v10 = vpop.permute.xlu0 %168 }
  0xca   :  { %383 = vst.msk [vmem:[#allocation3 + $0x3] sm:$0x1] %vm58_vm3, %v381_v53  ;;  %171 = vst.msk [vmem:[#allocation3 + $0x1] sm:$0x1] %vm58_vm3, %v169_v10 }
  0xcd   :  { %v593_v44 = vpop.permute.xlu1 %592  ;;  %v487_v28 = vpop.permute.xlu0 %486 }
  0xce   :  { %595 = vst.msk [vmem:[#allocation3 + $0x5] sm:$0x1] %vm58_vm3, %v593_v44  ;;  %489 = vst.msk [vmem:[#allocation3 + $0x4] sm:$0x1] %vm58_vm3, %v487_v28 }
  0xd1   :  { %v805_v56 = vpop.permute.xlu1 %804  ;;  %v699_v60 = vpop.permute.xlu0 %698 }
  0xd2   :  { %807 = vst.msk [vmem:[#allocation3 + $0x7] sm:$0x1] %vm58_vm3, %v805_v56  ;;  %701 = vst.msk [vmem:[#allocation3 + $0x6] sm:$0x1] %vm58_vm3, %v699_v60 }
  0xd5   :  { %v183_v3 = vpop.permute.xlu1 %182  ;;  %v71_v20 = vpop.permute.xlu0 %70 }
  0xd6   :  { %185 = vst.msk [vmem:[#allocation3 + $0x1] sm:$0x1] %vm73_vm4, %v183_v3  ;;  %74 = vst.msk [vmem:[#allocation3] sm:$0x1] %vm73_vm4, %v71_v20  ;;  %v3282_v3 = vsub.s32 %v1490_v18, %v2898_v54 }
  0xd9   :  { %v395_v59 = vpop.permute.xlu1 %394  ;;  %v289_v12 = vpop.permute.xlu0 %288 }
  0xda   :  { %397 = vst.msk [vmem:[#allocation3 + $0x3] sm:$0x1] %vm73_vm4, %v395_v59  ;;  %291 = vst.msk [vmem:[#allocation3 + $0x2] sm:$0x1] %vm73_vm4, %v289_v12 }
  0xdd   :  { %v607_v48 = vpop.permute.xlu1 %606  ;;  %v501_v39 = vpop.permute.xlu0 %500 }
  0xde   :  { %609 = vst.msk [vmem:[#allocation3 + $0x5] sm:$0x1] %vm73_vm4, %v607_v48  ;;  %503 = vst.msk [vmem:[#allocation3 + $0x4] sm:$0x1] %vm73_vm4, %v501_v39 }
  0xe1   :  { %v819_v14 = vpop.permute.xlu1 %818  ;;  %v713_v5 = vpop.permute.xlu0 %712 }
  0xe2   :  { %821 = vst.msk [vmem:[#allocation3 + $0x7] sm:$0x1] %vm73_vm4, %v819_v14  ;;  %715 = vst.msk [vmem:[#allocation3 + $0x6] sm:$0x1] %vm73_vm4, %v713_v5 }
  0xe5   :  { %v197_v41 = vpop.permute.xlu1 %196  ;;  %v86_v19 = vpop.permute.xlu0 %85 }
  0xe6   :  { %199 = vst.msk [vmem:[#allocation3 + $0x1] sm:$0x1] %vm88_vm5, %v197_v41  ;;  %89 = vst.msk [vmem:[#allocation3] sm:$0x1] %vm88_vm5, %v86_v19 }
  0xe9   :  { %v409_v33 = vpop.permute.xlu1 %408  ;;  %v303_v23 = vpop.permute.xlu0 %302 }
  0xea   :  { %411 = vst.msk [vmem:[#allocation3 + $0x3] sm:$0x1] %vm88_vm5, %v409_v33  ;;  %305 = vst.msk [vmem:[#allocation3 + $0x2] sm:$0x1] %vm88_vm5, %v303_v23 }
  0xed   :  { %v621_v42 = vpop.permute.xlu1 %620  ;;  %v515_v36 = vpop.permute.xlu0 %514 }
  0xee   :  { %623 = vst.msk [vmem:[#allocation3 + $0x5] sm:$0x1] %vm88_vm5, %v621_v42  ;;  %517 = vst.msk [vmem:[#allocation3 + $0x4] sm:$0x1] %vm88_vm5, %v515_v36 }
  0xf1   :  { %v833_v63 = vpop.permute.xlu1 %832  ;;  %v727_v16 = vpop.permute.xlu0 %726 }
  0xf2   :  { %835 = vst.msk [vmem:[#allocation3 + $0x7] sm:$0x1] %vm88_vm5, %v833_v63  ;;  %729 = vst.msk [vmem:[#allocation3 + $0x6] sm:$0x1] %vm88_vm5, %v727_v16 }
  0xf5   :  { %v211_v7 = vpop.permute.xlu1 %210  ;;  %v101_v34 = vpop.permute.xlu0 %100 }
  0xf6   :  { %213 = vst.msk [vmem:[#allocation3 + $0x1] sm:$0x1] %vm103_vm6, %v211_v7  ;;  %104 = vst.msk [vmem:[#allocation3] sm:$0x1] %vm103_vm6, %v101_v34 }
  0xf9   :  { %v423_v24 = vpop.permute.xlu1 %422  ;;  %v317_v52 = vpop.permute.xlu0 %316 }
  0xfa   :  { %425 = vst.msk [vmem:[#allocation3 + $0x3] sm:$0x1] %vm103_vm6, %v423_v24  ;;  %319 = vst.msk [vmem:[#allocation3 + $0x2] sm:$0x1] %vm103_vm6, %v317_v52  ;;  %v2417_v24 = vmov 1934713408  }
  0xfb   :  { %v1553_v52 = vunpack.c.l.s4 %v2417_v24  ;;  %v1842_v24 = vld [vmem:[%s3414_s5 + $0x10] sm:$0xff] }
  0xfd   :  { %v971_v43 = vpop.f32.mrb[0].mxu0  ;;  %v635_v40 = vpop.permute.xlu1 %634 }
  0xfe   :  { %v2214_v1 = vpop.f32.mrb[1].mxu0  ;;  %637 = vst.msk [vmem:[#allocation3 + $0x5] sm:$0x1] %vm103_vm6, %v635_v40  ;;  %v529_v17 = vpop.permute.xlu0 %528  ;;  %v1554_v40 = vunpack.c.0.s8 %v1553_v52  ;;  %v1843_v52 = vld [vmem:[%s3414_s5 + $0x18] sm:$0xff] }
  0xff   :  { %531 = vst.msk [vmem:[#allocation3 + $0x4] sm:$0x1] %vm103_vm6, %v529_v17  ;;  %v1681_v1 = vld [vmem:[%s3412_s3 + $0x10] sm:$0xff]  ;;  %v1682_v17 = vld [vmem:[%s3412_s3 + $0x18] sm:$0xff] }
 0x101   :  { %v847_v8 = vpop.permute.xlu1 %846 }
 0x102   :  { %849 = vst.msk [vmem:[#allocation3 + $0x7] sm:$0x1] %vm103_vm6, %v847_v8  ;;  %v741_v35 = vpop.permute.xlu0 %740  ;;  %v2330_v8 = vpack.c.bf16 %v1682_v17, %v1681_v1  ;;  %v2154_v1 = vld [vmem:[%s3413_s4] ss:$0 sm:$0xff] }
 0x103   :  { %743 = vst.msk [vmem:[#allocation3 + $0x6] sm:$0x1] %vm103_vm6, %v741_v35 }
 0x104   :  { %2331 = vmatpush3.bf16.msra.mxu0 %v2330_v8 }
 0x105   :  { %v225_v25 = vpop.permute.xlu1 %224  ;;  %2332 = vmatprep.subr.bf16.mxu0 %v2415_v37 }
 0x106   :  { %227 = vst.msk [vmem:[#allocation3 + $0x1] sm:$0x1] %vm118_vm7, %v225_v25  ;;  %v116_v45 = vpop.permute.xlu0 %115  ;;  %v1044_v53 = vpop.f32.mrb[0].mxu1 }
 0x107   :  { %119 = vst.msk [vmem:[#allocation3] sm:$0x1] %vm118_vm7, %v116_v45  ;;  %v2219_v10 = vpop.f32.mrb[1].mxu1 }
 0x109   :  { %v437_v44 = vpop.permute.xlu1 %436 }
 0x10a   :  { %439 = vst.msk [vmem:[#allocation3 + $0x3] sm:$0x1] %vm118_vm7, %v437_v44  ;;  %v331_v28 = vpop.permute.xlu0 %330 }
 0x10b   :  { %333 = vst.msk [vmem:[#allocation3 + $0x2] sm:$0x1] %vm118_vm7, %v331_v28  ;;  %v1557_v28 = vsub.s32 %v1554_v40, %v2898_v54 }
 0x10d   :  { %v649_v60 = vpop.permute.xlu1 %648 }
 0x10e   :  { %v1117_v50 = vpop.f32.mrb[2].mxu0  ;;  %651 = vst.msk [vmem:[#allocation3 + $0x5] sm:$0x1] %vm118_vm7, %v649_v60  ;;  %v543_v13 = vpop.permute.xlu0 %542 }
 0x10f   :  { %v1486_v55 = vcombine.low %v971_v43, %v1117_v50  ;;  %v1487_v46 = vcombine.high %v971_v43, %v1117_v50  ;;  %v2224_v56 = vpop.f32.mrb[3].mxu0  ;;  %545 = vst.msk [vmem:[#allocation3 + $0x4] sm:$0x1] %vm118_vm7, %v543_v13  ;;  %v1684_v50 = vld [vmem:[%s3412_s3 + $0x28] sm:$0xff] }
 0x110   :  { %v2333_v56 = vpack.c.bf16 %v1684_v50, %v1683_v9  ;;  %v2155_v9 = vld [vmem:[%s3415_s6] ss:$0 sm:$0xff] }
 0x111   :  { %v861_v58 = vpop.permute.xlu1 %860  ;;  %v3287_v47 = vrot.slane %v1486_v55, %v3282_v3  ;;  %v3290_v38 = vrot.slane %v1487_v46, %v3282_v3 }
 0x112   :  { %863 = vst.msk [vmem:[#allocation3 + $0x7] sm:$0x1] %vm118_vm7, %v861_v58  ;;  %v755_v26 = vpop.permute.xlu0 %754  ;;  %2334 = vmatpush3.bf16.msra.mxu0 %v2333_v56 }
 0x113   :  { %757 = vst.msk [vmem:[#allocation3 + $0x6] sm:$0x1] %vm118_vm7, %v755_v26  ;;  %2335 = vmatprep.subr.bf16.mxu0 %v2415_v37 }
 0x115   :  { %v239_v11 = vpop.permute.xlu1 %238 }
 0x116   :  { %v1190_v20 = vpop.f32.mrb[2].mxu1  ;;  %241 = vst.msk [vmem:[#allocation3 + $0x1] sm:$0x1] %vm133_vm8, %v239_v11  ;;  %v131_v29 = vpop.permute.xlu0 %130 }
 0x117   :  { %v1502_v27 = vcombine.low %v1044_v53, %v1190_v20  ;;  %v1503_v59 = vcombine.high %v1044_v53, %v1190_v20  ;;  %v2229_v12 = vpop.f32.mrb[3].mxu1  ;;  %134 = vst.msk [vmem:[#allocation3] sm:$0x1] %vm133_vm8, %v131_v29  ;;  %v1686_v20 = vld [vmem:[%s3412_s3 + $0x38] sm:$0xff] }
 0x119   :  { %v3294_v4 = vrot.slane %v1502_v27, %v3282_v3  ;;  %v3297_v31 = vrot.slane %v1503_v59, %v3282_v3  ;;  %v451_v21 = vpop.permute.xlu1 %450 }
 0x11a   :  { %453 = vst.msk [vmem:[#allocation3 + $0x3] sm:$0x1] %vm133_vm8, %v451_v21  ;;  %v345_v48 = vpop.permute.xlu0 %344 }
 0x11b   :  { %v1550_v39 = vcombine.low %v3287_v47, %v3294_v4  ;;  %v1551_v30 = vcombine.high %v3287_v47, %v3294_v4  ;;  %v1566_v2 = vcombine.low %v3290_v38, %v3297_v31  ;;  %v1567_v61 = vcombine.high %v3290_v38, %v3297_v31  ;;  %347 = vst.msk [vmem:[#allocation3 + $0x2] sm:$0x1] %vm133_vm8, %v345_v48 }
 0x11d   :  { %v663_v14 = vpop.permute.xlu1 %662  ;;  %v1565_v58 = vrot.slane %v1551_v30, %v1557_v28  ;;  %v1558_v26 = vrot.slane %v1550_v39, %v1557_v28  ;;  %v1574_v11 = vrot.slane %v1566_v2, %v1557_v28  ;;  %v1581_v47 = vrot.slane %v1567_v61, %v1557_v28 }
 0x11e   :  { %665 = vst.msk [vmem:[#allocation3 + $0x5] sm:$0x1] %vm133_vm8, %v663_v14  ;;  %v557_v5 = vpop.permute.xlu0 %556 }
 0x11f   :  { %559 = vst.msk [vmem:[#allocation3 + $0x4] sm:$0x1] %vm133_vm8, %v557_v5 }
 0x120   :  { %v1263_v32 = vpop.f32.mrb[4].mxu0 }
 0x121   :  { %v2234_v22 = vpop.f32.mrb[5].mxu0  ;;  %v875_v49 = vpop.permute.xlu1 %874 }
 0x122   :  { %877 = vst.msk [vmem:[#allocation3 + $0x7] sm:$0x1] %vm133_vm8, %v875_v49  ;;  %v769_v41 = vpop.permute.xlu0 %768 }
 0x123   :  { %771 = vst.msk [vmem:[#allocation3 + $0x6] sm:$0x1] %vm133_vm8, %v769_v41 }
 0x125   :  { %v253_v15 = vpop.permute.xlu1 %252 }
 0x126   :  { %255 = vst.msk [vmem:[#allocation3 + $0x1] sm:$0x1] %vm148_vm9, %v253_v15  ;;  %v146_v6 = vpop.permute.xlu0 %145 }
 0x127   :  { %v1336_v19 = vpop.f32.mrb[4].mxu1  ;;  %149 = vst.msk [vmem:[#allocation3] sm:$0x1] %vm148_vm9, %v146_v6 }
 0x128   :  { %v2239_v62 = vpop.f32.mrb[5].mxu1 }
 0x129   :  { %v465_v33 = vpop.permute.xlu1 %464 }
 0x12a   :  { %467 = vst.msk [vmem:[#allocation3 + $0x3] sm:$0x1] %vm148_vm9, %v465_v33  ;;  %v359_v23 = vpop.permute.xlu0 %358 }
 0x12b   :  { %361 = vst.msk [vmem:[#allocation3 + $0x2] sm:$0x1] %vm148_vm9, %v359_v23 }
 0x12d   :  { %v677_v51 = vpop.permute.xlu1 %676 }
 0x12e   :  { %679 = vst.msk [vmem:[#allocation3 + $0x5] sm:$0x1] %vm148_vm9, %v677_v51  ;;  %v571_v36 = vpop.permute.xlu0 %570 }
 0x12f   :  { %573 = vst.msk [vmem:[#allocation3 + $0x4] sm:$0x1] %vm148_vm9, %v571_v36 }
 0x130   :  { %v1409_v42 = vpop.f32.mrb[6].mxu0 }
 0x131   :  { %v1518_v63 = vcombine.low %v1263_v32, %v1409_v42  ;;  %v1519_v16 = vcombine.high %v1263_v32, %v1409_v42  ;;  %v2244_v7 = vpop.f32.mrb[7].mxu0  ;;  %v889_v34 = vpop.permute.xlu1 %888 }
 0x132   :  { %891 = vst.msk [vmem:[#allocation3 + $0x7] sm:$0x1] %vm148_vm9, %v889_v34  ;;  %v783_v43 = vpop.permute.xlu0 %782  ;;  %v1841_v7 = vld [vmem:[%s3414_s5 + $0x8] sm:$0xff] }
 0x133   :  { %785 = vst.msk [vmem:[#allocation3 + $0x6] sm:$0x1] %vm148_vm9, %v783_v43  ;;  %v1526_v25 = vrot.slane %v1518_v63, %v3282_v3  ;;  %v1533_v45 = vrot.slane %v1519_v16, %v3282_v3  ;;  %v1840_v16 = vld [vmem:[%s3414_s5] sm:$0xff]  ;;  %v2366_v43 = vpack.c.bf16 %v1843_v52, %v1842_v24 }
 0x134   :  { %v2363_v34 = vpack.c.bf16 %v1841_v7, %v1840_v16 }
 0x138   :  { %v1482_v35 = vpop.f32.mrb[6].mxu1 }
 0x139   :  { %v1534_v53 = vcombine.low %v1336_v19, %v1482_v35  ;;  %v1535_v10 = vcombine.high %v1336_v19, %v1482_v35  ;;  %v2249_v44 = vpop.f32.mrb[7].mxu1  ;;  %v1925_v35 = vld [vmem:[%s3416_s7] sm:$0xff] }
 0x13a   :  { %v900_v57 = vld [vmem:[#allocation3] sm:$0xff]  ;;  %v1927_v44 = vld [vmem:[%s3416_s7 + $0x10] sm:$0xff] }
 0x13b   :  { %v1542_v55 = vrot.slane %v1534_v53, %v3282_v3  ;;  %v1549_v46 = vrot.slane %v1535_v10, %v3282_v3  ;;  %2302 = vmatmul.mubr.f32.vlgmr.msra.gmra.mrb[8].mxu1 %v900_v57  ;;  %v1685_v3 = vld [vmem:[%s3412_s3 + $0x30] sm:$0xff]  ;;  %s2418_s3 = smov 8  }
 0x13c   :  { %v2336_v4 = vpack.c.bf16 %v1686_v20, %v1685_v3 }
 0x13d   :  { %v1582_v60 = vcombine.low %v1526_v25, %v1542_v55  ;;  %v1583_v13 = vcombine.high %v1526_v25, %v1542_v55  ;;  %v1598_v54 = vcombine.low %v1533_v45, %v1549_v46  ;;  %v1599_v18 = vcombine.high %v1533_v45, %v1549_v46  ;;  %v1926_v25 = vld [vmem:[%s3416_s7 + $0x8] sm:$0xff] }
 0x13e   :  { %2337 = vmatpush3.bf16.msra.mxu0 %v2336_v4  ;;  %v2369_v53 = vpack.c.bf16 %v1926_v25, %v1925_v35 }
 0x13f   :  { %v1597_v29 = vrot.slane %v1583_v13, %v1557_v28  ;;  %v1590_v27 = vrot.slane %v1582_v60, %v1557_v28  ;;  %v1606_v59 = vrot.slane %v1598_v54, %v1557_v28  ;;  %v1613_v12 = vrot.slane %v1599_v18, %v1557_v28  ;;  %2362 = vmatprep.subr.bf16.mxu0 %v2415_v37  ;;  %v1928_v28 = vld [vmem:[%s3416_s7 + $0x18] sm:$0xff] }
 0x140   :  { %v2372_v57 = vpack.c.bf16 %v1928_v28, %v1927_v44 }
 0x141   :  { %v1616_v21 = vcombine.low %v1565_v58, %v1597_v29  ;;  %v1615_v48 = vcombine.high %v1558_v26, %v1590_v27  ;;  %v1618_v39 = vcombine.low %v1574_v11, %v1606_v59  ;;  %v1617_v30 = vcombine.high %v1565_v58, %v1597_v29 }
 0x142   :  { %v1620_v2 = vcombine.low %v1581_v47, %v1613_v12  ;;  %v1619_v14 = vcombine.high %v1574_v11, %v1606_v59  ;;  %v1621_v5 = vcombine.high %v1581_v47, %v1613_v12  ;;  %v1614_v32 = vcombine.low %v1558_v26, %v1590_v27 }
 0x143   :  { %1627 = vrot.lane.b32.xlu1 %v1616_v21, %s2408_s28  ;;  %1623 = vrot.lane.b32.xlu0 %v1615_v48, %s2418_s3 }
 0x147   :  { %1635 = vrot.lane.b32.xlu1 %v1618_v39, %s2409_s1  ;;  %1631 = vrot.lane.b32.xlu0 %v1617_v30, %s2419_s22 }
 0x14b   :  { %1643 = vrot.lane.b32.xlu1 %v1620_v2, %s2410_s18  ;;  %1639 = vrot.lane.b32.xlu0 %v1619_v14, %s2420_s12 }
 0x14f   :  { %1647 = vrot.lane.b32.xlu0 %v1621_v5, %s2421_s11 }
 0x1b5   :  { %v1628_v38 = vpop.permute.xlu1 %1627  ;;  %v1624_v31 = vpop.permute.xlu0 %1623 }
 0x1b6   :  { %v1651_v61 = vsel %vm1650_vm10, %v1614_v32, %v1624_v31 }
 0x1b7   :  { %v1652_v41 = vsel %vm901_vm2, %v1651_v61, %v1628_v38 }
 0x1b9   :  { %v1636_v22 = vpop.permute.xlu1 %1635  ;;  %v1632_v49 = vpop.permute.xlu0 %1631 }
 0x1ba   :  { %v1654_v19 = vsel %vm1653_vm11, %v1652_v41, %v1632_v49 }
 0x1bb   :  { %v1656_v15 = vsel %vm1655_vm12, %v1654_v19, %v1636_v22 }
 0x1bd   :  { %v1640_v62 = vpop.permute.xlu0 %1639  ;;  %v1644_v6 = vpop.permute.xlu1 %1643 }
 0x1be   :  { %v1658_v33 = vsel %vm1657_vm13, %v1656_v15, %v1640_v62 }
 0x1bf   :  { %v1660_v51 = vsel %vm1659_vm14, %v1658_v33, %v1644_v6 }
 0x1c1   :  { %v1648_v23 = vpop.permute.xlu0 %1647 }
 0x1c2   :  { %v1662_v42 = vsel %vm1661_vm15, %v1660_v51, %v1648_v23 }
 0x1c3   :  { %2267 = vmatmul.mubr.msk.f32.vlgmr.msra.gmra.mrb[8].mxu0 %vm1687_vm1, %v1662_v42 }
 0x1c4   :  { %2312 = vmatprep.mubr.msk.f32.mxu0 %vm2407_vm0, %v2406_v0  ;;  %2364 = vmatpush3.bf16.msra.mxu0 %v2363_v34 }
 0x1c5   :  { %2365 = vmatprep.subr.bf16.mxu0 %v2415_v37 }
 0x1c8   :  { %2367 = vmatpush3.bf16.msra.mxu0 %v2366_v43 }
 0x1c9   :  { %2368 = vmatprep.subr.bf16.mxu0 %v2415_v37 }
 0x20e   :  { %v1827_v36 = vpop.f32.mrb[8].mxu1 }
 0x20f   :  { %v2303_v63 = vpop.f32.mrb[9].mxu1 }
 0x296   :  { %v1757_v40 = vpop.f32.mrb[8].mxu0 }
 0x297   :  { %v1828_v17 = vadd.f32 %v1827_v36, %v1757_v40  ;;  %v2268_v8 = vpop.f32.mrb[9].mxu0 }
 0x299   :  { %v1838_v45 = vadd.f32 %v2154_v1, %v1828_v17 }
 0x29b   :  { %v1839_v10 = vmax.f32 %v1838_v45, 0.0 }
 0x29d   :  { %2313 = vmatmul.mubr.msk.f32.vlgmr.msra.gmra.mrb[10].mxu0 %vm1655_vm12, %v1839_v10 }
 0x29e   :  { %2370 = vmatpush3.bf16.msra.mxu0 %v2369_v53  ;;  %2323 = vmatprep.mubr.msk.f32.mxu0 %vm2407_vm0, %v2406_v0  ;;  %vm2004_vm0 = vcmask 7168  }
 0x29f   :  { %2371 = vmatprep.subr.bf16.mxu0 %v2415_v37  ;;  %v1930_v37 = vstv %s3421_s10 }
 0x2a2   :  { %2373 = vmatpush3.bf16.msra.mxu0 %v2372_v57 }
 0x370   :  { %v1920_v50 = vpop.f32.mrb[10].mxu0 }
 0x371   :  { %v1921_v55 = vadd.f32 %v2155_v9, %v1920_v50  ;;  %v2314_v46 = vpop.f32.mrb[11].mxu0 }
 0x373   :  { %v1924_v0 = vmax.f32 %v1921_v55, 0.0 }
 0x375   :  { %2324 = vmatmul.mubr.msk.f32.vlgmr.msra.gmra.mrb[12].mxu0 %vm1655_vm12, %v1924_v0 }
 0x448   :  { %v2000_v56 = vpop.f32.mrb[12].mxu0 }
 0x449   :  { %v2001_v60 = vadd.f32 %v2000_v56, %v1930_v37  ;;  %v2325_v13 = vpop.f32.mrb[13].mxu0 }
 0x44b   :  { %2005 = vst.msk [vmem:[%s3422_s23] sm:$0xff] %vm2004_vm0, %v2001_v60 }

</bundles_post_ra>
